<compile_context>
chip_gen: v6e
topology: v6e:2x2x1
jax: 0.10.0
libtpu: 0.0.40
codegen_flags: <defaults>
</compile_context>

<pallas_src>
import functools

import jax
import jax.numpy as jnp
from jax.experimental import pallas as pl
from jax.experimental.pallas import tpu as pltpu


def _round_up(x, m):
    return (x + m - 1) // m * m


def double_conv_kernel(x_ref, w1_ref, b1_ref, w2_ref, b2_ref, o_ref, mid_ref,
                       *, h_true):
    """Fused (conv3x3 -> BN -> ReLU) x2 for one (batch, row-tile) grid step.

    x_ref:   (1, H_pad+4, W+2, Cin)  zero-padded NHWC input (bf16)
    w1_ref:  (3, 3*Cin, Cmid)        per-kx weights, ky folded into K, BN1 scale folded (bf16)
    b1_ref:  (1, Cmid)               BN1 shift (f32)
    w2_ref:  (3, 3*Cmid, Cout)       per-kx weights, BN2 scale folded (bf16)
    b2_ref:  (1, Cout)               BN2 shift (f32)
    o_ref:   (1, TH, W, Cout)        output row tile (exact Cout, no padding)
    mid_ref: (TH+2, W+2, Cmid)       VMEM scratch for the conv-2 input (bf16)
    """
    TH = o_ref.shape[1]
    W = o_ref.shape[2]
    Cin = x_ref.shape[3]
    Cmid = b1_ref.shape[1]
    Cout = o_ref.shape[3]
    th2 = TH + 2

    r0 = pl.multiple_of(pl.program_id(1) * TH, TH)

    # Padded-input rows [r0, r0+TH+4) are exactly the 2-row halo the two
    # stacked 3x3 convs need for output rows [r0, r0+TH).
    x = x_ref[0, pl.ds(r0, TH + 4), :, :]                  # (TH+4, W+2, Cin) bf16

    # -------- layer 1: accumulate over kx column shifts, K = 3*Cin ---------
    acc1 = jnp.zeros((th2 * W, Cmid), jnp.float32)
    for kx in range(3):
        xc = x[:, kx:kx + W, :]                            # column shift kx
        lhs = jnp.concatenate([xc[ky:ky + th2] for ky in range(3)], axis=-1)
        acc1 = acc1 + jnp.dot(lhs.reshape(th2 * W, 3 * Cin), w1_ref[kx],
                              preferred_element_type=jnp.float32)
    y1 = jnp.maximum(acc1 + b1_ref[...], 0.0)              # BN shift + ReLU (f32)
    y1 = y1.reshape(th2, W, Cmid)

    # Rows of the conv-1 output that fall outside the real image are conv-2's
    # zero padding (NOT "conv-1 applied to a zero-extended image"): zero them
    # with a broadcast row mask (no concatenate / copy).
    row_img = r0 - 1 + jax.lax.broadcasted_iota(jnp.int32, (th2, 1, 1), 0)
    row_mask = ((row_img >= 0) & (row_img < h_true)).astype(y1.dtype)
    y1 = y1 * row_mask

    # Conv-2 input lives entirely in VMEM: interior columns hold y1, the two
    # edge columns are conv-2's left/right zero padding (re-zeroed every step
    # so the result is correct regardless of core / step ordering).
    mid_ref[:, 0:1, :] = jnp.zeros((th2, 1, Cmid), mid_ref.dtype)
    mid_ref[:, W + 1:W + 2, :] = jnp.zeros((th2, 1, Cmid), mid_ref.dtype)
    mid_ref[:, 1:W + 1, :] = y1.astype(mid_ref.dtype)

    # -------- layer 2: same scheme, K = 3*Cmid ------------------------------
    acc2 = jnp.zeros((TH * W, Cout), jnp.float32)
    for kx in range(3):
        mc = mid_ref[:, kx:kx + W, :]                      # (th2, W, Cmid) bf16
        lhs = jnp.concatenate([mc[ky:ky + TH] for ky in range(3)], axis=-1)
        acc2 = acc2 + jnp.dot(lhs.reshape(TH * W, 3 * Cmid), w2_ref[kx],
                              preferred_element_type=jnp.float32)
    y2 = jnp.maximum(acc2 + b2_ref[...], 0.0)
    o_ref[0] = y2.reshape(TH, W, Cout).astype(o_ref.dtype)


def fold_bn(gamma, beta, mean, var, eps=1e-5):
    scale = gamma / jnp.sqrt(var + eps)
    shift = beta - mean * scale
    return scale, shift


def _prep_weights(w_hwio, scale, mxu_dtype):
    """Fold BN scale into the conv weights and repack (ky,kx,ci,co) ->
    (kx, ky*ci, co): one (3*Cin, Cout) slab per kx column shift."""
    kh, kw, cin, cout = w_hwio.shape
    wf = (w_hwio * scale[None, None, None, :]).astype(jnp.float32)
    return jnp.transpose(wf, (1, 0, 2, 3)).reshape(kw, kh * cin, cout).astype(mxu_dtype)


def double_conv_pallas(x_nchw, params, *, tile_h=32, mxu_dtype=jnp.bfloat16):
    """Forward pass matching DoubleConv(in_ch, out_ch).forward(x) (eval BN)."""
    N, Cin, H, W = x_nchw.shape
    Cmid = params["w1"].shape[-1]
    Cout = params["w2"].shape[-1]

    TH = min(tile_h, H)
    H_pad = _round_up(H, TH)
    num_r = H_pad // TH

    # NCHW -> NHWC plus ONE combined zero-pad: 2-row / 1-col halo for the two
    # stacked 3x3 convs and bottom rows up to a multiple of TH.  bf16 input.
    x = jnp.transpose(x_nchw, (0, 2, 3, 1))
    x = jnp.pad(x, ((0, 0), (2, 2 + H_pad - H), (1, 1), (0, 0)))
    x = x.astype(mxu_dtype)

    s1, b1 = fold_bn(params["bn1_gamma"], params["bn1_beta"],
                     params["bn1_mean"], params["bn1_var"])
    s2, b2 = fold_bn(params["bn2_gamma"], params["bn2_beta"],
                     params["bn2_mean"], params["bn2_var"])

    w1 = _prep_weights(params["w1"], s1, mxu_dtype)        # (3, 3*Cin, Cmid)
    w2 = _prep_weights(params["w2"], s2, mxu_dtype)        # (3, 3*Cmid, Cout)
    b1p = b1.reshape(1, Cmid).astype(jnp.float32)
    b2p = b2.reshape(1, Cout).astype(jnp.float32)

    kernel = functools.partial(double_conv_kernel, h_true=H)

    out = pl.pallas_call(
        kernel,
        out_shape=jax.ShapeDtypeStruct((N, H_pad, W, Cout), x_nchw.dtype),
        grid=(N, num_r),
        in_specs=[
            # Full padded image for batch n; the block index ignores r so it
            # is DMA'd once per batch and stays resident across row tiles.
            pl.BlockSpec((1, H_pad + 4, W + 2, Cin), lambda n, r: (n, 0, 0, 0)),
            pl.BlockSpec((3, 3 * Cin, Cmid), lambda n, r: (0, 0, 0)),
            pl.BlockSpec((1, Cmid), lambda n, r: (0, 0)),
            pl.BlockSpec((3, 3 * Cmid, Cout), lambda n, r: (0, 0, 0)),
            pl.BlockSpec((1, Cout), lambda n, r: (0, 0)),
        ],
        out_specs=pl.BlockSpec((1, TH, W, Cout), lambda n, r: (n, r, 0, 0)),
        scratch_shapes=[pltpu.VMEM((TH + 2, W + 2, Cmid), mxu_dtype)],
        compiler_params=pltpu.CompilerParams(
            dimension_semantics=("parallel", "parallel")),
    )(x, w1, b1p, w2, b2p)

    out = out[:, :H]                           # drop the row-tile padding
    return jnp.transpose(out, (0, 3, 1, 2))    # NHWC -> NCHW


# --------------------------- plain-JAX reference ---------------------------
def ref_conv_bn_relu(x_nhwc, w_hwio, scale, shift):
    y = jax.lax.conv_general_dilated(
        x_nhwc, w_hwio, window_strides=(1, 1), padding="SAME",
        dimension_numbers=("NHWC", "HWIO", "NHWC"))
    y = y * scale.reshape(1, 1, 1, -1) + shift.reshape(1, 1, 1, -1)
    return jnp.maximum(y, 0.0)


def double_conv_ref(x_nchw, params):
    x = jnp.transpose(x_nchw, (0, 2, 3, 1))
    s1, b1 = fold_bn(params["bn1_gamma"], params["bn1_beta"],
                     params["bn1_mean"], params["bn1_var"])
    s2, b2 = fold_bn(params["bn2_gamma"], params["bn2_beta"],
                     params["bn2_mean"], params["bn2_var"])
    y = ref_conv_bn_relu(x, params["w1"], s1, b1)
    y = ref_conv_bn_relu(y, params["w2"], s2, b2)
    return jnp.transpose(y, (0, 3, 1, 2))


if __name__ == "__main__":
    N, Cin, Cmid, Cout, H, W = 2, 4, 8, 8, 16, 16   # mid_channels defaults to out_channels
    key = jax.random.PRNGKey(0)
    k = jax.random.split(key, 10)

    x = jax.random.normal(k[0], (N, Cin, H, W), jnp.float32)

    params = {
        # conv weights in HWIO layout (PyTorch OIHW transposed to H,W,I,O)
        "w1": 0.2 * jax.random.normal(k[1], (3, 3, Cin, Cmid), jnp.float32),
        "w2": 0.2 * jax.random.normal(k[2], (3, 3, Cmid, Cout), jnp.float32),
        # BatchNorm params / running stats (deterministic, non-trivial)
        "bn1_gamma": 1.0 + 0.1 * jax.random.normal(k[3], (Cmid,), jnp.float32),
        "bn1_beta": 0.1 * jax.random.normal(k[4], (Cmid,), jnp.float32),
        "bn1_mean": 0.05 * jax.random.normal(k[5], (Cmid,), jnp.float32),
        "bn1_var": 1.0 + 0.1 * jnp.abs(jax.random.normal(k[6], (Cmid,), jnp.float32)),
        "bn2_gamma": 1.0 + 0.1 * jax.random.normal(k[7], (Cout,), jnp.float32),
        "bn2_beta": 0.1 * jax.random.normal(k[8], (Cout,), jnp.float32),
        "bn2_mean": 0.05 * jax.random.normal(k[9], (Cout,), jnp.float32),
        "bn2_var": jnp.linspace(0.9, 1.3, Cout, dtype=jnp.float32),
    }

    ref = jax.block_until_ready(double_conv_ref(x, params))

    # Exercise: single row tile (TH=H), multi-tile exact divide, and the
    # H % tile_h != 0 path (H padded to a multiple of TH inside the wrapper).
    for th in (16, 8, 6):
        out = jax.block_until_ready(double_conv_pallas(x, params, tile_h=th))
        assert out.shape == (N, Cout, H, W), (th, out.shape)
        max_err = float(jnp.max(jnp.abs(out - ref)))
        # bf16 MXU inputs / bf16 intermediate (f32 accumulation) -> loose tol.
        assert jnp.allclose(out, ref, rtol=5e-2, atol=5e-2), (th, max_err)

    print("KERNEL_OK")
</pallas_src>

<mosaic_0001>
module attributes {stable_mosaic.version = 11 : i64} {
  func.func @double_conv_kernel(%arg0: i32, %arg1: i32, %arg2: memref<1x20x18x4xbf16, #tpu.memory_space<vmem>>, %arg3: memref<3x12x8xbf16, #tpu.memory_space<vmem>>, %arg4: memref<1x8xf32, #tpu.memory_space<vmem>>, %arg5: memref<3x24x8xbf16, #tpu.memory_space<vmem>>, %arg6: memref<1x8xf32, #tpu.memory_space<vmem>>, %arg7: memref<1x16x16x8xf32, #tpu.memory_space<vmem>>, %arg8: memref<18x18x8xbf16, #tpu.memory_space<vmem>>) attributes {dimension_semantics = [#tpu.dimension_semantics<parallel>, #tpu.dimension_semantics<parallel>], iteration_bounds = array<i64: 2, 1>, scalar_prefetch = 0 : i64, scratch_operands = 1 : i64, tpu.core_type = #tpu.core_type<tc>, window_params = [{transform_indices = @transform_0, window_bounds = array<i64: 1, 20, 18, 4>}, {pipeline_mode = #tpu.pipeline_mode<synchronous>, transform_indices = @transform_1, window_bounds = array<i64: 3, 12, 8>}, {pipeline_mode = #tpu.pipeline_mode<synchronous>, transform_indices = @transform_2, window_bounds = array<i64: 1, 8>}, {pipeline_mode = #tpu.pipeline_mode<synchronous>, transform_indices = @transform_3, window_bounds = array<i64: 3, 24, 8>}, {pipeline_mode = #tpu.pipeline_mode<synchronous>, transform_indices = @transform_4, window_bounds = array<i64: 1, 8>}, {transform_indices = @transform_5, window_bounds = array<i64: 1, 16, 16, 8>}]} {
    %c16_i32 = arith.constant 16 : i32
    %0 = arith.muli %arg1, %c16_i32 : i32
    %1 = tpu.assume_multiple %0, 16 : i32
    %c0 = arith.constant 0 : index
    %2 = arith.index_cast %1 : i32 to index
    %c0_0 = arith.constant 0 : index
    %c0_1 = arith.constant 0 : index
    %3 = vector.load %arg2[%c0, %2, %c0_0, %c0_1] : memref<1x20x18x4xbf16, #tpu.memory_space<vmem>>, vector<1x20x18x4xbf16>
    %4 = vector.shape_cast %3 : vector<1x20x18x4xbf16> to vector<20x18x4xbf16>
    %cst = arith.constant 0.000000e+00 : f32
    %5 = vector.broadcast %cst : f32 to vector<288x8xf32>
    %6 = vector.extract_strided_slice %4 {offsets = [0, 0, 0], sizes = [20, 16, 4], strides = [1, 1, 1]} : vector<20x18x4xbf16> to vector<20x16x4xbf16>
    %7 = vector.extract_strided_slice %6 {offsets = [0, 0, 0], sizes = [18, 16, 4], strides = [1, 1, 1]} : vector<20x16x4xbf16> to vector<18x16x4xbf16>
    %8 = vector.extract_strided_slice %6 {offsets = [1, 0, 0], sizes = [18, 16, 4], strides = [1, 1, 1]} : vector<20x16x4xbf16> to vector<18x16x4xbf16>
    %9 = vector.extract_strided_slice %6 {offsets = [2, 0, 0], sizes = [18, 16, 4], strides = [1, 1, 1]} : vector<20x16x4xbf16> to vector<18x16x4xbf16>
    %10 = tpu.concatenate %7, %8, %9 in 2 : vector<18x16x4xbf16>, vector<18x16x4xbf16>, vector<18x16x4xbf16> -> vector<18x16x12xbf16>
    %11 = vector.shape_cast %10 : vector<18x16x12xbf16> to vector<288x12xbf16>
    %c0_2 = arith.constant 0 : index
    %c0_3 = arith.constant 0 : index
    %c0_4 = arith.constant 0 : index
    %12 = vector.load %arg3[%c0_2, %c0_3, %c0_4] : memref<3x12x8xbf16, #tpu.memory_space<vmem>>, vector<1x12x8xbf16>
    %13 = vector.shape_cast %12 : vector<1x12x8xbf16> to vector<12x8xbf16>
    %cst_5 = arith.constant dense<0.000000e+00> : vector<288x8xf32>
    %14 = tpu.matmul %11, %13, %cst_5 {dimension_numbers = #tpu.dot_dimension_numbers<[1], [0], [0], [1], [0, 0, 1, 1], [], []>} : vector<288x12xbf16>, vector<12x8xbf16>, vector<288x8xf32> -> vector<288x8xf32>
    %15 = arith.addf %5, %14 : vector<288x8xf32>
    %16 = vector.extract_strided_slice %4 {offsets = [0, 1, 0], sizes = [20, 16, 4], strides = [1, 1, 1]} : vector<20x18x4xbf16> to vector<20x16x4xbf16>
    %17 = vector.extract_strided_slice %16 {offsets = [0, 0, 0], sizes = [18, 16, 4], strides = [1, 1, 1]} : vector<20x16x4xbf16> to vector<18x16x4xbf16>
    %18 = vector.extract_strided_slice %16 {offsets = [1, 0, 0], sizes = [18, 16, 4], strides = [1, 1, 1]} : vector<20x16x4xbf16> to vector<18x16x4xbf16>
    %19 = vector.extract_strided_slice %16 {offsets = [2, 0, 0], sizes = [18, 16, 4], strides = [1, 1, 1]} : vector<20x16x4xbf16> to vector<18x16x4xbf16>
    %20 = tpu.concatenate %17, %18, %19 in 2 : vector<18x16x4xbf16>, vector<18x16x4xbf16>, vector<18x16x4xbf16> -> vector<18x16x12xbf16>
    %21 = vector.shape_cast %20 : vector<18x16x12xbf16> to vector<288x12xbf16>
    %c1 = arith.constant 1 : index
    %c0_6 = arith.constant 0 : index
    %c0_7 = arith.constant 0 : index
    %22 = vector.load %arg3[%c1, %c0_6, %c0_7] : memref<3x12x8xbf16, #tpu.memory_space<vmem>>, vector<1x12x8xbf16>
    %23 = vector.shape_cast %22 : vector<1x12x8xbf16> to vector<12x8xbf16>
    %cst_8 = arith.constant dense<0.000000e+00> : vector<288x8xf32>
    %24 = tpu.matmul %21, %23, %cst_8 {dimension_numbers = #tpu.dot_dimension_numbers<[1], [0], [0], [1], [0, 0, 1, 1], [], []>} : vector<288x12xbf16>, vector<12x8xbf16>, vector<288x8xf32> -> vector<288x8xf32>
    %25 = arith.addf %15, %24 : vector<288x8xf32>
    %26 = vector.extract_strided_slice %4 {offsets = [0, 2, 0], sizes = [20, 16, 4], strides = [1, 1, 1]} : vector<20x18x4xbf16> to vector<20x16x4xbf16>
    %27 = vector.extract_strided_slice %26 {offsets = [0, 0, 0], sizes = [18, 16, 4], strides = [1, 1, 1]} : vector<20x16x4xbf16> to vector<18x16x4xbf16>
    %28 = vector.extract_strided_slice %26 {offsets = [1, 0, 0], sizes = [18, 16, 4], strides = [1, 1, 1]} : vector<20x16x4xbf16> to vector<18x16x4xbf16>
    %29 = vector.extract_strided_slice %26 {offsets = [2, 0, 0], sizes = [18, 16, 4], strides = [1, 1, 1]} : vector<20x16x4xbf16> to vector<18x16x4xbf16>
    %30 = tpu.concatenate %27, %28, %29 in 2 : vector<18x16x4xbf16>, vector<18x16x4xbf16>, vector<18x16x4xbf16> -> vector<18x16x12xbf16>
    %31 = vector.shape_cast %30 : vector<18x16x12xbf16> to vector<288x12xbf16>
    %c2 = arith.constant 2 : index
    %c0_9 = arith.constant 0 : index
    %c0_10 = arith.constant 0 : index
    %32 = vector.load %arg3[%c2, %c0_9, %c0_10] : memref<3x12x8xbf16, #tpu.memory_space<vmem>>, vector<1x12x8xbf16>
    %33 = vector.shape_cast %32 : vector<1x12x8xbf16> to vector<12x8xbf16>
    %cst_11 = arith.constant dense<0.000000e+00> : vector<288x8xf32>
    %34 = tpu.matmul %31, %33, %cst_11 {dimension_numbers = #tpu.dot_dimension_numbers<[1], [0], [0], [1], [0, 0, 1, 1], [], []>} : vector<288x12xbf16>, vector<12x8xbf16>, vector<288x8xf32> -> vector<288x8xf32>
    %35 = arith.addf %25, %34 : vector<288x8xf32>
    %c0_12 = arith.constant 0 : index
    %c0_13 = arith.constant 0 : index
    %36 = vector.load %arg4[%c0_12, %c0_13] : memref<1x8xf32, #tpu.memory_space<vmem>>, vector<1x8xf32>
    %37 = vector.broadcast %36 : vector<1x8xf32> to vector<288x8xf32>
    %38 = arith.addf %35, %37 : vector<288x8xf32>
    %cst_14 = arith.constant 0.000000e+00 : f32
    %39 = vector.broadcast %cst_14 : f32 to vector<288x8xf32>
    %40 = arith.maximumf %38, %39 : vector<288x8xf32>
    %41 = vector.shape_cast %40 : vector<288x8xf32> to vector<18x16x8xf32>
    %c1_i32 = arith.constant 1 : i32
    %42 = arith.subi %1, %c1_i32 : i32
    %43 = tpu.iota {dimensions = array<i32: 0>} : vector<18x1x1xi32>
    %44 = vector.broadcast %42 : i32 to vector<18x1x1xi32>
    %45 = arith.addi %44, %43 : vector<18x1x1xi32>
    %c0_i32 = arith.constant 0 : i32
    %46 = vector.broadcast %c0_i32 : i32 to vector<18x1x1xi32>
    %47 = arith.cmpi sge, %45, %46 : vector<18x1x1xi32>
    %c16_i32_15 = arith.constant 16 : i32
    %48 = vector.broadcast %c16_i32_15 : i32 to vector<18x1x1xi32>
    %49 = arith.cmpi slt, %45, %48 : vector<18x1x1xi32>
    %50 = arith.andi %47, %49 : vector<18x1x1xi1>
    %51 = arith.extui %50 : vector<18x1x1xi1> to vector<18x1x1xi32>
    %52 = arith.sitofp %51 : vector<18x1x1xi32> to vector<18x1x1xf32>
    %53 = vector.broadcast %52 : vector<18x1x1xf32> to vector<18x16x8xf32>
    %54 = arith.mulf %41, %53 : vector<18x16x8xf32>
    %cst_16 = arith.constant 0.000000e+00 : bf16
    %55 = vector.broadcast %cst_16 : bf16 to vector<18x1x8xbf16>
    %c0_17 = arith.constant 0 : index
    %c0_18 = arith.constant 0 : index
    %c0_19 = arith.constant 0 : index
    %56 = vector.load %arg8[%c0_17, %c0_18, %c0_19] : memref<18x18x8xbf16, #tpu.memory_space<vmem>>, vector<18x1x8xbf16>
    tpu.vector_store %arg8[%c0_17, %c0_18, %c0_19], %55 {strides = array<i32>} : memref<18x18x8xbf16, #tpu.memory_space<vmem>>, vector<18x1x8xbf16>,
    %cst_20 = arith.constant 0.000000e+00 : bf16
    %57 = vector.broadcast %cst_20 : bf16 to vector<18x1x8xbf16>
    %c0_21 = arith.constant 0 : index
    %c17 = arith.constant 17 : index
    %c0_22 = arith.constant 0 : index
    %58 = vector.load %arg8[%c0_21, %c17, %c0_22] : memref<18x18x8xbf16, #tpu.memory_space<vmem>>, vector<18x1x8xbf16>
    tpu.vector_store %arg8[%c0_21, %c17, %c0_22], %57 {strides = array<i32>} : memref<18x18x8xbf16, #tpu.memory_space<vmem>>, vector<18x1x8xbf16>,
    %59 = arith.truncf %54 : vector<18x16x8xf32> to vector<18x16x8xbf16>
    %c0_23 = arith.constant 0 : index
    %c1_24 = arith.constant 1 : index
    %c0_25 = arith.constant 0 : index
    %60 = vector.load %arg8[%c0_23, %c1_24, %c0_25] : memref<18x18x8xbf16, #tpu.memory_space<vmem>>, vector<18x16x8xbf16>
    tpu.vector_store %arg8[%c0_23, %c1_24, %c0_25], %59 {strides = array<i32>} : memref<18x18x8xbf16, #tpu.memory_space<vmem>>, vector<18x16x8xbf16>,
    %cst_26 = arith.constant 0.000000e+00 : f32
    %61 = vector.broadcast %cst_26 : f32 to vector<256x8xf32>
    %c0_27 = arith.constant 0 : index
    %c0_28 = arith.constant 0 : index
    %c0_29 = arith.constant 0 : index
    %62 = vector.load %arg8[%c0_27, %c0_28, %c0_29] : memref<18x18x8xbf16, #tpu.memory_space<vmem>>, vector<18x16x8xbf16>
    %63 = vector.extract_strided_slice %62 {offsets = [0, 0, 0], sizes = [16, 16, 8], strides = [1, 1, 1]} : vector<18x16x8xbf16> to vector<16x16x8xbf16>
    %64 = vector.extract_strided_slice %62 {offsets = [1, 0, 0], sizes = [16, 16, 8], strides = [1, 1, 1]} : vector<18x16x8xbf16> to vector<16x16x8xbf16>
    %65 = vector.extract_strided_slice %62 {offsets = [2, 0, 0], sizes = [16, 16, 8], strides = [1, 1, 1]} : vector<18x16x8xbf16> to vector<16x16x8xbf16>
    %66 = tpu.concatenate %63, %64, %65 in 2 : vector<16x16x8xbf16>, vector<16x16x8xbf16>, vector<16x16x8xbf16> -> vector<16x16x24xbf16>
    %67 = vector.shape_cast %66 : vector<16x16x24xbf16> to vector<256x24xbf16>
    %c0_30 = arith.constant 0 : index
    %c0_31 = arith.constant 0 : index
    %c0_32 = arith.constant 0 : index
    %68 = vector.load %arg5[%c0_30, %c0_31, %c0_32] : memref<3x24x8xbf16, #tpu.memory_space<vmem>>, vector<1x24x8xbf16>
    %69 = vector.shape_cast %68 : vector<1x24x8xbf16> to vector<24x8xbf16>
    %cst_33 = arith.constant dense<0.000000e+00> : vector<256x8xf32>
    %70 = tpu.matmul %67, %69, %cst_33 {dimension_numbers = #tpu.dot_dimension_numbers<[1], [0], [0], [1], [0, 0, 1, 1], [], []>} : vector<256x24xbf16>, vector<24x8xbf16>, vector<256x8xf32> -> vector<256x8xf32>
    %71 = arith.addf %61, %70 : vector<256x8xf32>
    %c0_34 = arith.constant 0 : index
    %c1_35 = arith.constant 1 : index
    %c0_36 = arith.constant 0 : index
    %72 = vector.load %arg8[%c0_34, %c1_35, %c0_36] : memref<18x18x8xbf16, #tpu.memory_space<vmem>>, vector<18x16x8xbf16>
    %73 = vector.extract_strided_slice %72 {offsets = [0, 0, 0], sizes = [16, 16, 8], strides = [1, 1, 1]} : vector<18x16x8xbf16> to vector<16x16x8xbf16>
    %74 = vector.extract_strided_slice %72 {offsets = [1, 0, 0], sizes = [16, 16, 8], strides = [1, 1, 1]} : vector<18x16x8xbf16> to vector<16x16x8xbf16>
    %75 = vector.extract_strided_slice %72 {offsets = [2, 0, 0], sizes = [16, 16, 8], strides = [1, 1, 1]} : vector<18x16x8xbf16> to vector<16x16x8xbf16>
    %76 = tpu.concatenate %73, %74, %75 in 2 : vector<16x16x8xbf16>, vector<16x16x8xbf16>, vector<16x16x8xbf16> -> vector<16x16x24xbf16>
    %77 = vector.shape_cast %76 : vector<16x16x24xbf16> to vector<256x24xbf16>
    %c1_37 = arith.constant 1 : index
    %c0_38 = arith.constant 0 : index
    %c0_39 = arith.constant 0 : index
    %78 = vector.load %arg5[%c1_37, %c0_38, %c0_39] : memref<3x24x8xbf16, #tpu.memory_space<vmem>>, vector<1x24x8xbf16>
    %79 = vector.shape_cast %78 : vector<1x24x8xbf16> to vector<24x8xbf16>
    %cst_40 = arith.constant dense<0.000000e+00> : vector<256x8xf32>
    %80 = tpu.matmul %77, %79, %cst_40 {dimension_numbers = #tpu.dot_dimension_numbers<[1], [0], [0], [1], [0, 0, 1, 1], [], []>} : vector<256x24xbf16>, vector<24x8xbf16>, vector<256x8xf32> -> vector<256x8xf32>
    %81 = arith.addf %71, %80 : vector<256x8xf32>
    %c0_41 = arith.constant 0 : index
    %c2_42 = arith.constant 2 : index
    %c0_43 = arith.constant 0 : index
    %82 = vector.load %arg8[%c0_41, %c2_42, %c0_43] : memref<18x18x8xbf16, #tpu.memory_space<vmem>>, vector<18x16x8xbf16>
    %83 = vector.extract_strided_slice %82 {offsets = [0, 0, 0], sizes = [16, 16, 8], strides = [1, 1, 1]} : vector<18x16x8xbf16> to vector<16x16x8xbf16>
    %84 = vector.extract_strided_slice %82 {offsets = [1, 0, 0], sizes = [16, 16, 8], strides = [1, 1, 1]} : vector<18x16x8xbf16> to vector<16x16x8xbf16>
    %85 = vector.extract_strided_slice %82 {offsets = [2, 0, 0], sizes = [16, 16, 8], strides = [1, 1, 1]} : vector<18x16x8xbf16> to vector<16x16x8xbf16>
    %86 = tpu.concatenate %83, %84, %85 in 2 : vector<16x16x8xbf16>, vector<16x16x8xbf16>, vector<16x16x8xbf16> -> vector<16x16x24xbf16>
    %87 = vector.shape_cast %86 : vector<16x16x24xbf16> to vector<256x24xbf16>
    %c2_44 = arith.constant 2 : index
    %c0_45 = arith.constant 0 : index
    %c0_46 = arith.constant 0 : index
    %88 = vector.load %arg5[%c2_44, %c0_45, %c0_46] : memref<3x24x8xbf16, #tpu.memory_space<vmem>>, vector<1x24x8xbf16>
    %89 = vector.shape_cast %88 : vector<1x24x8xbf16> to vector<24x8xbf16>
    %cst_47 = arith.constant dense<0.000000e+00> : vector<256x8xf32>
    %90 = tpu.matmul %87, %89, %cst_47 {dimension_numbers = #tpu.dot_dimension_numbers<[1], [0], [0], [1], [0, 0, 1, 1], [], []>} : vector<256x24xbf16>, vector<24x8xbf16>, vector<256x8xf32> -> vector<256x8xf32>
    %91 = arith.addf %81, %90 : vector<256x8xf32>
    %c0_48 = arith.constant 0 : index
    %c0_49 = arith.constant 0 : index
    %92 = vector.load %arg6[%c0_48, %c0_49] : memref<1x8xf32, #tpu.memory_space<vmem>>, vector<1x8xf32>
    %93 = vector.broadcast %92 : vector<1x8xf32> to vector<256x8xf32>
    %94 = arith.addf %91, %93 : vector<256x8xf32>
    %cst_50 = arith.constant 0.000000e+00 : f32
    %95 = vector.broadcast %cst_50 : f32 to vector<256x8xf32>
    %96 = arith.maximumf %94, %95 : vector<256x8xf32>
    %97 = vector.shape_cast %96 : vector<256x8xf32> to vector<16x16x8xf32>
    %c0_51 = arith.constant 0 : index
    %c0_52 = arith.constant 0 : index
    %c0_53 = arith.constant 0 : index
    %c0_54 = arith.constant 0 : index
    %98 = vector.load %arg7[%c0_51, %c0_52, %c0_53, %c0_54] : memref<1x16x16x8xf32, #tpu.memory_space<vmem>>, vector<1x16x16x8xf32>
    %99 = vector.shape_cast %98 : vector<1x16x16x8xf32> to vector<16x16x8xf32>
    %100 = vector.shape_cast %97 : vector<16x16x8xf32> to vector<1x16x16x8xf32>
    tpu.vector_store %arg7[%c0_51, %c0_52, %c0_53, %c0_54], %100 {strides = array<i32>} : memref<1x16x16x8xf32, #tpu.memory_space<vmem>>, vector<1x16x16x8xf32>,
    return
  }
  func.func @transform_0(%arg0: i32, %arg1: i32) -> (i32, i32, i32, i32) {
    %c0_i32 = arith.constant 0 : i32
    %c0_i32_0 = arith.constant 0 : i32
    %c0_i32_1 = arith.constant 0 : i32
    %c0_i32_2 = arith.constant 0 : i32
    return %arg0, %c0_i32, %c0_i32_0, %c0_i32_1 : i32, i32, i32, i32
  }
  func.func @transform_1(%arg0: i32, %arg1: i32) -> (i32, i32, i32) {
    %c0_i32 = arith.constant 0 : i32
    %c0_i32_0 = arith.constant 0 : i32
    %c0_i32_1 = arith.constant 0 : i32
    %c0_i32_2 = arith.constant 0 : i32
    return %c0_i32, %c0_i32_0, %c0_i32_1 : i32, i32, i32
  }
  func.func @transform_2(%arg0: i32, %arg1: i32) -> (i32, i32) {
    %c0_i32 = arith.constant 0 : i32
    %c0_i32_0 = arith.constant 0 : i32
    %c0_i32_1 = arith.constant 0 : i32
    return %c0_i32, %c0_i32_0 : i32, i32
  }
  func.func @transform_3(%arg0: i32, %arg1: i32) -> (i32, i32, i32) {
    %c0_i32 = arith.constant 0 : i32
    %c0_i32_0 = arith.constant 0 : i32
    %c0_i32_1 = arith.constant 0 : i32
    %c0_i32_2 = arith.constant 0 : i32
    return %c0_i32, %c0_i32_0, %c0_i32_1 : i32, i32, i32
  }
  func.func @transform_4(%arg0: i32, %arg1: i32) -> (i32, i32) {
    %c0_i32 = arith.constant 0 : i32
    %c0_i32_0 = arith.constant 0 : i32
    %c0_i32_1 = arith.constant 0 : i32
    return %c0_i32, %c0_i32_0 : i32, i32
  }
  func.func @transform_5(%arg0: i32, %arg1: i32) -> (i32, i32, i32, i32) {
    %c0_i32 = arith.constant 0 : i32
    %c0_i32_0 = arith.constant 0 : i32
    %c0_i32_1 = arith.constant 0 : i32
    return %arg0, %arg1, %c0_i32, %c0_i32_0 : i32, i32, i32, i32
  }
}

</mosaic_0001>

<bundles_post_ra>
// kernel: tpu_custom_call.1
= control target key start
LH: loop header
LB: loop body
LE: loop exit
PB: predicated region body
PF: predicated region fallthrough
CT: control target
= control target key end

     0   :  { %s5412_s18 = smov 0   ;;  %s5414_s19 = smov 0   ;;  %s7438_s0 = inlined_call_operand.vmem [shape: bf16[2,20,18,4], index: 0, kind: input, shape index: {}]   ;;  %s7439_s1 = inlined_call_operand.vmem [shape: bf16[3,12,8], index: 1, kind: input, shape index: {}]   ;;  %s7440_s2 = inlined_call_operand.vmem [shape: f32[1,8], index: 2, kind: input, shape index: {}]   ;;  %s7441_s3 = inlined_call_operand.vmem [shape: bf16[3,24,8], index: 3, kind: input, shape index: {}]   ;;  %s7442_s4 = inlined_call_operand.vmem [shape: f32[1,8], index: 4, kind: input, shape index: {}]   ;;  %s7443_s5 = inlined_call_operand.vmem [shape: f32[2,16,16,8], index: 5, kind: output, shape index: {}]  }
   0x1   :  { %s5416_s20 = smov 0  }
   0x2 LB: > { %s27_s21 = sadd.s32 1, %s5373_s19  ;;  %p4585_p0 = scmp.ge.s32.totalorder %s5377_s20, 1  ;;  %s5377_s20 = sphi %s5416_s20, %s15_s20   ;;  %s5373_s19 = sphi %s5414_s19, %s7479_s19   ;;  %s5369_s18 = sphi %s5412_s18, %s7478_s18  }
   0x3   : > { %p29_p1 = scmp.ge.s32.totalorder %s27_s21, 2  ;;  %p201_p2 = scmp.lt.s32.totalorder %s5377_s20, 3 }
   0x5   : > { %s7481_s21 = smov (%p29_p1, %s27_s21), 0  ;;  %p202_p3 = pnand %p4585_p0, %p201_p2 }
   0x7   : > { %205 = sbr.rel (%p202_p3) target bundleno = 1063 (0x427), region = 40 }
   0xc   : > { %p234_p4 = scmp.lt.s32.totalorder %s5369_s18, 1  ;;  %vm1047_vm0 = vcmask 1045504   ;;  %v5281_v0 = vld [vmem:[%s7439_s1] sm:$0x3f]   ;;  %s5379_s28 = smov 8   ;;  %vm487_vm1 = vcmask 31744  }
   0xd   : > { %5215 = vmatprep.subr.msk.bf16.mxu1 %vm1047_vm0, %v5281_v0  ;;  %v1270_v1 = vsel %vm1047_vm0, %v5281_v0, 0  ;;  %s5380_s29 = smov 4   ;;  %v5286_v13 = vld [vmem:[%s7439_s1 + $0x8] sm:$0x3f]   ;;  %v5586_v25 = vld [vmem:[%s7439_s1 + $0x10] sm:$0x3f]  }
   0xe   : > { %s7483_s18 = smov (!%p234_p4, %s5369_s18), 1  ;;  %5031 = vmatpush3.bf16.msra.mxu1 %v1270_v1  ;;  %5214 = vmatprep.subr.msk.bf16.mxu0 %vm1047_vm0, %v5286_v13  ;;  %v1049_v15 = vsel %vm1047_vm0, %v5286_v13, 0  ;;  %vm542_vm2 = vcmask 64512   ;;  %vm992_vm3 = vcmask 97280   ;;  %vm1485_vm4 = vcmask 1046528   ;;  %s5381_s11 = smov 16  }
   0xf   : > { %s5220_s24 = smul.u32 240, %s7483_s18  ;;  %4993 = vmatpush3.bf16.msra.mxu0 %v1049_v15  ;;  %vm803_vm5 = vsmask.f32 7424  ;;  %vm2042_vm6 = vcmask 57344   ;;  %vm2043_vm7 = vsmask.f32 256 }
  0x10   : > { %5216 = vmatprep.subr.msk.bf16.mxu0 %vm1047_vm0, %v5586_v25  ;;  %vm5942_vm8 = vmand %vm2042_vm6, %vm2043_vm7  ;;  %vm2099_vm9 = vsmask.f32 7938  ;;  %vm2625_vm11 = vcmask 60416   ;;  %vm2263_vm12 = vsmask.f32 4368  ;;  %vm3466_vm15 = vcmask 1043456  }
  0x11   : > { %s5441_s27 = scalar_lea.vmem %s7438_s0, %s5220_s24  ;;  %vm5951_vm10 = vmand %vm2042_vm6, %vm2099_vm9  ;;  %s4844_s7 = sshll.u32 %s7483_s18, 8 }
  0x12   : > { %v5444_v2 = vld [vmem:[%s5441_s27 + $0x18] sm:$0xff]   ;;  %v5447_v3 = vld [vmem:[%s5441_s27 + $0xc] sm:$0xff]   ;;  %v5452_v4 = vld [vmem:[%s5441_s27 + $0x24] sm:$0xff]   ;;  %s7306_s10 = scalar_lea.vmem %s7443_s5, %s4844_s7 }
  0x13   : > { %451 = vrot.lane.b32.xlu1 %v5444_v2, %s5379_s28  ;;  %410 = vrot.lane.b32.xlu0 %v5447_v3, %s5380_s29  ;;  %v5457_v5 = vld [vmem:[%s5441_s27 + $0x20] ss:$0 sps:$4 sm:$0x11]   ;;  %v5460_v6 = vld [vmem:[%s5441_s27 + $0x14] ss:$0 sps:$4 sm:$0x11]   ;;  %vm6235_vm13 = vmand %vm2625_vm11, %vm2099_vm9 }
  0x14   : > { %v5467_v7 = vld [vmem:[%s5441_s27 + $0x2c] ss:$0 sps:$4 sm:$0x11]   ;;  %v5476_v8 = vld [vmem:[%s5441_s27 + $0x30] sm:$0xff]   ;;  %v5483_v9 = vld [vmem:[%s5441_s27 + $0x3c] sm:$0xff]  }
  0x15   : > { %v5490_v10 = vld [vmem:[%s5441_s27 + $0x38] ss:$0 sps:$4 sm:$0x11]   ;;  %v5495_v11 = vld [vmem:[%s5441_s27 + $0x44] ss:$0 sps:$4 sm:$0x11]   ;;  %vm6247_vm14 = vmor %vm2043_vm7, %vm2263_vm12 }
  0x16   : > { %v5504_v12 = vld [vmem:[%s5441_s27 + $0x48] sm:$0xff]   ;;  %v5514_v14 = vld [vmem:[%s5441_s27 + $0x54] sm:$0xff]   ;;  %v5523_v16 = vld [vmem:[%s5441_s27 + $0x50] ss:$0 sps:$4 sm:$0x11]  }
  0x17   : > { %453 = vrot.lane.b32.xlu1 %v5452_v4, %s5379_s28  ;;  %412 = vrot.lane.b32.xlu0 %v5444_v2, %s5380_s29  ;;  %v5530_v17 = vld [vmem:[%s5441_s27 + $0x5c] ss:$0 sps:$4 sm:$0x11]   ;;  %v5537_v18 = vld [vmem:[%s5441_s27 + $0x60] sm:$0xff]  }
  0x18   : > { %v5544_v19 = vld [vmem:[%s5441_s27 + $0x6c] sm:$0xff]   ;;  %v5551_v20 = vld [vmem:[%s5441_s27 + $0x68] ss:$0 sps:$4 sm:$0x11]   ;;  %v5565_v22 = vld [vmem:[%s5441_s27 + $0x78] sm:$0xff]  }
  0x19   : > { %v5558_v21 = vld [vmem:[%s5441_s27 + $0x74] ss:$0 sps:$4 sm:$0x11]   ;;  %v5572_v23 = vld [vmem:[%s5441_s27 + $0x84] sm:$0xff]   ;;  %v5607_v28 = vld [vmem:[%s5441_s27 + $0x9c] sm:$0xff]  }
  0x1a   : > { %v5579_v24 = vld [vmem:[%s5441_s27 + $0x80] ss:$0 sps:$4 sm:$0x11]   ;;  %v5591_v26 = vld [vmem:[%s5441_s27 + $0x8c] ss:$0 sps:$4 sm:$0x11]  }
  0x1b   : > { %640 = vrot.lane.b32.xlu1 %v5457_v5, %s5380_s29  ;;  %638 = vrot.lane.b32.xlu0 %v5460_v6, %s5380_s29  ;;  %v5600_v27 = vld [vmem:[%s5441_s27 + $0x90] sm:$0xff]   ;;  %v5614_v29 = vld [vmem:[%s5441_s27 + $0x98] ss:$0 sps:$4 sm:$0x11]  }
  0x1c   : > { %v5621_v30 = vld [vmem:[%s5441_s27 + $0xa4] ss:$0 sps:$4 sm:$0x11]   ;;  %v5628_v31 = vld [vmem:[%s5441_s27 + $0xa8] sm:$0xff]   ;;  %v5635_v32 = vld [vmem:[%s5441_s27 + $0xb4] sm:$0xff]  }
  0x1d   : > { %v5642_v33 = vld [vmem:[%s5441_s27 + $0xb0] ss:$0 sps:$4 sm:$0x11]   ;;  %v5649_v34 = vld [vmem:[%s5441_s27 + $0xbc] ss:$0 sps:$4 sm:$0x11]  }
  0x1e   : > { %v5656_v35 = vld [vmem:[%s5441_s27 + $0xc0] sm:$0xff]   ;;  %v5664_v37 = vld [vmem:[%s5441_s27 + $0xcc] sm:$0xff]   ;;  %v5672_v41 = vld [vmem:[%s5441_s27 + $0xc8] ss:$0 sps:$4 sm:$0x11]  }
  0x1f   : > { %679 = vrot.lane.b32.xlu1 %v5467_v7, %s5379_s28  ;;  %677 = vrot.lane.b32.xlu0 %v5457_v5, %s5379_s28  ;;  %v5279_v36 = vld [vmem:[%s5441_s27] sm:$0xff]   ;;  %v5683_v46 = vld [vmem:[%s5441_s27 + $0xd4] ss:$0 sps:$4 sm:$0x11]  }
  0x20   : > { %v5283_v51 = vld [vmem:[%s5441_s27 + $0x8] ss:$0 sps:$4 sm:$0x11]   ;;  %v5285_v53 = vld [vmem:[%s5441_s27 + $0xd8] sm:$0xff]  }
  0x23   : > { %416 = vrot.lane.b32.xlu1 %v5476_v8, %s5380_s29  ;;  %414 = vrot.lane.b32.xlu0 %v5452_v4, %s5380_s29 }
  0x27   : > { %457 = vrot.lane.b32.xlu1 %v5483_v9, %s5379_s28  ;;  %455 = vrot.lane.b32.xlu0 %v5476_v8, %s5379_s28 }
  0x2b   : > { %644 = vrot.lane.b32.xlu1 %v5490_v10, %s5380_s29  ;;  %642 = vrot.lane.b32.xlu0 %v5467_v7, %s5380_s29 }
  0x2f   : > { %683 = vrot.lane.b32.xlu1 %v5495_v11, %s5379_s28  ;;  %681 = vrot.lane.b32.xlu0 %v5490_v10, %s5379_s28 }
  0x33   : > { %420 = vrot.lane.b32.xlu1 %v5504_v12, %s5380_s29  ;;  %418 = vrot.lane.b32.xlu0 %v5483_v9, %s5380_s29 }
  0x37   : > { %461 = vrot.lane.b32.xlu1 %v5514_v14, %s5379_s28  ;;  %459 = vrot.lane.b32.xlu0 %v5504_v12, %s5379_s28 }
  0x3b   : > { %648 = vrot.lane.b32.xlu1 %v5523_v16, %s5380_s29  ;;  %646 = vrot.lane.b32.xlu0 %v5495_v11, %s5380_s29 }
  0x3f   : > { %687 = vrot.lane.b32.xlu1 %v5530_v17, %s5379_s28  ;;  %685 = vrot.lane.b32.xlu0 %v5523_v16, %s5379_s28 }
  0x43   : > { %424 = vrot.lane.b32.xlu1 %v5537_v18, %s5380_s29  ;;  %422 = vrot.lane.b32.xlu0 %v5514_v14, %s5380_s29 }
  0x47   : > { %465 = vrot.lane.b32.xlu1 %v5544_v19, %s5379_s28  ;;  %463 = vrot.lane.b32.xlu0 %v5537_v18, %s5379_s28 }
  0x4b   : > { %652 = vrot.lane.b32.xlu1 %v5551_v20, %s5380_s29  ;;  %650 = vrot.lane.b32.xlu0 %v5530_v17, %s5380_s29 }
  0x4f   : > { %691 = vrot.lane.b32.xlu1 %v5558_v21, %s5379_s28  ;;  %689 = vrot.lane.b32.xlu0 %v5551_v20, %s5379_s28 }
  0x53   : > { %428 = vrot.lane.b32.xlu1 %v5565_v22, %s5380_s29  ;;  %426 = vrot.lane.b32.xlu0 %v5544_v19, %s5380_s29 }
  0x57   : > { %469 = vrot.lane.b32.xlu1 %v5572_v23, %s5379_s28  ;;  %467 = vrot.lane.b32.xlu0 %v5565_v22, %s5379_s28 }
  0x5b   : > { %656 = vrot.lane.b32.xlu1 %v5579_v24, %s5380_s29  ;;  %654 = vrot.lane.b32.xlu0 %v5558_v21, %s5380_s29 }
  0x5f   : > { %695 = vrot.lane.b32.xlu1 %v5591_v26, %s5379_s28  ;;  %693 = vrot.lane.b32.xlu0 %v5579_v24, %s5379_s28 }
  0x63   : > { %432 = vrot.lane.b32.xlu1 %v5600_v27, %s5380_s29  ;;  %430 = vrot.lane.b32.xlu0 %v5572_v23, %s5380_s29 }
  0x67   : > { %473 = vrot.lane.b32.xlu1 %v5607_v28, %s5379_s28  ;;  %471 = vrot.lane.b32.xlu0 %v5600_v27, %s5379_s28 }
  0x6b   : > { %660 = vrot.lane.b32.xlu1 %v5614_v29, %s5380_s29  ;;  %658 = vrot.lane.b32.xlu0 %v5591_v26, %s5380_s29 }
  0x6f   : > { %699 = vrot.lane.b32.xlu1 %v5621_v30, %s5379_s28  ;;  %697 = vrot.lane.b32.xlu0 %v5614_v29, %s5379_s28 }
  0x73   : > { %436 = vrot.lane.b32.xlu1 %v5628_v31, %s5380_s29  ;;  %434 = vrot.lane.b32.xlu0 %v5607_v28, %s5380_s29 }
  0x77   : > { %477 = vrot.lane.b32.xlu1 %v5635_v32, %s5379_s28  ;;  %475 = vrot.lane.b32.xlu0 %v5628_v31, %s5379_s28 }
  0x7b   : > { %664 = vrot.lane.b32.xlu1 %v5642_v33, %s5380_s29  ;;  %662 = vrot.lane.b32.xlu0 %v5621_v30, %s5380_s29 }
  0x7f   : > { %703 = vrot.lane.b32.xlu1 %v5649_v34, %s5379_s28  ;;  %701 = vrot.lane.b32.xlu0 %v5642_v33, %s5379_s28 }
  0x83   : > { %440 = vrot.lane.b32.xlu1 %v5656_v35, %s5380_s29  ;;  %438 = vrot.lane.b32.xlu0 %v5635_v32, %s5380_s29 }
  0x85   : > { %v452_v38 = vpop.permute.xlu1 %451  ;;  %v411_v39 = vpop.permute.xlu0 %410 }
  0x86   : > { %v490_v40 = vsel %vm487_vm1, %v5279_v36, %v411_v39 }
  0x87   : > { %481 = vrot.lane.b32.xlu1 %v5664_v37, %s5379_s28  ;;  %479 = vrot.lane.b32.xlu0 %v5656_v35, %s5379_s28  ;;  %v544_v42 = vsel %vm542_vm2, %v490_v40, %v452_v38 }
  0x88   : > { %5032 = vmatprep.mubr.msk.bf16.mxu1 %vm992_vm3, %v544_v42  ;;  %v806_v52 = vshll.u32 %v544_v42, 16  ;;  %v804_v36 = vshrl.u32 %v544_v42, 16 }
  0x89   : > { %v454_v43 = vpop.permute.xlu1 %453  ;;  %v413_v44 = vpop.permute.xlu0 %412 }
  0x8a   : > { %v493_v45 = vsel %vm487_vm1, %v5447_v3, %v413_v44  ;;  %v808_v61 = vrot.slane %v806_v52, 1  ;;  %v5287_v3 = vld [vmem:[%s5441_s27 + $0xe4] sm:$0xff]  }
  0x8b   : > { %668 = vrot.lane.b32.xlu1 %v5672_v41, %s5380_s29  ;;  %666 = vrot.lane.b32.xlu0 %v5649_v34, %s5380_s29  ;;  %v546_v47 = vsel %vm542_vm2, %v493_v45, %v454_v43 }
  0x8c   : > { %v816_v48 = vshll.u32 %v546_v47, 16  ;;  %5033 = vmatmul.mubr.msk.bf16.vlgmr.msra.gmra.mxu1 %vm992_vm3, %v546_v47  ;;  %v814_v57 = vshrl.u32 %v546_v47, 16  ;;  %v1489_v62 = vrot.slane %v546_v47, 1  ;;  %v809_v47 = vor.u32 %v808_v61, %v804_v36 }
  0x8d   : > { %v641_v49 = vpop.permute.xlu1 %640  ;;  %v639_v50 = vpop.permute.xlu0 %638 }
  0x8e   : > { %v818_v54 = vrot.slane %v816_v48, 1  ;;  %v718_v55 = vsel %vm487_vm1, %v5460_v6, %v641_v49  ;;  %v715_v58 = vsel %vm487_vm1, %v5283_v51, %v639_v50  ;;  %v1486_v6 = vrot.slane %v544_v42, 1  ;;  %v5288_v50 = vld [vmem:[%s5441_s27 + $0xe0] ss:$0 sps:$4 sm:$0x11]  }
  0x8f   : > { %707 = vrot.lane.b32.xlu1 %v5683_v46, %s5379_s28  ;;  %705 = vrot.lane.b32.xlu0 %v5672_v41, %s5379_s28  ;;  %v1603_v51 = vsel %vm1047_vm0, %v5586_v25, 0  ;;  %vm2992_vm0 = vcmask 130048  }
  0x90   : > { %v819_v43 = vor.u32 %v818_v54, %v814_v57 }
  0x91   : > { %v680_v56 = vpop.permute.xlu1 %679  ;;  %v678_v60 = vpop.permute.xlu0 %677 }
  0x92   : > { %v770_v59 = vsel %vm542_vm2, %v718_v55, %v680_v56  ;;  %v768_v1 = vsel %vm542_vm2, %v715_v58, %v678_v60  ;;  %v5289_v58 = vld [vmem:[%s5441_s27 + $0xec] ss:$0 sps:$4 sm:$0x11]  }
  0x93   : > { %v820_v63 = vshll.u32 %v770_v59, 16  ;;  %v1490_v0 = vrot.slane %v770_v59, 1  ;;  %444 = vrot.lane.b32.xlu1 %v5285_v53, %s5380_s29  ;;  %v810_v13 = vshll.u32 %v768_v1, 16  ;;  %v1487_v15 = vrot.slane %v768_v1, 1  ;;  %442 = vrot.lane.b32.xlu0 %v5664_v37, %s5380_s29 }
  0x95   : > { %v822_v38 = vrot.slane %v820_v63, 1  ;;  %v5705_v39 = vsel %vm1485_vm4, %v1489_v62, %v1490_v0  ;;  %v417_v40 = vpop.permute.xlu1 %416  ;;  %v812_v44 = vrot.slane %v810_v13, 1  ;;  %v415_v45 = vpop.permute.xlu0 %414  ;;  %v5708_v48 = vsel %vm1485_vm4, %v1486_v6, %v1487_v15 }
  0x96   : > { %v499_v52 = vsel %vm487_vm1, %v5452_v4, %v417_v40  ;;  %v496_v55 = vsel %vm487_vm1, %v5444_v2, %v415_v45 }
  0x97   : > { %485 = vrot.lane.b32.xlu1 %v5287_v3, %s5379_s28  ;;  %v823_v49 = vsel %vm803_vm5, %v819_v43, %v822_v38  ;;  %483 = vrot.lane.b32.xlu0 %v5285_v53, %s5379_s28  ;;  %v813_v42 = vsel %vm803_vm5, %v809_v47, %v812_v44 }
  0x98   : > { %4994 = vmatprep.mubr.msk.bf16.mxu0 %vm992_vm3, %v813_v42 }
  0x99   : > { %v458_v54 = vpop.permute.xlu1 %457  ;;  %v456_v57 = vpop.permute.xlu0 %455  ;;  %4995 = vmatmul.mubr.msk.bf16.vlgmr.msra.gmra.mxu0 %vm992_vm3, %v823_v49 }
  0x9a   : > { %v550_v56 = vsel %vm542_vm2, %v499_v52, %v458_v54  ;;  %v548_v53 = vsel %vm542_vm2, %v496_v55, %v456_v57  ;;  %5069 = vmatpush3.bf16.msra.mxu0 %v1603_v51 }
  0x9b   : > { %672 = vrot.lane.b32.xlu1 %v5288_v50, %s5380_s29  ;;  %670 = vrot.lane.b32.xlu0 %v5683_v46, %s5380_s29  ;;  %v836_v4 = vshll.u32 %v550_v56, 16  ;;  %v826_v25 = vshll.u32 %v548_v53, 16  ;;  %v834_v63 = vshrl.u32 %v550_v56, 16  ;;  %v1495_v13 = vrot.slane %v550_v56, 1 }
  0x9c   : > { %5036 = vmatprep.mubr.msk.bf16.mxu1 %vm992_vm3, %v548_v53  ;;  %v824_v40 = vshrl.u32 %v548_v53, 16  ;;  %v1492_v43 = vrot.slane %v548_v53, 1 }
  0x9d   : > { %5037 = vmatmul.mubr.msk.bf16.gmra.mxu1 %vm992_vm3, %v550_v56  ;;  %v645_v2 = vpop.permute.xlu1 %644  ;;  %v643_v59 = vpop.permute.xlu0 %642  ;;  %v838_v60 = vrot.slane %v836_v4, 1  ;;  %v828_v0 = vrot.slane %v826_v25, 1 }
  0x9e   : > { %v724_v61 = vsel %vm487_vm1, %v5467_v7, %v645_v2  ;;  %v721_v1 = vsel %vm487_vm1, %v5457_v5, %v643_v59 }
  0x9f   : > { %711 = vrot.lane.b32.xlu1 %v5289_v58, %s5379_s28  ;;  %709 = vrot.lane.b32.xlu0 %v5288_v50, %s5379_s28  ;;  %v839_v47 = vor.u32 %v838_v60, %v834_v63  ;;  %v829_v42 = vor.u32 %v828_v0, %v824_v40 }
  0xa1   : > { %v684_v62 = vpop.permute.xlu1 %683  ;;  %v682_v6 = vpop.permute.xlu0 %681 }
  0xa2   : > { %v774_v3 = vsel %vm542_vm2, %v724_v61, %v684_v62  ;;  %v772_v38 = vsel %vm542_vm2, %v721_v1, %v682_v6 }
  0xa3   : > { %v840_v15 = vshll.u32 %v774_v3, 16  ;;  %v1496_v36 = vrot.slane %v774_v3, 1  ;;  %v830_v44 = vshll.u32 %v772_v38, 16  ;;  %v1493_v45 = vrot.slane %v772_v38, 1 }
  0xa5   : > { %v842_v7 = vrot.slane %v840_v15, 1  ;;  %v421_v49 = vpop.permute.xlu1 %420  ;;  %v5740_v50 = vsel %vm1485_vm4, %v1495_v13, %v1496_v36  ;;  %v832_v5 = vrot.slane %v830_v44, 1  ;;  %v419_v51 = vpop.permute.xlu0 %418  ;;  %v5743_v52 = vsel %vm1485_vm4, %v1492_v43, %v1493_v45 }
  0xa6   : > { %v505_v56 = vsel %vm487_vm1, %v5483_v9, %v421_v49  ;;  %v502_v53 = vsel %vm487_vm1, %v5476_v8, %v419_v51 }
  0xa7   : > { %v843_v54 = vsel %vm803_vm5, %v839_v47, %v842_v7  ;;  %v833_v55 = vsel %vm803_vm5, %v829_v42, %v832_v5 }
  0xa8   : > { %4998 = vmatprep.mubr.msk.bf16.mxu0 %vm992_vm3, %v833_v55 }
  0xa9   : > { %v462_v57 = vpop.permute.xlu1 %461  ;;  %v460_v4 = vpop.permute.xlu0 %459  ;;  %4999 = vmatmul.mubr.msk.bf16.gmra.mxu0 %vm992_vm3, %v843_v54 }
  0xaa   : > { %v554_v58 = vsel %vm542_vm2, %v505_v56, %v462_v57  ;;  %v552_v2 = vsel %vm542_vm2, %v502_v53, %v460_v4 }
  0xab   : > { %5040 = vmatprep.mubr.msk.bf16.mxu1 %vm992_vm3, %v552_v2  ;;  %v856_v25 = vshll.u32 %v554_v58, 16  ;;  %v846_v9 = vshll.u32 %v552_v2, 16  ;;  %v854_v63 = vshrl.u32 %v554_v58, 16  ;;  %v1501_v13 = vrot.slane %v554_v58, 1 }
  0xac   : > { %5041 = vmatmul.mubr.msk.bf16.gmra.mxu1 %vm992_vm3, %v554_v58  ;;  %v844_v40 = vshrl.u32 %v552_v2, 16  ;;  %v1498_v43 = vrot.slane %v552_v2, 1 }
  0xad   : > { %v649_v59 = vpop.permute.xlu1 %648  ;;  %v647_v60 = vpop.permute.xlu0 %646  ;;  %v858_v61 = vrot.slane %v856_v25, 1  ;;  %v848_v0 = vrot.slane %v846_v9, 1 }
  0xae   : > { %v730_v62 = vsel %vm487_vm1, %v5495_v11, %v649_v59  ;;  %v727_v1 = vsel %vm487_vm1, %v5490_v10, %v647_v60 }
  0xaf   : > { %v859_v47 = vor.u32 %v858_v61, %v854_v63  ;;  %v849_v42 = vor.u32 %v848_v0, %v844_v40 }
  0xb1   : > { %v688_v8 = vpop.permute.xlu1 %687  ;;  %v686_v6 = vpop.permute.xlu0 %685 }
  0xb2   : > { %v778_v3 = vsel %vm542_vm2, %v730_v62, %v688_v8  ;;  %v776_v38 = vsel %vm542_vm2, %v727_v1, %v686_v6 }
  0xb3   : > { %v860_v15 = vshll.u32 %v778_v3, 16  ;;  %v1502_v36 = vrot.slane %v778_v3, 1  ;;  %v850_v44 = vshll.u32 %v776_v38, 16  ;;  %v1499_v45 = vrot.slane %v776_v38, 1 }
  0xb5   : > { %v862_v11 = vrot.slane %v860_v15, 1  ;;  %v425_v7 = vpop.permute.xlu1 %424  ;;  %v5764_v49 = vsel %vm1485_vm4, %v1501_v13, %v1502_v36  ;;  %v852_v10 = vrot.slane %v850_v44, 1  ;;  %v423_v5 = vpop.permute.xlu0 %422  ;;  %v5767_v51 = vsel %vm1485_vm4, %v1498_v43, %v1499_v45 }
  0xb6   : > { %v511_v56 = vsel %vm487_vm1, %v5514_v14, %v425_v7  ;;  %v508_v53 = vsel %vm487_vm1, %v5504_v12, %v423_v5 }
  0xb7   : > { %v863_v54 = vsel %vm803_vm5, %v859_v47, %v862_v11  ;;  %v853_v55 = vsel %vm803_vm5, %v849_v42, %v852_v10 }
  0xb8   : > { %5002 = vmatprep.mubr.msk.bf16.mxu0 %vm992_vm3, %v853_v55 }
  0xb9   : > { %v466_v57 = vpop.permute.xlu1 %465  ;;  %v464_v4 = vpop.permute.xlu0 %463  ;;  %5003 = vmatmul.mubr.msk.bf16.gmra.mxu0 %vm992_vm3, %v863_v54 }
  0xba   : > { %v558_v58 = vsel %vm542_vm2, %v511_v56, %v466_v57  ;;  %v556_v2 = vsel %vm542_vm2, %v508_v53, %v464_v4 }
  0xbb   : > { %5044 = vmatprep.mubr.msk.bf16.mxu1 %vm992_vm3, %v556_v2  ;;  %v876_v25 = vshll.u32 %v558_v58, 16  ;;  %v866_v14 = vshll.u32 %v556_v2, 16  ;;  %v874_v62 = vshrl.u32 %v558_v58, 16  ;;  %v1507_v3 = vrot.slane %v558_v58, 1 }
  0xbc   : > { %5045 = vmatmul.mubr.msk.bf16.gmra.mxu1 %vm992_vm3, %v558_v58  ;;  %v864_v36 = vshrl.u32 %v556_v2, 16  ;;  %v1504_v38 = vrot.slane %v556_v2, 1 }
  0xbd   : > { %v653_v59 = vpop.permute.xlu1 %652  ;;  %v651_v9 = vpop.permute.xlu0 %650  ;;  %v878_v60 = vrot.slane %v876_v25, 1  ;;  %v868_v8 = vrot.slane %v866_v14, 1 }
  0xbe   : > { %v736_v61 = vsel %vm487_vm1, %v5530_v17, %v653_v59  ;;  %v733_v63 = vsel %vm487_vm1, %v5523_v16, %v651_v9 }
  0xbf   : > { %v879_v44 = vor.u32 %v878_v60, %v874_v62  ;;  %v869_v11 = vor.u32 %v868_v8, %v864_v36 }
  0xc1   : > { %v692_v12 = vpop.permute.xlu1 %691  ;;  %v690_v1 = vpop.permute.xlu0 %689 }
  0xc2   : > { %v782_v0 = vsel %vm542_vm2, %v736_v61, %v692_v12  ;;  %v780_v15 = vsel %vm542_vm2, %v733_v63, %v690_v1 }
  0xc3   : > { %v880_v6 = vshll.u32 %v782_v0, 16  ;;  %v1508_v13 = vrot.slane %v782_v0, 1  ;;  %v870_v40 = vshll.u32 %v780_v15, 16  ;;  %v1505_v43 = vrot.slane %v780_v15, 1 }
  0xc5   : > { %v882_v17 = vrot.slane %v880_v6, 1  ;;  %v429_v45 = vpop.permute.xlu1 %428  ;;  %v5788_v47 = vsel %vm1485_vm4, %v1507_v3, %v1508_v13  ;;  %v872_v16 = vrot.slane %v870_v40, 1  ;;  %v427_v7 = vpop.permute.xlu0 %426  ;;  %v5791_v42 = vsel %vm1485_vm4, %v1504_v38, %v1505_v43 }
  0xc6   : > { %v517_v54 = vsel %vm487_vm1, %v5544_v19, %v429_v45  ;;  %v514_v56 = vsel %vm487_vm1, %v5537_v18, %v427_v7 }
  0xc7   : > { %v883_v10 = vsel %vm803_vm5, %v879_v44, %v882_v17  ;;  %v873_v5 = vsel %vm803_vm5, %v869_v11, %v872_v16 }
  0xc8   : > { %5006 = vmatprep.mubr.msk.bf16.mxu0 %vm992_vm3, %v873_v5 }
  0xc9   : > { %v470_v55 = vpop.permute.xlu1 %469  ;;  %v468_v53 = vpop.permute.xlu0 %467  ;;  %5007 = vmatmul.mubr.msk.bf16.gmra.mxu0 %vm992_vm3, %v883_v10 }
  0xca   : > { %v562_v57 = vsel %vm542_vm2, %v517_v54, %v470_v55  ;;  %v560_v58 = vsel %vm542_vm2, %v514_v56, %v468_v53 }
  0xcb   : > { %5048 = vmatprep.mubr.msk.bf16.mxu1 %vm992_vm3, %v560_v58  ;;  %v896_v4 = vshll.u32 %v562_v57, 16  ;;  %v886_v19 = vshll.u32 %v560_v58, 16  ;;  %v894_v9 = vshrl.u32 %v562_v57, 16  ;;  %v1513_v8 = vrot.slane %v562_v57, 1 }
  0xcc   : > { %5049 = vmatmul.mubr.msk.bf16.gmra.mxu1 %vm992_vm3, %v562_v57  ;;  %v884_v3 = vshrl.u32 %v560_v58, 16  ;;  %v1510_v6 = vrot.slane %v560_v58, 1 }
  0xcd   : > { %v657_v2 = vpop.permute.xlu1 %656  ;;  %v655_v25 = vpop.permute.xlu0 %654  ;;  %v898_v59 = vrot.slane %v896_v4, 1  ;;  %v888_v60 = vrot.slane %v886_v19, 1 }
  0xce   : > { %v742_v14 = vsel %vm487_vm1, %v5558_v21, %v657_v2  ;;  %v739_v61 = vsel %vm487_vm1, %v5551_v20, %v655_v25 }
  0xcf   : > { %v899_v36 = vor.u32 %v898_v59, %v894_v9  ;;  %v889_v43 = vor.u32 %v888_v60, %v884_v3 }
  0xd1   : > { %v696_v18 = vpop.permute.xlu1 %695  ;;  %v694_v62 = vpop.permute.xlu0 %693 }
  0xd2   : > { %v786_v12 = vsel %vm542_vm2, %v742_v14, %v696_v18  ;;  %v784_v1 = vsel %vm542_vm2, %v739_v61, %v694_v62 }
  0xd3   : > { %v900_v63 = vshll.u32 %v786_v12, 16  ;;  %v1514_v0 = vrot.slane %v786_v12, 1  ;;  %v890_v13 = vshll.u32 %v784_v1, 16  ;;  %v1511_v15 = vrot.slane %v784_v1, 1 }
  0xd5   : > { %v902_v21 = vrot.slane %v900_v63, 1  ;;  %v433_v38 = vpop.permute.xlu1 %432  ;;  %v5812_v40 = vsel %vm1485_vm4, %v1513_v8, %v1514_v0  ;;  %v892_v20 = vrot.slane %v890_v13, 1  ;;  %v431_v44 = vpop.permute.xlu0 %430  ;;  %v5815_v17 = vsel %vm1485_vm4, %v1510_v6, %v1511_v15 }
  0xd6   : > { %v523_v16 = vsel %vm487_vm1, %v5572_v23, %v433_v38  ;;  %v520_v10 = vsel %vm487_vm1, %v5565_v22, %v431_v44 }
  0xd7   : > { %v903_v45 = vsel %vm803_vm5, %v899_v36, %v902_v21  ;;  %v893_v11 = vsel %vm803_vm5, %v889_v43, %v892_v20 }
  0xd8   : > { %5010 = vmatprep.mubr.msk.bf16.mxu0 %vm992_vm3, %v893_v11 }
  0xd9   : > { %v474_v7 = vpop.permute.xlu1 %473  ;;  %v472_v54 = vpop.permute.xlu0 %471  ;;  %5011 = vmatmul.mubr.msk.bf16.gmra.mxu0 %vm992_vm3, %v903_v45 }
  0xda   : > { %v566_v5 = vsel %vm542_vm2, %v523_v16, %v474_v7  ;;  %v564_v55 = vsel %vm542_vm2, %v520_v10, %v472_v54 }
  0xdb   : > { %5052 = vmatprep.mubr.msk.bf16.mxu1 %vm992_vm3, %v564_v55  ;;  %v916_v56 = vshll.u32 %v566_v5, 16  ;;  %v906_v23 = vshll.u32 %v564_v55, 16  ;;  %v914_v2 = vshrl.u32 %v566_v5, 16  ;;  %v1519_v18 = vrot.slane %v566_v5, 1 }
  0xdc   : > { %5053 = vmatmul.mubr.msk.bf16.gmra.mxu1 %vm992_vm3, %v566_v5  ;;  %v904_v12 = vshrl.u32 %v564_v55, 16  ;;  %v1516_v62 = vrot.slane %v564_v55, 1 }
  0xdd   : > { %v661_v57 = vpop.permute.xlu1 %660  ;;  %v659_v53 = vpop.permute.xlu0 %658  ;;  %v918_v58 = vrot.slane %v916_v56, 1  ;;  %v908_v19 = vrot.slane %v906_v23, 1 }
  0xde   : > { %v748_v4 = vsel %vm487_vm1, %v5591_v26, %v661_v57  ;;  %v745_v25 = vsel %vm487_vm1, %v5579_v24, %v659_v53 }
  0xdf   : > { %v919_v0 = vor.u32 %v918_v58, %v914_v2  ;;  %v909_v6 = vor.u32 %v908_v19, %v904_v12 }
  0xe1   : > { %v700_v22 = vpop.permute.xlu1 %699  ;;  %v698_v14 = vpop.permute.xlu0 %697 }
  0xe2   : > { %v790_v59 = vsel %vm542_vm2, %v748_v4, %v700_v22  ;;  %v788_v61 = vsel %vm542_vm2, %v745_v25, %v698_v14 }
  0xe3   : > { %v920_v9 = vshll.u32 %v790_v59, 16  ;;  %v1520_v60 = vrot.slane %v790_v59, 1  ;;  %v910_v8 = vshll.u32 %v788_v61, 16  ;;  %v1517_v63 = vrot.slane %v788_v61, 1 }
  0xe5   : > { %v922_v26 = vrot.slane %v920_v9, 1  ;;  %v437_v1 = vpop.permute.xlu1 %436  ;;  %v5836_v3 = vsel %vm1485_vm4, %v1519_v18, %v1520_v60  ;;  %v912_v24 = vrot.slane %v910_v8, 1  ;;  %v435_v13 = vpop.permute.xlu0 %434  ;;  %v5839_v15 = vsel %vm1485_vm4, %v1516_v62, %v1517_v63 }
  0xe6   : > { %v529_v38 = vsel %vm487_vm1, %v5607_v28, %v437_v1  ;;  %v526_v20 = vsel %vm487_vm1, %v5600_v27, %v435_v13 }
  0xe7   : > { %v923_v36 = vsel %vm803_vm5, %v919_v0, %v922_v26  ;;  %v913_v21 = vsel %vm803_vm5, %v909_v6, %v912_v24 }
  0xe8   : > { %5014 = vmatprep.mubr.msk.bf16.mxu0 %vm992_vm3, %v913_v21 }
  0xe9   : > { %v478_v43 = vpop.permute.xlu1 %477  ;;  %v476_v45 = vpop.permute.xlu0 %475  ;;  %5015 = vmatmul.mubr.msk.bf16.gmra.mxu0 %vm992_vm3, %v923_v36 }
  0xea   : > { %v570_v44 = vsel %vm542_vm2, %v529_v38, %v478_v43  ;;  %v568_v11 = vsel %vm542_vm2, %v526_v20, %v476_v45 }
  0xeb   : > { %5056 = vmatprep.mubr.msk.bf16.mxu1 %vm992_vm3, %v568_v11  ;;  %v936_v16 = vshll.u32 %v570_v44, 16  ;;  %v926_v28 = vshll.u32 %v568_v11, 16  ;;  %v934_v55 = vshrl.u32 %v570_v44, 16  ;;  %v1525_v58 = vrot.slane %v570_v44, 1 }
  0xec   : > { %5057 = vmatmul.mubr.msk.bf16.gmra.mxu1 %vm992_vm3, %v570_v44  ;;  %v924_v19 = vshrl.u32 %v568_v11, 16  ;;  %v1522_v25 = vrot.slane %v568_v11, 1 }
  0xed   : > { %v665_v7 = vpop.permute.xlu1 %664  ;;  %v663_v10 = vpop.permute.xlu0 %662  ;;  %v938_v5 = vrot.slane %v936_v16, 1  ;;  %v928_v56 = vrot.slane %v926_v28, 1 }
  0xee   : > { %v754_v54 = vsel %vm487_vm1, %v5621_v30, %v665_v7  ;;  %v751_v57 = vsel %vm487_vm1, %v5614_v29, %v663_v10 }
  0xef   : > { %v939_v18 = vor.u32 %v938_v5, %v934_v55  ;;  %v929_v61 = vor.u32 %v928_v56, %v924_v19 }
  0xf1   : > { %v704_v27 = vpop.permute.xlu1 %703  ;;  %v702_v53 = vpop.permute.xlu0 %701 }
  0xf2   : > { %v794_v23 = vsel %vm542_vm2, %v754_v54, %v704_v27  ;;  %v792_v2 = vsel %vm542_vm2, %v751_v57, %v702_v53 }
  0xf3   : > { %v940_v4 = vshll.u32 %v794_v23, 16  ;;  %v1526_v22 = vrot.slane %v794_v23, 1  ;;  %v930_v59 = vshll.u32 %v792_v2, 16  ;;  %v1523_v14 = vrot.slane %v792_v2, 1 }
  0xf5   : > { %v942_v30 = vrot.slane %v940_v4, 1  ;;  %v441_v9 = vpop.permute.xlu1 %440  ;;  %v5860_v60 = vsel %vm1485_vm4, %v1525_v58, %v1526_v22  ;;  %v932_v29 = vrot.slane %v930_v59, 1  ;;  %v439_v12 = vpop.permute.xlu0 %438  ;;  %v5863_v62 = vsel %vm1485_vm4, %v1522_v25, %v1523_v14 }
  0xf6   : > { %v535_v0 = vsel %vm487_vm1, %v5635_v32, %v441_v9  ;;  %v532_v1 = vsel %vm487_vm1, %v5628_v31, %v439_v12 }
  0xf7   : > { %v943_v8 = vsel %vm803_vm5, %v939_v18, %v942_v30  ;;  %v933_v63 = vsel %vm803_vm5, %v929_v61, %v932_v29 }
  0xf8   : > { %5018 = vmatprep.mubr.msk.bf16.mxu0 %vm992_vm3, %v933_v63 }
  0xf9   : > { %v482_v26 = vpop.permute.xlu1 %481  ;;  %v480_v24 = vpop.permute.xlu0 %479  ;;  %5019 = vmatmul.mubr.msk.bf16.gmra.mxu0 %vm992_vm3, %v943_v8 }
  0xfa   : > { %v574_v6 = vsel %vm542_vm2, %v535_v0, %v482_v26  ;;  %v572_v13 = vsel %vm542_vm2, %v532_v1, %v480_v24 }
  0xfb   : > { %5060 = vmatprep.mubr.msk.bf16.mxu1 %vm992_vm3, %v572_v13  ;;  %v956_v36 = vshll.u32 %v574_v6, 16  ;;  %v946_v32 = vshll.u32 %v572_v13, 16  ;;  %v954_v44 = vshrl.u32 %v574_v6, 16  ;;  %v1531_v28 = vrot.slane %v574_v6, 1 }
  0xfc   : > { %5061 = vmatmul.mubr.msk.bf16.gmra.mxu1 %vm992_vm3, %v574_v6  ;;  %v944_v27 = vshrl.u32 %v572_v13, 16  ;;  %v1528_v55 = vrot.slane %v572_v13, 1 }
  0xfd   : > { %v669_v21 = vpop.permute.xlu1 %668  ;;  %v667_v38 = vpop.permute.xlu0 %666  ;;  %v958_v43 = vrot.slane %v956_v36, 1  ;;  %v948_v45 = vrot.slane %v946_v32, 1 }
  0xfe   : > { %v760_v20 = vsel %vm487_vm1, %v5649_v34, %v669_v21  ;;  %v757_v11 = vsel %vm487_vm1, %v5642_v33, %v667_v38 }
  0xff   : > { %v959_v23 = vor.u32 %v958_v43, %v954_v44  ;;  %v949_v4 = vor.u32 %v948_v45, %v944_v27 }
 0x101   : > { %v708_v31 = vpop.permute.xlu1 %707  ;;  %v706_v7 = vpop.permute.xlu0 %705 }
 0x102   : > { %v798_v16 = vsel %vm542_vm2, %v760_v20, %v708_v31  ;;  %v796_v54 = vsel %vm542_vm2, %v757_v11, %v706_v7 }
 0x103   : > { %v960_v10 = vshll.u32 %v798_v16, 16  ;;  %v1532_v5 = vrot.slane %v798_v16, 1  ;;  %v950_v56 = vshll.u32 %v796_v54, 16  ;;  %v1529_v57 = vrot.slane %v796_v54, 1  ;;  %v2051_v54 = vld [vmem:[#allocation2 + $0x18] sm:$0x1] }
 0x104   : > { %v2052_v27 = vsel %vm5942_vm8, 0, %v2051_v54 }
 0x105   : > { %v962_v34 = vrot.slane %v960_v10, 1  ;;  %v445_v53 = vpop.permute.xlu1 %444  ;;  %v1533_v58 = vsel %vm1485_vm4, %v1531_v28, %v1532_v5  ;;  %v952_v22 = vrot.slane %v950_v56, 1  ;;  %v443_v33 = vpop.permute.xlu0 %442  ;;  %v1530_v2 = vsel %vm1485_vm4, %v1528_v55, %v1529_v57  ;;  %2053 = vst [vmem:[#allocation2 + $0x18] sm:$0x1] %v2052_v27  ;;  %v2110_v56 = vld [vmem:[#allocation2 + $0x2c] sm:$0x1] }
 0x106   : > { %v541_v59 = vsel %vm487_vm1, %v5664_v37, %v445_v53  ;;  %v538_v18 = vsel %vm487_vm1, %v5656_v35, %v443_v33  ;;  %v2111_v57 = vsel %vm5951_vm10, 0, %v2110_v56 }
 0x107   : > { %v963_v19 = vsel %vm803_vm5, %v959_v23, %v962_v34  ;;  %v953_v25 = vsel %vm803_vm5, %v949_v4, %v952_v22  ;;  %2112 = vst [vmem:[#allocation2 + $0x2c] sm:$0x1] %v2111_v57  ;;  %v2107_v34 = vld [vmem:[#allocation2 + $0x20] sm:$0x1]  ;;  %v2060_v4 = vld [vmem:[#allocation2 + $0x3c] sm:$0x1] }
 0x108   : > { %5022 = vmatprep.mubr.msk.bf16.mxu0 %vm992_vm3, %v953_v25  ;;  %v2108_v53 = vsel %vm5951_vm10, 0, %v2107_v34  ;;  %v2061_v22 = vsel %vm5942_vm8, 0, %v2060_v4  ;;  %v2116_v25 = vld [vmem:[#allocation2 + $0x44] sm:$0x1]  ;;  %v2131_v57 = vld [vmem:[#allocation2 + $0x80] sm:$0x1] }
 0x109   : > { %v486_v14 = vpop.permute.xlu1 %485  ;;  %v484_v9 = vpop.permute.xlu0 %483  ;;  %5023 = vmatmul.mubr.msk.bf16.gmra.mxu0 %vm992_vm3, %v963_v19  ;;  %2109 = vst [vmem:[#allocation2 + $0x20] sm:$0x1] %v2108_v53  ;;  %2062 = vst [vmem:[#allocation2 + $0x3c] sm:$0x1] %v2061_v22  ;;  %v2132_v53 = vsel %vm5951_vm10, 0, %v2131_v57 }
 0x10a   : > { %v578_v30 = vsel %vm542_vm2, %v541_v59, %v486_v14  ;;  %v576_v61 = vsel %vm542_vm2, %v538_v18, %v484_v9  ;;  %v2117_v59 = vsel %vm5951_vm10, 0, %v2116_v25  ;;  %v2113_v18 = vld [vmem:[#allocation2 + $0x38] sm:$0x1]  ;;  %2133 = vst [vmem:[#allocation2 + $0x80] sm:$0x1] %v2132_v53 }
 0x10b   : > { %5064 = vmatprep.mubr.msk.bf16.mxu1 %vm992_vm3, %v576_v61  ;;  %v976_v29 = vshll.u32 %v578_v30, 16  ;;  %v966_v37 = vshll.u32 %v576_v61, 16  ;;  %v974_v26 = vshrl.u32 %v578_v30, 16  ;;  %v1537_v36 = vrot.slane %v578_v30, 1  ;;  %2118 = vst [vmem:[#allocation2 + $0x44] sm:$0x1] %v2117_v59 }
 0x10c   : > { %5065 = vmatmul.mubr.msk.bf16.gmra.mxu1 %vm992_vm3, %v578_v30  ;;  %v964_v43 = vshrl.u32 %v576_v61, 16  ;;  %v1534_v20 = vrot.slane %v576_v61, 1  ;;  %v2114_v30 = vsel %vm5951_vm10, 0, %v2113_v18  ;;  %v2066_v61 = vld [vmem:[#allocation2 + $0x54] sm:$0x1] }
 0x10d   : > { %v673_v12 = vpop.permute.xlu1 %672  ;;  %v671_v8 = vpop.permute.xlu0 %670  ;;  %v978_v63 = vrot.slane %v976_v29, 1  ;;  %v968_v1 = vrot.slane %v966_v37, 1  ;;  %2115 = vst [vmem:[#allocation2 + $0x38] sm:$0x1] %v2114_v30  ;;  %v2084_v4 = vld [vmem:[#allocation2 + $0x9c] sm:$0x1] }
 0x10e   : > { %v766_v0 = vsel %vm487_vm1, %v5683_v46, %v673_v12  ;;  %v763_v6 = vsel %vm487_vm1, %v5672_v41, %v671_v8  ;;  %v2067_v12 = vsel %vm5942_vm8, 0, %v2066_v61  ;;  %v2085_v22 = vsel %vm5942_vm8, 0, %v2084_v4  ;;  %v2140_v30 = vld [vmem:[#allocation2 + $0xa4] sm:$0x1]  ;;  %v2096_v4 = vld [vmem:[#allocation2 + $0xcc] sm:$0x1] }
 0x10f   : > { %v979_v45 = vor.u32 %v978_v63, %v974_v26  ;;  %v969_v16 = vor.u32 %v968_v1, %v964_v43  ;;  %2068 = vst [vmem:[#allocation2 + $0x54] sm:$0x1] %v2067_v12  ;;  %v2063_v63 = vld [vmem:[#allocation2 + $0x48] sm:$0x1]  ;;  %v2122_v26 = vld [vmem:[#allocation2 + $0x5c] sm:$0x1] }
 0x110   : > { %v2072_v43 = vld [vmem:[#allocation2 + $0x6c] sm:$0x1]  ;;  %2086 = vst [vmem:[#allocation2 + $0x9c] sm:$0x1] %v2085_v22  ;;  %v2141_v12 = vsel %vm5951_vm10, 0, %v2140_v30  ;;  %v2097_v22 = vsel %vm5942_vm8, 0, %v2096_v4 }
 0x111   : > { %v712_v35 = vpop.permute.xlu1 %711  ;;  %v710_v13 = vpop.permute.xlu0 %709  ;;  %2142 = vst [vmem:[#allocation2 + $0xa4] sm:$0x1] %v2141_v12  ;;  %2098 = vst [vmem:[#allocation2 + $0xcc] sm:$0x1] %v2097_v22  ;;  %v2093_v12 = vld [vmem:[#allocation2 + $0xc0] sm:$0x1] }
 0x112   : > { %v802_v24 = vsel %vm542_vm2, %v766_v0, %v712_v35  ;;  %v800_v38 = vsel %vm542_vm2, %v763_v6, %v710_v13  ;;  %v2064_v0 = vsel %vm5942_vm8, 0, %v2063_v63  ;;  %v2123_v6 = vsel %vm5951_vm10, 0, %v2122_v26  ;;  %v2137_v26 = vld [vmem:[#allocation2 + $0x98] sm:$0x1] }
 0x113   : > { %v980_v21 = vshll.u32 %v802_v24, 16  ;;  %v1538_v32 = vrot.slane %v802_v24, 1  ;;  %v970_v31 = vshll.u32 %v800_v38, 16  ;;  %v1535_v44 = vrot.slane %v800_v38, 1  ;;  %2065 = vst [vmem:[#allocation2 + $0x48] sm:$0x1] %v2064_v0 }
 0x114   : > { %2124 = vst [vmem:[#allocation2 + $0x5c] sm:$0x1] %v2123_v6  ;;  %v2138_v6 = vsel %vm5951_vm10, 0, %v2137_v26  ;;  %v2152_v26 = vld [vmem:[#allocation2 + $0xd4] sm:$0x1]  ;;  %vm3417_vm1 = vcmask 195584  }
 0x115   : > { %v982_v46 = vrot.slane %v980_v21, 1  ;;  %v1539_v11 = vsel %vm1485_vm4, %v1537_v36, %v1538_v32  ;;  %v972_v7 = vrot.slane %v970_v31, 1  ;;  %v1536_v41 = vsel %vm1485_vm4, %v1534_v20, %v1535_v44  ;;  %v2119_v21 = vld [vmem:[#allocation2 + $0x50] sm:$0x1]  ;;  %v2069_v44 = vld [vmem:[#allocation2 + $0x60] sm:$0x1] }
 0x116   : > { %v2120_v38 = vsel %vm5951_vm10, 0, %v2119_v21  ;;  %v2073_v20 = vsel %vm5942_vm8, 0, %v2072_v43  ;;  %2139 = vst [vmem:[#allocation2 + $0x98] sm:$0x1] %v2138_v6 }
 0x117   : > { %v983_v28 = vsel %vm803_vm5, %v979_v45, %v982_v46  ;;  %v973_v10 = vsel %vm803_vm5, %v969_v16, %v972_v7  ;;  %2121 = vst [vmem:[#allocation2 + $0x50] sm:$0x1] %v2120_v38  ;;  %2074 = vst [vmem:[#allocation2 + $0x6c] sm:$0x1] %v2073_v20  ;;  %v2070_v46 = vsel %vm5942_vm8, 0, %v2069_v44 }
 0x118   : > { %5026 = vmatprep.mubr.msk.bf16.mxu0 %vm992_vm3, %v973_v10  ;;  %2071 = vst [vmem:[#allocation2 + $0x60] sm:$0x1] %v2070_v46  ;;  %v2090_v44 = vld [vmem:[#allocation2 + $0xb4] sm:$0x1] }
 0x119   : > { %5027 = vmatmul.mubr.msk.bf16.gmra.mxu0 %vm992_vm3, %v983_v28 }
 0x11a   : > { %5070 = vmatprep.mubr.msk.bf16.mxu0 %vm992_vm3, %v5708_v48  ;;  %v2048_v48 = vld [vmem:[#allocation2 + $0xc] sm:$0x1] }
 0x121   : > { %5071 = vmatmul.mubr.msk.bf16.vlgmr.msra.gmra.mxu0 %vm992_vm3, %v5705_v39  ;;  %v7450_v39 = vmov 0 }
 0x122   : > { %5074 = vmatprep.mubr.msk.bf16.mxu0 %vm992_vm3, %v5743_v52  ;;  %v7451_v39 = vsel %vm5942_vm8, 4294967295, %v7450_v39 }
 0x123   : > { %7452 = vst [vmem:[#allocation3_spill] sm:$0xff] %v7451_v39 }
 0x129   : > { %5075 = vmatmul.mubr.msk.bf16.gmra.mxu0 %vm992_vm3, %v5740_v50  ;;  %v2049_v50 = vsel %vm5942_vm8, 0, %v2048_v48 }
 0x12a   : > { %5078 = vmatprep.mubr.msk.bf16.mxu0 %vm992_vm3, %v5767_v51  ;;  %2050 = vst [vmem:[#allocation2 + $0xc] sm:$0x1] %v2049_v50  ;;  %v2078_v50 = vld [vmem:[#allocation2 + $0x84] sm:$0x1] }
 0x131   : > { %5079 = vmatmul.mubr.msk.bf16.gmra.mxu0 %vm992_vm3, %v5764_v49  ;;  %v2045_v49 = vld [vmem:[#allocation2] sm:$0x1] }
 0x132   : > { %5082 = vmatprep.mubr.msk.bf16.mxu0 %vm992_vm3, %v5791_v42  ;;  %v2046_v42 = vsel %vm5942_vm8, 0, %v2045_v49 }
 0x133   : > { %2047 = vst [vmem:[#allocation2] sm:$0x1] %v2046_v42 }
 0x139   : > { %5083 = vmatmul.mubr.msk.bf16.gmra.mxu0 %vm992_vm3, %v5788_v47  ;;  %v2104_v47 = vld [vmem:[#allocation2 + $0x14] sm:$0x1] }
 0x13a   : > { %5086 = vmatprep.mubr.msk.bf16.mxu0 %vm992_vm3, %v5815_v17 }
 0x141   : > { %5087 = vmatmul.mubr.msk.bf16.gmra.mxu0 %vm992_vm3, %v5812_v40  ;;  %v2105_v40 = vsel %vm5951_vm10, 0, %v2104_v47  ;;  %v2079_v47 = vsel %vm5942_vm8, 0, %v2078_v50  ;;  %v2146_v50 = vld [vmem:[#allocation2 + $0xbc] sm:$0x1] }
 0x142   : > { %5090 = vmatprep.mubr.msk.bf16.mxu0 %vm992_vm3, %v5839_v15  ;;  %2106 = vst [vmem:[#allocation2 + $0x14] sm:$0x1] %v2105_v40  ;;  %2080 = vst [vmem:[#allocation2 + $0x84] sm:$0x1] %v2079_v47  ;;  %v2075_v40 = vld [vmem:[#allocation2 + $0x78] sm:$0x1] }
 0x143   : > { %v2143_v47 = vld [vmem:[#allocation2 + $0xb0] sm:$0x1] }
 0x149   : > { %5091 = vmatmul.mubr.msk.bf16.gmra.mxu0 %vm992_vm3, %v5836_v3  ;;  %v2101_v3 = vld [vmem:[#allocation2 + $0x8] sm:$0x1] }
 0x14a   : > { %5094 = vmatprep.mubr.msk.bf16.mxu0 %vm992_vm3, %v5863_v62  ;;  %v2102_v15 = vsel %vm5951_vm10, 0, %v2101_v3 }
 0x14b   : > { %2103 = vst [vmem:[#allocation2 + $0x8] sm:$0x1] %v2102_v15  ;;  %v2076_v15 = vsel %vm5942_vm8, 0, %v2075_v40 }
 0x14c   : > { %v5993_v29 = vpop.f32.mrf.mxu1  ;;  %2077 = vst [vmem:[#allocation2 + $0x78] sm:$0x1] %v2076_v15  ;;  %v2147_v15 = vsel %vm5951_vm10, 0, %v2146_v50 }
 0x14d   : > { %2148 = vst [vmem:[#allocation2 + $0xbc] sm:$0x1] %v2147_v15 }
 0x14e   : > { %v5999_v8 = vpop.f32.mrf.mxu1 }
 0x150   : > { %v6005_v1 = vpop.f32.mrf.mxu1 }
 0x151   : > { %5095 = vmatmul.mubr.msk.bf16.gmra.mxu0 %vm992_vm3, %v5860_v60  ;;  %v2054_v60 = vld [vmem:[#allocation2 + $0x24] sm:$0x1] }
 0x152   : > { %5098 = vmatprep.mubr.msk.bf16.mxu0 %vm992_vm3, %v1530_v2  ;;  %v2055_v5 = vsel %vm5942_vm8, 0, %v2054_v60  ;;  %v2057_v2 = vld [vmem:[#allocation2 + $0x30] sm:$0x1]  ;;  %v6011_v13 = vpop.f32.mrf.mxu1  ;;  %v2134_v60 = vld [vmem:[#allocation2 + $0x8c] sm:$0x1] }
 0x153   : > { %2056 = vst [vmem:[#allocation2 + $0x24] sm:$0x1] %v2055_v5  ;;  %v2058_v19 = vsel %vm5942_vm8, 0, %v2057_v2  ;;  %v2135_v5 = vsel %vm5951_vm10, 0, %v2134_v60  ;;  %v2144_v60 = vsel %vm5951_vm10, 0, %v2143_v47 }
 0x154   : > { %2059 = vst [vmem:[#allocation2 + $0x30] sm:$0x1] %v2058_v19  ;;  %2136 = vst [vmem:[#allocation2 + $0x8c] sm:$0x1] %v2135_v5  ;;  %v2081_v19 = vld [vmem:[#allocation2 + $0x90] sm:$0x1] }
 0x155   : > { %v2082_v59 = vsel %vm5942_vm8, 0, %v2081_v19  ;;  %2145 = vst [vmem:[#allocation2 + $0xb0] sm:$0x1] %v2144_v60 }
 0x156   : > { %2083 = vst [vmem:[#allocation2 + $0x90] sm:$0x1] %v2082_v59 }
 0x159   : > { %5099 = vmatmul.mubr.msk.bf16.gmra.mxu0 %vm992_vm3, %v1533_v58  ;;  %v5948_v52 = vpop.f32.mrf.mxu0 }
 0x15a   : > { %5102 = vmatprep.mubr.msk.bf16.mxu0 %vm992_vm3, %v1536_v41  ;;  %v2125_v41 = vld [vmem:[#allocation2 + $0x68] sm:$0x1]  ;;  %v1315_v51 = vadd.f32 %v5993_v29, %v5948_v52 }
 0x15b   : > { %v5959_v17 = vpop.f32.mrf.mxu0  ;;  %v2126_v10 = vsel %vm5951_vm10, 0, %v2125_v41 }
 0x15c   : > { %2127 = vst [vmem:[#allocation2 + $0x68] sm:$0x1] %v2126_v10 }
 0x15d   : > { %v5963_v62 = vpop.f32.mrf.mxu0  ;;  %v6015_v32 = vpop.f32.mrf.mxu1 }
 0x15f   : > { %v5969_v55 = vpop.f32.mrf.mxu0  ;;  %v6023_v45 = vpop.f32.mrf.mxu1 }
 0x161   : > { %5103 = vmatmul.mubr.msk.bf16.gmra.mxu0 %vm992_vm3, %v1539_v11  ;;  %v2128_v11 = vld [vmem:[#allocation2 + $0x74] sm:$0x1]  ;;  %v6031_v28 = vpop.f32.mrf.mxu1 }
 0x162   : > { %v2129_v16 = vsel %vm5951_vm10, 0, %v2128_v11  ;;  %v2091_v11 = vsel %vm5942_vm8, 0, %v2090_v44  ;;  %v2094_v44 = vsel %vm5942_vm8, 0, %v2093_v12 }
 0x163   : > { %2130 = vst [vmem:[#allocation2 + $0x74] sm:$0x1] %v2129_v16  ;;  %v6037_v49 = vpop.f32.mrf.mxu1  ;;  %v2087_v16 = vld [vmem:[#allocation2 + $0xa8] sm:$0x1]  ;;  %2092 = vst [vmem:[#allocation2 + $0xb4] sm:$0x1] %v2091_v11 }
 0x164   : > { %v2088_v10 = vsel %vm5942_vm8, 0, %v2087_v16  ;;  %v2153_v11 = vsel %vm5951_vm10, 0, %v2152_v26  ;;  %2095 = vst [vmem:[#allocation2 + $0xc0] sm:$0x1] %v2094_v44  ;;  %v2149_v16 = vld [vmem:[#allocation2 + $0xc8] sm:$0x1] }
 0x165   : > { %2089 = vst [vmem:[#allocation2 + $0xa8] sm:$0x1] %v2088_v10  ;;  %2154 = vst [vmem:[#allocation2 + $0xd4] sm:$0x1] %v2153_v11  ;;  %v2150_v50 = vsel %vm5951_vm10, 0, %v2149_v16  ;;  %v1307_v16 = vadd.f32 %v5999_v8, %v5959_v17 }
 0x166   : > { %2151 = vst [vmem:[#allocation2 + $0xc8] sm:$0x1] %v2150_v50  ;;  %v1318_v50 = vadd.f32 %v6005_v1, %v5963_v62 }
 0x169   : > { %v5973_v23 = vpop.f32.mrf.mxu0 }
 0x16b   : > { %v5977_v58 = vpop.f32.mrf.mxu0 }
 0x16c   : > { %v6043_v3 = vpop.f32.mrf.mxu1  ;;  %v1323_v52 = vadd.f32 %v6023_v45, %v5977_v58 }
 0x16d   : > { %v5981_v33 = vpop.f32.mrf.mxu0 }
 0x16e   : > { %v6051_v27 = vpop.f32.mrf.mxu1  ;;  %v6148_v17 = vadd.f32 %v6031_v28, %v5981_v33 }
 0x16f   : > { %v5987_v14 = vpop.f32.mrf.mxu0 }
 0x170   : > { %v6055_v34 = vpop.f32.mrf.mxu1 }
 0x172   : > { %v6063_v25 = vpop.f32.mrf.mxu1 }
 0x179   : > { %v5991_v9 = vpop.f32.mrf.mxu0 }
 0x17b   : > { %v5997_v37 = vpop.f32.mrf.mxu0 }
 0x17c   : > { %v6069_v61 = vpop.f32.mrf.mxu1  ;;  %v6160_v8 = vadd.f32 %v6051_v27, %v5997_v37 }
 0x17d   : > { %v6003_v35 = vpop.f32.mrf.mxu0 }
 0x17e   : > { %v6075_v0 = vpop.f32.mrf.mxu1  ;;  %v6164_v58 = vadd.f32 %v6055_v34, %v6003_v35 }
 0x17f   : > { %v6009_v24 = vpop.f32.mrf.mxu0 }
 0x180   : > { %v6081_v38 = vpop.f32.mrf.mxu1  ;;  %v6168_v1 = vadd.f32 %v6063_v25, %v6009_v24 }
 0x182   : > { %v6085_v20 = vpop.f32.mrf.mxu1 }
 0x189   : > { %v6013_v36 = vpop.f32.mrf.mxu0 }
 0x18b   : > { %v6021_v31 = vpop.f32.mrf.mxu0 }
 0x18c   : > { %v6091_v41 = vpop.f32.mrf.mxu1  ;;  %v6177_v37 = vadd.f32 %v6075_v0, %v6021_v31 }
 0x18d   : > { %v6029_v7 = vpop.f32.mrf.mxu0 }
 0x18e   : > { %v1370_v5 = vpop.f32.mrf.mxu1  ;;  %v6181_v35 = vadd.f32 %v6081_v38, %v6029_v7 }
 0x18f   : > { %v6035_v48 = vpop.f32.mrf.mxu0 }
 0x190   : > { %v5051_v53 = vpop.f32.mrf.mxu1 }
 0x192   : > { %v1373_v59 = vpop.f32.mrf.mxu1 }
 0x199   : > { %v6041_v42 = vpop.f32.mrf.mxu0 }
 0x19a   : > { %v6189_v24 = vadd.f32 %v6091_v41, %v6041_v42 }
 0x19b   : > { %v6049_v54 = vpop.f32.mrf.mxu0 }
 0x19c   : > { %v5054_v6 = vpop.f32.mrf.mxu1  ;;  %v6192_v45 = vadd.f32 %v1370_v5, %v6049_v54 }
 0x19d   : > { %v6053_v56 = vpop.f32.mrf.mxu0 }
 0x19e   : > { %v1386_v47 = vpop.f32.mrf.mxu1  ;;  %v6196_v7 = vadd.f32 %v5051_v53, %v6053_v56 }
 0x19f   : > { %v6061_v2 = vpop.f32.mrf.mxu0 }
 0x1a0   : > { %v5055_v60 = vpop.f32.mrf.mxu1  ;;  %v6199_v27 = vadd.f32 %v1373_v59, %v6061_v2 }
 0x1a2   : > { %v1389_v22 = vpop.f32.mrf.mxu1 }
 0x1a9   : > { %v6067_v18 = vpop.f32.mrf.mxu0 }
 0x1ab   : > { %v6073_v63 = vpop.f32.mrf.mxu0 }
 0x1ac   : > { %v5058_v39 = vpop.f32.mrf.mxu1  ;;  %v6205_v42 = vadd.f32 %v1386_v47, %v6073_v63 }
 0x1ad   : > { %v6079_v21 = vpop.f32.mrf.mxu0 }
 0x1ae   : > { %v1402_v11 = vpop.f32.mrf.mxu1  ;;  %v6209_v56 = vadd.f32 %v5055_v60, %v6079_v21 }
 0x1af   : > { %v6083_v43 = vpop.f32.mrf.mxu0 }
 0x1b0   : > { %v5059_v62 = vpop.f32.mrf.mxu1  ;;  %v6212_v2 = vadd.f32 %v1389_v22, %v6083_v43 }
 0x1b2   : > { %v1405_v28 = vpop.f32.mrf.mxu1 }
 0x1b9   : > { %v6087_v46 = vpop.f32.mrf.mxu0 }
 0x1bb   : > { %v6095_v40 = vpop.f32.mrf.mxu0 }
 0x1bc   : > { %v5062_v34 = vpop.f32.mrf.mxu1  ;;  %v6218_v63 = vadd.f32 %v1402_v11, %v6095_v40 }
 0x1bd   : > { %v6101_v57 = vpop.f32.mrf.mxu0 }
 0x1be   : > { %v6221_v41 = vadd.f32 %v5059_v62, %v6101_v57 }
 0x1bf   : > { %v6105_v19 = vpop.f32.mrf.mxu0 }
 0x1c9   : > { %v6107_v30 = vpop.f32.mrf.mxu0 }
 0x1cb   : > { %v6113_v10 = vpop.f32.mrf.mxu0 }
 0x1cc   : > { %7455 = vst [vmem:[#allocation4_spill] sm:$0xff] %v6113_v10 }
 0x1cd   : > { %v6117_v15 = vpop.f32.mrf.mxu0 }
 0x1cf   : > { %v6119_v4 = vpop.f32.mrf.mxu0 }
 0x1d0   : > { %7456 = vst [vmem:[#allocation5_spill] sm:$0xff] %v6119_v4 }
 0x1d3   : > { %v7460_v57 = vld [vmem:[#allocation4_spill] sm:$0xff] }
 0x1d9   : > { %v6121_v12 = vpop.f32.mrf.mxu0 }
 0x1da   : > { %7457 = vst [vmem:[#allocation6_spill] sm:$0xff] %v6121_v12  ;;  %v1310_v12 = vadd.f32 %v6011_v13, %v5969_v55  ;;  %v6152_v55 = vadd.f32 %v6037_v49, %v5987_v14  ;;  %v6172_v14 = vadd.f32 %v6069_v61, %v6013_v36 }
 0x1db   : > { %v6123_v26 = vpop.f32.mrf.mxu0 }
 0x1dc   : > { %7458 = vst [vmem:[#allocation7_spill] sm:$0xff] %v6123_v26  ;;  %v1331_v26 = vadd.f32 %v6015_v32, %v5973_v23  ;;  %v6156_v23 = vadd.f32 %v6043_v3, %v5991_v9  ;;  %v6185_v32 = vadd.f32 %v6085_v20, %v6035_v48  ;;  %v6202_v48 = vadd.f32 %v5054_v6, %v6067_v18 }
 0x1dd   : > { %v6125_v44 = vpop.f32.mrf.mxu0  ;;  %v6215_v18 = vadd.f32 %v5058_v39, %v6087_v46  ;;  %v6224_v6 = vadd.f32 %v1405_v28, %v6105_v19  ;;  %v1418_v39 = vpop.f32.mrf.mxu1 }
 0x1de   : > { %v6231_v11 = vadd.f32 %v1418_v39, %v7460_v57 }
 0x1df   : > { %v6127_v10 = vpop.f32.mrf.mxu0 }
 0x1e0   : > { %7459 = vst [vmem:[#allocation8_spill] sm:$0xff] %v6127_v10  ;;  %v6142_v10 = vld [vmem:[%s7440_s2] ss:$0 sm:$0xff] }
 0x1e1   : > { %v5072_v4 = vpop.f32.mrf.mxu0 }
 0x1e2   : > { %v1784_v29 = vadd.f32 %v5072_v4, %v1315_v51  ;;  %v2635_v51 = vld [vmem:[#allocation2 + $0xc] sm:$0xf] }
 0x1e3   : > { %v1639_v33 = vpop.f32.mrf.mxu0 }
 0x1e4   : > { %v1827_v9 = vadd.f32 %v6142_v10, %v1784_v29  ;;  %v1782_v13 = vadd.f32 %v1639_v33, %v1307_v16 }
 0x1e5   : > { %v5073_v36 = vpop.f32.mrf.mxu0 }
 0x1e6   : > { %v1863_v49 = vmax.f32 %v1827_v9, 0.0  ;;  %v1825_v31 = vadd.f32 %v6142_v10, %v1782_v13  ;;  %v1785_v3 = vadd.f32 %v5073_v36, %v1318_v50 }
 0x1e7   : > { %v1642_v54 = vpop.f32.mrf.mxu0 }
 0x1e8   : > { %v4847_v25 = vpack.c.bf16 %v1863_v49, %v1863_v49  ;;  %v1861_v61 = vmax.f32 %v1825_v31, 0.0  ;;  %v1828_v0 = vadd.f32 %v6142_v10, %v1785_v3  ;;  %v1783_v38 = vadd.f32 %v1642_v54, %v1310_v12 }
 0x1e9   : > { %v5076_v20 = vpop.f32.mrf.mxu0  ;;  %v6228_v12 = vadd.f32 %v5062_v34, %v6107_v30  ;;  %v2627_v34 = vld [vmem:[#allocation2] sm:$0xf] }
 0x1ea   : > { %v2283_v5 = vshrl.u32 %v4847_v25, 16  ;;  %v2006_v53 = vmul.f32 0.0, %v1861_v61  ;;  %v1864_v59 = vmax.f32 %v1828_v0, 0.0  ;;  %v2286_v21 = vshll.u32 %v4847_v25, 16 }
 0x1eb   : > { %v1826_v43 = vadd.f32 %v6142_v10, %v1783_v38  ;;  %v1788_v47 = vadd.f32 %v5076_v20, %v1331_v26  ;;  %v1655_v60 = vpop.f32.mrf.mxu0 }
 0x1ec   : > { %v2285_v46 = vrot.slane %v2283_v5, 7  ;;  %v4845_v4 = vpack.c.bf16 %v2006_v53, %v2006_v53  ;;  %v4848_v40 = vpack.c.bf16 %v1864_v59, %v1864_v59  ;;  %v1786_v22 = vadd.f32 %v1655_v60, %v1323_v52 }
 0x1ed   : > { %v1862_v26 = vmax.f32 %v1826_v43, 0.0  ;;  %v1831_v16 = vadd.f32 %v6142_v10, %v1788_v47  ;;  %v5077_v50 = vpop.f32.mrf.mxu0 }
 0x1ee   : > { %v2288_v62 = vor.u32 %v2286_v21, %v2285_v46  ;;  %v2289_v29 = vrot.slane %v2285_v46, 4  ;;  %v2266_v52 = vshrl.u32 %v4845_v4, 16  ;;  %v2269_v33 = vshll.u32 %v4845_v4, 16  ;;  %v2639_v21 = vld [vmem:[#allocation2 + $0x14] sm:$0x1] }
 0x1ef   : > { %v2291_v30 = vshrl.u32 %v4848_v40, 16  ;;  %v2294_v9 = vshll.u32 %v4848_v40, 16  ;;  %v2007_v13 = vmul.f32 0.0, %v1862_v26  ;;  %v1867_v36 = vmax.f32 %v1831_v16, 0.0  ;;  %v1658_v28 = vpop.f32.mrf.mxu0 }
 0x1f0   : > { %v2636_v49 = vsel %vm6235_vm13, %v2288_v62, %v2635_v51  ;;  %v2268_v31 = vrot.slane %v2266_v52, 7  ;;  %v1829_v3 = vadd.f32 %v6142_v10, %v1786_v22  ;;  %v1789_v54 = vadd.f32 %v5077_v50, %v6148_v17 }
 0x1f1   : > { %2637 = vst [vmem:[#allocation2 + $0xc] sm:$0xf] %v2636_v49  ;;  %v2293_v25 = vrot.slane %v2291_v30, 7  ;;  %v4846_v61 = vpack.c.bf16 %v2007_v13, %v2007_v13  ;;  %v4851_v0 = vpack.c.bf16 %v1867_v36, %v1867_v36  ;;  %v1787_v38 = vadd.f32 %v1658_v28, %v6152_v55  ;;  %v5080_v20 = vpop.f32.mrf.mxu0 }
 0x1f2   : > { %v2271_v5 = vor.u32 %v2269_v33, %v2268_v31  ;;  %v2272_v53 = vrot.slane %v2268_v31, 4  ;;  %v1865_v43 = vmax.f32 %v1829_v3, 0.0  ;;  %v1832_v17 = vadd.f32 %v6142_v10, %v1789_v54  ;;  %v2632_v33 = vld [vmem:[#allocation2 + $0x8] sm:$0x1]  ;;  %v2649_v31 = vld [vmem:[#allocation2 + $0x24] sm:$0xf] }
 0x1f3   : > { %v2296_v47 = vor.u32 %v2294_v9, %v2293_v25  ;;  %v2298_v60 = vrot.slane %v2293_v25, 4  ;;  %v2274_v39 = vshrl.u32 %v4846_v61, 16  ;;  %v2277_v46 = vshll.u32 %v4846_v61, 16  ;;  %v1671_v4 = vpop.f32.mrf.mxu0 }
 0x1f4   : > { %v2628_v55 = vsel %vm6235_vm13, %v2271_v5, %v2627_v34  ;;  %v2317_v40 = vshrl.u32 %v4851_v0, 16  ;;  %v2320_v22 = vshll.u32 %v4851_v0, 16  ;;  %v4849_v57 = vpack.c.bf16 %v1865_v43, %v1865_v43  ;;  %v2642_v43 = vld [vmem:[#allocation2 + $0x18] sm:$0xf] }
 0x1f5   : > { %2629 = vst [vmem:[#allocation2] sm:$0xf] %v2628_v55  ;;  %v2297_v51 = vsel %vm6247_vm14, %v2289_v29, %v2296_v47  ;;  %v2640_v16 = vsel %vm5942_vm8, %v2298_v60, %v2639_v21  ;;  %v2276_v50 = vrot.slane %v2274_v39, 7  ;;  %v1868_v62 = vmax.f32 %v1832_v17, 0.0  ;;  %v5081_v52 = vpop.f32.mrf.mxu0 }
 0x1f6   : > { %2638 = vst.msk [vmem:[#allocation2 + $0x10] sm:$0xf] %vm2625_vm11, %v2297_v51  ;;  %2641 = vst [vmem:[#allocation2 + $0x14] sm:$0x1] %v2640_v16  ;;  %v2319_v30 = vrot.slane %v2317_v40, 7  ;;  %v2300_v9 = vshrl.u32 %v4849_v57, 16  ;;  %v1830_v36 = vadd.f32 %v6142_v10, %v1787_v38  ;;  %v1792_v29 = vadd.f32 %v5080_v20, %v6156_v23 }
 0x1f7   : > { %v2303_v13 = vshll.u32 %v4849_v57, 16  ;;  %v2279_v28 = vor.u32 %v2277_v46, %v2276_v50  ;;  %v2281_v49 = vrot.slane %v2276_v50, 4  ;;  %v4852_v3 = vpack.c.bf16 %v1868_v62, %v1868_v62  ;;  %v1674_v54 = vpop.f32.mrf.mxu0  ;;  %v2653_v51 = vld [vmem:[#allocation2 + $0x2c] sm:$0x1] }
 0x1f8   : > { %v2322_v34 = vor.u32 %v2320_v22, %v2319_v30  ;;  %v2323_v25 = vrot.slane %v2319_v30, 4  ;;  %v2302_v61 = vrot.slane %v2300_v9, 7  ;;  %v1866_v0 = vmax.f32 %v1830_v36, 0.0 }
 0x1f9   : > { %v2280_v5 = vsel %vm6247_vm14, %v2272_v53, %v2279_v28  ;;  %v2633_v21 = vsel %vm5942_vm8, %v2281_v49, %v2632_v33  ;;  %v2325_v17 = vshrl.u32 %v4852_v3, 16  ;;  %v2328_v38 = vshll.u32 %v4852_v3, 16  ;;  %v5084_v47 = vpop.f32.mrf.mxu0  ;;  %v2646_v49 = vld [vmem:[#allocation2 + $0x20] sm:$0x1] }
 0x1fa   : > { %2631 = vst.msk [vmem:[#allocation2 + $0x4] sm:$0xf] %vm2625_vm11, %v2280_v5  ;;  %2634 = vst [vmem:[#allocation2 + $0x8] sm:$0x1] %v2633_v21  ;;  %v2650_v23 = vsel %vm6235_vm13, %v2322_v34, %v2649_v31  ;;  %v2305_v20 = vor.u32 %v2303_v13, %v2302_v61  ;;  %v2306_v60 = vrot.slane %v2302_v61, 4  ;;  %v4850_v39 = vpack.c.bf16 %v1866_v0, %v1866_v0 }
 0x1fb   : > { %2651 = vst [vmem:[#allocation2 + $0x24] sm:$0xf] %v2650_v23  ;;  %v2327_v46 = vrot.slane %v2325_v17, 7  ;;  %v1835_v53 = vadd.f32 %v6142_v10, %v1792_v29  ;;  %v1790_v55 = vadd.f32 %v1671_v4, %v6160_v8  ;;  %v1793_v40 = vadd.f32 %v5081_v52, %v6164_v58  ;;  %v1687_v22 = vpop.f32.mrf.mxu0 }
 0x1fc   : > { %v2643_v57 = vsel %vm6235_vm13, %v2305_v20, %v2642_v43  ;;  %v2308_v16 = vshrl.u32 %v4850_v39, 16  ;;  %v2311_v50 = vshll.u32 %v4850_v39, 16  ;;  %v1791_v62 = vadd.f32 %v1674_v54, %v6168_v1 }
 0x1fd   : > { %2644 = vst [vmem:[#allocation2 + $0x18] sm:$0xf] %v2643_v57  ;;  %v2330_v33 = vor.u32 %v2328_v38, %v2327_v46  ;;  %v2332_v30 = vrot.slane %v2327_v46, 4  ;;  %v1871_v9 = vmax.f32 %v1835_v53, 0.0  ;;  %v1833_v13 = vadd.f32 %v6142_v10, %v1790_v55  ;;  %v5085_v36 = vpop.f32.mrf.mxu0 }
 0x1fe   : > { %v2310_v28 = vrot.slane %v2308_v16, 7  ;;  %v1836_v8 = vadd.f32 %v6142_v10, %v1793_v40  ;;  %v1834_v58 = vadd.f32 %v6142_v10, %v1791_v62  ;;  %v1796_v4 = vadd.f32 %v5084_v47, %v6172_v14  ;;  %v2663_v40 = vld [vmem:[#allocation2 + $0x3c] sm:$0xf] }
 0x1ff   : > { %v2331_v52 = vsel %vm6247_vm14, %v2323_v25, %v2330_v33  ;;  %v2654_v1 = vsel %vm5942_vm8, %v2332_v30, %v2653_v51  ;;  %v4855_v31 = vpack.c.bf16 %v1871_v9, %v1871_v9  ;;  %v1869_v3 = vmax.f32 %v1833_v13, 0.0  ;;  %v6282_v29 = vpop.f32.mrf.mxu0  ;;  %v2656_v13 = vld [vmem:[#allocation2 + $0x30] sm:$0xf] }
 0x200   : > { %2652 = vst.msk [vmem:[#allocation2 + $0x28] sm:$0xf] %vm2625_vm11, %v2331_v52  ;;  %2655 = vst [vmem:[#allocation2 + $0x2c] sm:$0x1] %v2654_v1  ;;  %v2313_v54 = vor.u32 %v2311_v50, %v2310_v28  ;;  %v2315_v34 = vrot.slane %v2310_v28, 4  ;;  %v1872_v61 = vmax.f32 %v1836_v8, 0.0  ;;  %v1839_v25 = vadd.f32 %v6142_v10, %v1796_v4  ;;  %v5063_v1 = vpop.f32.mrf.mxu1 }
 0x201   : > { %v1870_v0 = vmax.f32 %v1834_v58, 0.0  ;;  %v2351_v5 = vshrl.u32 %v4855_v31, 16  ;;  %v2354_v14 = vshll.u32 %v4855_v31, 16  ;;  %v4853_v21 = vpack.c.bf16 %v1869_v3, %v1869_v3  ;;  %v6286_v43 = vpop.f32.mrf.mxu0  ;;  %v2667_v8 = vld [vmem:[#allocation2 + $0x44] sm:$0x1] }
 0x202   : > { %v2314_v17 = vsel %vm6247_vm14, %v2306_v60, %v2313_v54  ;;  %v2647_v38 = vsel %vm5942_vm8, %v2315_v34, %v2646_v49  ;;  %v4856_v47 = vpack.c.bf16 %v1872_v61, %v1872_v61  ;;  %v1875_v53 = vmax.f32 %v1839_v25, 0.0  ;;  %v2660_v54 = vld [vmem:[#allocation2 + $0x38] sm:$0x1]  ;;  %v2757_v25 = vld [vmem:[#allocation2 + $0x10] sm:$0xf] }
 0x203   : > { %v4854_v23 = vpack.c.bf16 %v1870_v0, %v1870_v0  ;;  %2645 = vst.msk [vmem:[#allocation2 + $0x1c] sm:$0xf] %vm2625_vm11, %v2314_v17  ;;  %2648 = vst [vmem:[#allocation2 + $0x20] sm:$0x1] %v2647_v38  ;;  %v2353_v20 = vrot.slane %v2351_v5, 7  ;;  %v2334_v39 = vshrl.u32 %v4853_v21, 16  ;;  %v1703_v55 = vpop.f32.mrf.mxu0  ;;  %v1794_v4 = vadd.f32 %v1687_v22, %v6177_v37 }
 0x204   : > { %v2337_v46 = vshll.u32 %v4853_v21, 16  ;;  %v2359_v57 = vshrl.u32 %v4856_v47, 16  ;;  %v2362_v51 = vshll.u32 %v4856_v47, 16  ;;  %v4859_v30 = vpack.c.bf16 %v1875_v53, %v1875_v53 }
 0x205   : > { %v2342_v16 = vshrl.u32 %v4854_v23, 16  ;;  %v2345_v50 = vshll.u32 %v4854_v23, 16  ;;  %v2356_v62 = vor.u32 %v2354_v14, %v2353_v20  ;;  %v2357_v60 = vrot.slane %v2353_v20, 4  ;;  %v5089_v9 = vpop.f32.mrf.mxu0 }
 0x206   : > { %v2336_v33 = vrot.slane %v2334_v39, 7  ;;  %v2361_v28 = vrot.slane %v2359_v57, 7  ;;  %v1797_v52 = vadd.f32 %v5085_v36, %v6181_v35  ;;  %v2385_v34 = vshrl.u32 %v4859_v30, 16  ;;  %v2677_v39 = vld [vmem:[#allocation2 + $0x54] sm:$0xf] }
 0x207   : > { %v2344_v58 = vrot.slane %v2342_v16, 7  ;;  %v2664_v49 = vsel %vm6235_vm13, %v2356_v62, %v2663_v40  ;;  %v6297_v61 = vpop.f32.mrf.mxu0  ;;  %v2388_v35 = vshll.u32 %v4859_v30, 16  ;;  %v1837_v36 = vadd.f32 %v6142_v10, %v1794_v4  ;;  %v2756_v16 = vld [vmem:[#allocation2 + $0xc] sm:$0xf] }
 0x208   : > { %v2339_v31 = vor.u32 %v2337_v46, %v2336_v33  ;;  %v2340_v3 = vrot.slane %v2336_v33, 4  ;;  %2665 = vst [vmem:[#allocation2 + $0x3c] sm:$0xf] %v2664_v49  ;;  %v2364_v0 = vor.u32 %v2362_v51, %v2361_v28  ;;  %v2366_v5 = vrot.slane %v2361_v28, 4  ;;  %v1421_v46 = vpop.f32.mrf.mxu1 }
 0x209   : > { %v2347_v14 = vor.u32 %v2345_v50, %v2344_v58  ;;  %v2349_v21 = vrot.slane %v2344_v58, 4  ;;  %v6301_v22 = vrot.slane %v2385_v34, 7  ;;  %v6304_v17 = vpop.f32.mrf.mxu0  ;;  %v6315_v53 = vadd.f32 %v5063_v1, %v6117_v15  ;;  %v2761_v50 = vld [vmem:[#allocation2 + $0x28] sm:$0xf] }
 0x20a   : > { %v2657_v37 = vsel %vm6235_vm13, %v2339_v31, %v2656_v13  ;;  %v2365_v38 = vsel %vm6247_vm14, %v2357_v60, %v2364_v0  ;;  %v2668_v47 = vsel %vm5942_vm8, %v2366_v5, %v2667_v8  ;;  %v1873_v57 = vmax.f32 %v1837_v36, 0.0  ;;  %v7466_v60 = vld [vmem:[#allocation5_spill] sm:$0xff]  ;;  %v5066_v49 = vpop.f32.mrf.mxu1  ;;  %v7467_v31 = vld [vmem:[#allocation6_spill] sm:$0xff] }
 0x20b   : > { %2658 = vst [vmem:[#allocation2 + $0x30] sm:$0xf] %v2657_v37  ;;  %v2348_v23 = vsel %vm6247_vm14, %v2340_v3, %v2347_v14  ;;  %v2661_v20 = vsel %vm5942_vm8, %v2349_v21, %v2660_v54  ;;  %2666 = vst.msk [vmem:[#allocation2 + $0x40] sm:$0xf] %vm2625_vm11, %v2365_v38  ;;  %v2390_v40 = vor.u32 %v2388_v35, %v6301_v22  ;;  %v6321_v62 = vpop.f32.mrf.mxu0  ;;  %v2391_v5 = vrot.slane %v6301_v22, 4 }
 0x20c   : > { %2669 = vst [vmem:[#allocation2 + $0x44] sm:$0x1] %v2668_v47  ;;  %2659 = vst.msk [vmem:[#allocation2 + $0x34] sm:$0xf] %vm2625_vm11, %v2348_v23  ;;  %v1840_v51 = vadd.f32 %v6142_v10, %v1797_v52  ;;  %v6324_v33 = vadd.f32 %v1421_v46, %v7466_v60  ;;  %v6326_v15 = vcombine.low %v2756_v16, %v2757_v25  ;;  %v2760_v52 = vld [vmem:[#allocation2 + $0x24] sm:$0xf] }
 0x20d   : > { %2662 = vst [vmem:[#allocation2 + $0x38] sm:$0x1] %v2661_v20  ;;  %v1795_v30 = vadd.f32 %v6282_v29, %v6185_v32  ;;  %v1800_v13 = vadd.f32 %v6286_v43, %v6189_v24  ;;  %v2678_v28 = vsel %vm6235_vm13, %v2390_v40, %v2677_v39  ;;  %v4857_v8 = vpack.c.bf16 %v1873_v57, %v1873_v57  ;;  %v6335_v1 = vpop.f32.mrf.mxu0  ;;  %v6347_v54 = vld [vmem:[#allocation2 + $0x14] ss:$0 sps:$4 sm:$0x11]  }
 0x20e   : > { %v1876_v58 = vmax.f32 %v1840_v51, 0.0  ;;  %v1798_v4 = vadd.f32 %v1703_v55, %v6192_v45  ;;  %2679 = vst [vmem:[#allocation2 + $0x54] sm:$0xf] %v2678_v28  ;;  %2875 = vrot.lane.b32.xlu0 %v6326_v15, %s5379_s28  ;;  %v1801_v24 = vadd.f32 %v5089_v9, %v6196_v7  ;;  %v6342_v43 = vcombine.low %v2760_v52, %v2761_v50  ;;  %v5296_v7 = vld [vmem:[#allocation2 + $0x2c] ss:$0 sps:$4 sm:$0x11]  }
 0x20f   : > { %v1838_v32 = vadd.f32 %v6142_v10, %v1795_v30  ;;  %v1843_v29 = vadd.f32 %v6142_v10, %v1800_v13  ;;  %v6345_v3 = vadd.f32 %v5066_v49, %v7467_v31  ;;  %v2368_v45 = vshrl.u32 %v4857_v8, 16  ;;  %v6350_v0 = vpop.f32.mrf.mxu0  ;;  %v2670_v47 = vld [vmem:[#allocation2 + $0x48] sm:$0xf]  ;;  %v2681_v50 = vld [vmem:[#allocation2 + $0x5c] sm:$0x1] }
 0x210   : > { %v4860_v55 = vpack.c.bf16 %v1876_v58, %v1876_v58  ;;  %v1841_v34 = vadd.f32 %v6142_v10, %v1798_v4  ;;  %v1844_v37 = vadd.f32 %v6142_v10, %v1801_v24  ;;  %2914 = vrot.lane.b32.xlu1 %v6342_v43, %s5381_s11  ;;  %v2371_v35 = vshll.u32 %v4857_v8, 16 }
 0x211   : > { %v1874_v14 = vmax.f32 %v1838_v32, 0.0  ;;  %v1879_v21 = vmax.f32 %v1843_v29, 0.0  ;;  %v2370_v9 = vrot.slane %v2368_v45, 7  ;;  %v6356_v38 = vpop.f32.mrf.mxu0  ;;  %v1799_v51 = vadd.f32 %v6297_v61, %v6199_v27  ;;  %v2674_v45 = vld [vmem:[#allocation2 + $0x50] sm:$0x1] }
 0x212   : > { %v2393_v36 = vshrl.u32 %v4860_v55, 16  ;;  %v1877_v25 = vmax.f32 %v1841_v34, 0.0  ;;  %v2396_v23 = vshll.u32 %v4860_v55, 16  ;;  %3097 = vrot.lane.b32.xlu0 %v6347_v54, %s5379_s28  ;;  %v1880_v22 = vmax.f32 %v1844_v37, 0.0  ;;  %v2691_v55 = vld [vmem:[#allocation2 + $0x6c] sm:$0xf] }
 0x213   : > { %v4858_v20 = vpack.c.bf16 %v1874_v14, %v1874_v14  ;;  %v4863_v39 = vpack.c.bf16 %v1879_v21, %v1879_v21  ;;  %v2373_v46 = vor.u32 %v2371_v35, %v2370_v9  ;;  %v6362_v16 = vpop.f32.mrf.mxu0  ;;  %v1842_v14 = vadd.f32 %v6142_v10, %v1799_v51 }
 0x214   : > { %v2395_v40 = vrot.slane %v2393_v36, 7  ;;  %v4861_v57 = vpack.c.bf16 %v1877_v25, %v1877_v25  ;;  %3134 = vrot.lane.b32.xlu1 %v5296_v7, %s5381_s11  ;;  %v4864_v27 = vpack.c.bf16 %v1880_v22, %v1880_v22  ;;  %v2374_v21 = vrot.slane %v2370_v9, 4  ;;  %v2684_v25 = vld [vmem:[#allocation2 + $0x60] sm:$0xf] }
 0x215   : > { %v2376_v60 = vshrl.u32 %v4858_v20, 16  ;;  %v2379_v30 = vshll.u32 %v4858_v20, 16  ;;  %v2419_v13 = vshrl.u32 %v4863_v39, 16  ;;  %v2422_v28 = vshll.u32 %v4863_v39, 16  ;;  %v6369_v61 = vpop.f32.mrf.mxu0  ;;  %v6380_v39 = vld [vmem:[#allocation2 + $0x1c] sm:$0xf] }
 0x216   : > { %v2671_v8 = vsel %vm6235_vm13, %v2373_v46, %v2670_v47  ;;  %v2398_v58 = vor.u32 %v2396_v23, %v2395_v40  ;;  %v2400_v4 = vrot.slane %v2395_v40, 4  ;;  %v2402_v52 = vshrl.u32 %v4861_v57, 16  ;;  %2879 = vrot.lane.b32.xlu0 %v6342_v43, %s5379_s28 }
 0x217   : > { %2672 = vst [vmem:[#allocation2 + $0x48] sm:$0xf] %v2671_v8  ;;  %v2378_v49 = vrot.slane %v2376_v60, 7  ;;  %v2421_v32 = vrot.slane %v2419_v13, 7  ;;  %v2405_v29 = vshll.u32 %v4861_v57, 16  ;;  %v2427_v23 = vshrl.u32 %v4864_v27, 16  ;;  %v6389_v57 = vpop.f32.mrf.mxu0 }
 0x218   : > { %v2399_v24 = vsel %vm6247_vm14, %v2391_v5, %v2398_v58  ;;  %v2682_v31 = vsel %vm5942_vm8, %v2400_v4, %v2681_v50  ;;  %v6375_v34 = vrot.slane %v2402_v52, 7  ;;  %v2430_v20 = vshll.u32 %v4864_v27, 16  ;;  %v2758_v13 = vld [vmem:[#allocation2 + $0x18] sm:$0xf] }
 0x219   : > { %2680 = vst.msk [vmem:[#allocation2 + $0x58] sm:$0xf] %vm2625_vm11, %v2399_v24  ;;  %2683 = vst [vmem:[#allocation2 + $0x5c] sm:$0x1] %v2682_v31  ;;  %v2381_v37 = vor.u32 %v2379_v30, %v2378_v49  ;;  %v2383_v35 = vrot.slane %v2378_v49, 4  ;;  %v2424_v36 = vor.u32 %v2422_v28, %v2421_v32  ;;  %v2425_v47 = vrot.slane %v2421_v32, 4 }
 0x21a   : > { %v2407_v5 = vor.u32 %v2405_v29, %v6375_v34  ;;  %v1878_v40 = vmax.f32 %v1842_v14, 0.0  ;;  %3101 = vrot.lane.b32.xlu0 %v5296_v7, %s5379_s28  ;;  %v2429_v50 = vrot.slane %v2427_v23, 7  ;;  %v1804_v60 = vadd.f32 %v6304_v17, %v6202_v48  ;;  %v2695_v7 = vld [vmem:[#allocation2 + $0x74] sm:$0x1]  ;;  %v2688_v14 = vld [vmem:[#allocation2 + $0x68] sm:$0x1] }
 0x21b   : > { %v2382_v22 = vsel %vm6247_vm14, %v2374_v21, %v2381_v37  ;;  %v2675_v9 = vsel %vm5942_vm8, %v2383_v35, %v2674_v45  ;;  %v2692_v46 = vsel %vm6235_vm13, %v2424_v36, %v2691_v55  ;;  %v1802_v30 = vadd.f32 %v6321_v62, %v6205_v42 }
 0x21c   : > { %2673 = vst.msk [vmem:[#allocation2 + $0x4c] sm:$0xf] %vm2625_vm11, %v2382_v22  ;;  %2676 = vst [vmem:[#allocation2 + $0x50] sm:$0x1] %v2675_v9  ;;  %v2685_v51 = vsel %vm6235_vm13, %v2407_v5, %v2684_v25  ;;  %v2408_v28 = vrot.slane %v6375_v34, 4  ;;  %v4862_v8 = vpack.c.bf16 %v1878_v40, %v1878_v40  ;;  %v1805_v58 = vadd.f32 %v6335_v1, %v6209_v56  ;;  %v6413_v1 = vpop.f32.mrf.mxu0 }
 0x21d   : > { %2693 = vst [vmem:[#allocation2 + $0x6c] sm:$0xf] %v2692_v46  ;;  %2686 = vst [vmem:[#allocation2 + $0x60] sm:$0xf] %v2685_v51  ;;  %v6402_v4 = vcombine.low %v2758_v13, %v6380_v39  ;;  %v2432_v52 = vor.u32 %v2430_v20, %v2429_v50  ;;  %v2434_v49 = vrot.slane %v2429_v50, 4  ;;  %v1847_v32 = vadd.f32 %v6142_v10, %v1804_v60  ;;  %v1434_v13 = vpop.f32.mrf.mxu1 }
 0x21e   : > { %v1845_v48 = vadd.f32 %v6142_v10, %v1802_v30  ;;  %v2410_v17 = vshrl.u32 %v4862_v8, 16  ;;  %v2413_v42 = vshll.u32 %v4862_v8, 16  ;;  %v1848_v62 = vadd.f32 %v6142_v10, %v1805_v58  ;;  %v2764_v30 = vld [vmem:[#allocation2 + $0x3c] sm:$0xf]  ;;  %v2698_v8 = vld [vmem:[#allocation2 + $0x78] sm:$0xf] }
 0x21f   : > { %2912 = vrot.lane.b32.xlu0 %v6402_v4, %s5381_s11  ;;  %2877 = vrot.lane.b32.xlu1 %v6402_v4, %s5379_s28  ;;  %v1803_v56 = vadd.f32 %v6350_v0, %v6212_v2  ;;  %v2433_v29 = vsel %vm6247_vm14, %v2425_v47, %v2432_v52  ;;  %v2696_v27 = vsel %vm5942_vm8, %v2434_v49, %v2695_v7  ;;  %v1883_v24 = vmax.f32 %v1847_v32, 0.0  ;;  %v6423_v0 = vld [vmem:[#allocation2 + $0x20] ss:$0 sps:$4 sm:$0x11]   ;;  %v2705_v7 = vld [vmem:[#allocation2 + $0x84] sm:$0xf] }
 0x220   : > { %v1881_v31 = vmax.f32 %v1845_v48, 0.0  ;;  %2694 = vst.msk [vmem:[#allocation2 + $0x70] sm:$0xf] %vm2625_vm11, %v2433_v29  ;;  %2697 = vst [vmem:[#allocation2 + $0x74] sm:$0x1] %v2696_v27  ;;  %v2412_v45 = vrot.slane %v2410_v17, 7  ;;  %v1808_v2 = vadd.f32 %v6356_v38, %v6215_v18  ;;  %v1806_v35 = vadd.f32 %v6362_v16, %v6218_v63  ;;  %v6433_v18 = vpop.f32.mrf.mxu0 }
 0x221   : > { %v1884_v55 = vmax.f32 %v1848_v62, 0.0  ;;  %v1846_v34 = vadd.f32 %v6142_v10, %v1803_v56  ;;  %v4867_v21 = vpack.c.bf16 %v1883_v24, %v1883_v24  ;;  %v1809_v36 = vadd.f32 %v6369_v61, %v6221_v41  ;;  %v6435_v63 = vld [vmem:[#allocation2 + $0x40] sm:$0xf]  ;;  %v7468_v48 = vld [vmem:[#allocation7_spill] sm:$0xff]  ;;  %v2709_v29 = vld [vmem:[#allocation2 + $0x8c] sm:$0x1] }
 0x222   : > { %v4865_v37 = vpack.c.bf16 %v1881_v31, %v1881_v31  ;;  %v2415_v25 = vor.u32 %v2413_v42, %v2412_v45  ;;  %v2417_v47 = vrot.slane %v2412_v45, 4  ;;  %v1851_v60 = vadd.f32 %v6142_v10, %v1808_v2  ;;  %v5101_v32 = vpop.f32.mrf.mxu0 }
 0x223   : > { %v4868_v5 = vpack.c.bf16 %v1884_v55, %v1884_v55  ;;  %v1882_v23 = vmax.f32 %v1846_v34, 0.0  ;;  %3132 = vrot.lane.b32.xlu0 %v6423_v0, %s5381_s11  ;;  %3099 = vrot.lane.b32.xlu1 %v6423_v0, %s5379_s28  ;;  %v2453_v38 = vshrl.u32 %v4867_v21, 16  ;;  %v2456_v20 = vshll.u32 %v4867_v21, 16 }
 0x224   : > { %v2436_v22 = vshrl.u32 %v4865_v37, 16  ;;  %v2439_v9 = vshll.u32 %v4865_v37, 16  ;;  %v2416_v41 = vsel %vm6247_vm14, %v2408_v28, %v2415_v25  ;;  %v2689_v16 = vsel %vm5942_vm8, %v2417_v47, %v2688_v14  ;;  %v6463_v25 = vld [vmem:[#allocation2 + $0x44] ss:$0 sps:$4 sm:$0x11]   ;;  %v6465_v47 = vpop.f32.mrf.mxu0 }
 0x225   : > { %v2461_v61 = vshrl.u32 %v4868_v5, 16  ;;  %v2464_v46 = vshll.u32 %v4868_v5, 16  ;;  %2687 = vst.msk [vmem:[#allocation2 + $0x64] sm:$0xf] %vm2625_vm11, %v2416_v41  ;;  %2690 = vst [vmem:[#allocation2 + $0x68] sm:$0x1] %v2689_v16  ;;  %v4866_v50 = vpack.c.bf16 %v1882_v23, %v1882_v23  ;;  %v1849_v28 = vadd.f32 %v6142_v10, %v1806_v35 }
 0x226   : > { %v2455_v40 = vrot.slane %v2453_v38, 7  ;;  %v2438_v51 = vrot.slane %v2436_v22, 7  ;;  %v1852_v52 = vadd.f32 %v6142_v10, %v1809_v36  ;;  %v6446_v49 = vcombine.low %v2764_v30, %v6435_v63  ;;  %v2702_v23 = vld [vmem:[#allocation2 + $0x80] sm:$0x1] }
 0x227   : > { %v2463_v58 = vrot.slane %v2461_v61, 7  ;;  %v6449_v17 = vadd.f32 %v1434_v13, %v7468_v48  ;;  %v2444_v31 = vshrl.u32 %v4866_v50, 16  ;;  %v2447_v45 = vshll.u32 %v4866_v50, 16  ;;  %v2719_v48 = vld [vmem:[#allocation2 + $0x9c] sm:$0xf] }
 0x228   : > { %v2458_v42 = vor.u32 %v2456_v20, %v2455_v40  ;;  %v2459_v62 = vrot.slane %v2455_v40, 4  ;;  %v2441_v56 = vor.u32 %v2439_v9, %v2438_v51  ;;  %2883 = vrot.lane.b32.xlu0 %v6446_v49, %s5379_s28  ;;  %2918 = vrot.lane.b32.xlu1 %v6446_v49, %s5381_s11  ;;  %v1887_v2 = vmax.f32 %v1851_v60, 0.0  ;;  %v6476_v60 = vld [vmem:[#allocation2 + $0x34] sm:$0xf]  ;;  %v2770_v59 = vld [vmem:[#allocation2 + $0x60] sm:$0xf] }
 0x229   : > { %v2466_v27 = vor.u32 %v2464_v46, %v2463_v58  ;;  %v2468_v24 = vrot.slane %v2463_v58, 4  ;;  %v1885_v14 = vmax.f32 %v1849_v28, 0.0  ;;  %v2446_v35 = vrot.slane %v2444_v31, 7  ;;  %v2762_v28 = vld [vmem:[#allocation2 + $0x30] sm:$0xf] }
 0x22a   : > { %v2706_v55 = vsel %vm6235_vm13, %v2458_v42, %v2705_v7  ;;  %v2699_v34 = vsel %vm6235_vm13, %v2441_v56, %v2698_v8  ;;  %v1888_v36 = vmax.f32 %v1852_v52, 0.0  ;;  %v2442_v5 = vrot.slane %v2438_v51, 4  ;;  %v5067_v52 = vpop.f32.mrf.mxu1  ;;  %v2712_v42 = vld [vmem:[#allocation2 + $0x90] sm:$0xf] }
 0x22b   : > { %2707 = vst [vmem:[#allocation2 + $0x84] sm:$0xf] %v2706_v55  ;;  %2700 = vst [vmem:[#allocation2 + $0x78] sm:$0xf] %v2699_v34  ;;  %v2467_v21 = vsel %vm6247_vm14, %v2459_v62, %v2466_v27  ;;  %v2710_v37 = vsel %vm5942_vm8, %v2468_v24, %v2709_v29  ;;  %v4871_v38 = vpack.c.bf16 %v1887_v2, %v1887_v2  ;;  %v2451_v41 = vrot.slane %v2446_v35, 4 }
 0x22c   : > { %2708 = vst.msk [vmem:[#allocation2 + $0x88] sm:$0xf] %vm2625_vm11, %v2467_v21  ;;  %2711 = vst [vmem:[#allocation2 + $0x8c] sm:$0x1] %v2710_v37  ;;  %v4869_v20 = vpack.c.bf16 %v1885_v14, %v1885_v14  ;;  %v1807_v22 = vadd.f32 %v6389_v57, %v6224_v6  ;;  %v2449_v9 = vor.u32 %v2447_v45, %v2446_v35  ;;  %3105 = vrot.lane.b32.xlu0 %v6463_v25, %s5379_s28  ;;  %v2723_v34 = vld [vmem:[#allocation2 + $0xa4] sm:$0x1]  ;;  %v1437_v35 = vpop.f32.mrf.mxu1 }
 0x22d   : > { %v4872_v16 = vpack.c.bf16 %v1888_v36, %v1888_v36  ;;  %v1812_v61 = vadd.f32 %v6413_v1, %v6228_v12  ;;  %3138 = vrot.lane.b32.xlu1 %v6463_v25, %s5381_s11  ;;  %v2487_v46 = vshrl.u32 %v4871_v38, 16  ;;  %v2490_v40 = vshll.u32 %v4871_v38, 16  ;;  %v5104_v1 = vpop.f32.mrf.mxu0 }
 0x22e   : > { %v2470_v51 = vshrl.u32 %v4869_v20, 16  ;;  %v2473_v50 = vshll.u32 %v4869_v20, 16  ;;  %v2450_v6 = vsel %vm6247_vm14, %v2442_v5, %v2449_v9  ;;  %v2703_v57 = vsel %vm5942_vm8, %v2451_v41, %v2702_v23  ;;  %v6509_v20 = vld [vmem:[#allocation2 + $0x38] ss:$0 sps:$4 sm:$0x11]  }
 0x22f   : > { %v2495_v30 = vshrl.u32 %v4872_v16, 16  ;;  %v2498_v12 = vshll.u32 %v4872_v16, 16  ;;  %2701 = vst.msk [vmem:[#allocation2 + $0x7c] sm:$0xf] %vm2625_vm11, %v2450_v6  ;;  %2704 = vst [vmem:[#allocation2 + $0x80] sm:$0x1] %v2703_v57  ;;  %v1850_v8 = vadd.f32 %v6142_v10, %v1807_v22  ;;  %v1855_v58 = vadd.f32 %v6142_v10, %v1812_v61 }
 0x230   : > { %v2489_v13 = vrot.slane %v2487_v46, 7  ;;  %v6483_v7 = vrot.slane %v2470_v51, 7  ;;  %v1810_v56 = vadd.f32 %v6433_v18, %v6231_v11  ;;  %v1813_v29 = vadd.f32 %v5101_v32, %v6315_v53  ;;  %v1767_v11 = vpop.f32.mrf.mxu0  ;;  %v7469_v22 = vld [vmem:[#allocation8_spill] sm:$0xff] }
 0x231   : > { %v2497_v62 = vrot.slane %v2495_v30, 7  ;;  %v6491_v27 = vcombine.low %v2762_v28, %v6476_v60  ;;  %v1446_v24 = vadd.f32 %v5067_v52, %v6125_v44  ;;  %v1886_v21 = vmax.f32 %v1850_v8, 0.0  ;;  %v2733_v28 = vld [vmem:[#allocation2 + $0xb4] sm:$0xf] }
 0x232   : > { %v2492_v31 = vor.u32 %v2490_v40, %v2489_v13  ;;  %v2493_v45 = vrot.slane %v2489_v13, 4  ;;  %v2475_v55 = vor.u32 %v2473_v50, %v6483_v7  ;;  %v1891_v37 = vmax.f32 %v1855_v58, 0.0  ;;  %v5105_v6 = vpop.f32.mrf.mxu0 }
 0x233   : > { %v2500_v2 = vor.u32 %v2498_v12, %v2497_v62  ;;  %v2502_v14 = vrot.slane %v2497_v62, 4  ;;  %2916 = vrot.lane.b32.xlu0 %v6491_v27, %s5381_s11  ;;  %2881 = vrot.lane.b32.xlu1 %v6491_v27, %s5379_s28  ;;  %v1853_v18 = vadd.f32 %v6142_v10, %v1810_v56  ;;  %v1856_v32 = vadd.f32 %v6142_v10, %v1813_v29 }
 0x234   : > { %v2720_v53 = vsel %vm6235_vm13, %v2492_v31, %v2719_v48  ;;  %v2713_v44 = vsel %vm6235_vm13, %v2475_v55, %v2712_v42  ;;  %v4870_v23 = vpack.c.bf16 %v1886_v21, %v1886_v21  ;;  %v4875_v38 = vpack.c.bf16 %v1891_v37, %v1891_v37  ;;  %v2737_v21 = vld [vmem:[#allocation2 + $0xbc] sm:$0x1] }
 0x235   : > { %2721 = vst [vmem:[#allocation2 + $0x9c] sm:$0xf] %v2720_v53  ;;  %2714 = vst [vmem:[#allocation2 + $0x90] sm:$0xf] %v2713_v44  ;;  %v2501_v36 = vsel %vm6247_vm14, %v2493_v45, %v2500_v2  ;;  %v2724_v5 = vsel %vm5942_vm8, %v2502_v14, %v2723_v34  ;;  %v6512_v9 = vadd.f32 %v1437_v35, %v7469_v22  ;;  %v1889_v41 = vmax.f32 %v1853_v18, 0.0  ;;  %v1770_v22 = vpop.f32.mrf.mxu0 }
 0x236   : > { %2722 = vst.msk [vmem:[#allocation2 + $0xa0] sm:$0xf] %vm2625_vm11, %v2501_v36  ;;  %2725 = vst [vmem:[#allocation2 + $0xa4] sm:$0x1] %v2724_v5  ;;  %v1892_v16 = vmax.f32 %v1856_v32, 0.0  ;;  %v1811_v61 = vadd.f32 %v6465_v47, %v6324_v33  ;;  %v2476_v46 = vrot.slane %v6483_v7, 4  ;;  %v1816_v13 = vadd.f32 %v5104_v1, %v6345_v3 }
 0x237   : > { %v2478_v40 = vshrl.u32 %v4870_v23, 16  ;;  %v2481_v51 = vshll.u32 %v4870_v23, 16  ;;  %v2521_v50 = vshrl.u32 %v4875_v38, 16  ;;  %3136 = vrot.lane.b32.xlu0 %v6509_v20, %s5381_s11  ;;  %3103 = vrot.lane.b32.xlu1 %v6509_v20, %s5379_s28  ;;  %v4873_v57 = vpack.c.bf16 %v1889_v41, %v1889_v41  ;;  %v2716_v33 = vld [vmem:[#allocation2 + $0x98] sm:$0x1] }
 0x238   : > { %v4876_v30 = vpack.c.bf16 %v1892_v16, %v1892_v16  ;;  %v1854_v12 = vadd.f32 %v6142_v10, %v1811_v61  ;;  %v2524_v7 = vshll.u32 %v4875_v38, 16  ;;  %v1814_v58 = vadd.f32 %v1767_v11, %v6449_v17  ;;  %v2726_v34 = vld [vmem:[#allocation2 + $0xa8] sm:$0xf]  ;;  %v5351_v3 = vld [vmem:[%s7440_s2] ss:$0 sm:$0xff] }
 0x239   : > { %v2480_v8 = vrot.slane %v2478_v40, 7  ;;  %v2523_v47 = vrot.slane %v2521_v50, 7  ;;  %v2504_v52 = vshrl.u32 %v4873_v57, 16  ;;  %v2507_v48 = vshll.u32 %v4873_v57, 16  ;;  %v6534_v11 = vld [vmem:[#allocation2 + $0x58] sm:$0xf] }
 0x23a   : > { %v2529_v42 = vshrl.u32 %v4876_v30, 16  ;;  %v1817_v62 = vadd.f32 %v5105_v6, %v1446_v24  ;;  %v2532_v45 = vshll.u32 %v4876_v30, 16  ;;  %v1890_v2 = vmax.f32 %v1854_v12, 0.0  ;;  %v2768_v38 = vld [vmem:[#allocation2 + $0x54] sm:$0xf] }
 0x23b   : > { %v2483_v56 = vor.u32 %v2481_v51, %v2480_v8  ;;  %v2485_v29 = vrot.slane %v2480_v8, 4  ;;  %v2526_v31 = vor.u32 %v2524_v7, %v2523_v47  ;;  %v2506_v55 = vrot.slane %v2504_v52, 7 }
 0x23c   : > { %v2531_v10 = vrot.slane %v2529_v42, 7  ;;  %v1859_v1 = vadd.f32 %v5351_v3, %v1816_v13  ;;  %v1857_v37 = vadd.f32 %v5351_v3, %v1814_v58  ;;  %v2527_v53 = vrot.slane %v2523_v47, 4  ;;  %v6552_v58 = vld [vmem:[#allocation2 + $0x5c] ss:$0 sps:$4 sm:$0x11]  }
 0x23d   : > { %v2484_v17 = vsel %vm6247_vm14, %v2476_v46, %v2483_v56  ;;  %v2717_v14 = vsel %vm5942_vm8, %v2485_v29, %v2716_v33  ;;  %v2734_v24 = vsel %vm6235_vm13, %v2526_v31, %v2733_v28  ;;  %v2509_v44 = vor.u32 %v2507_v48, %v2506_v55  ;;  %v2730_v33 = vld [vmem:[#allocation2 + $0xb0] sm:$0x1] }
 0x23e   : > { %2715 = vst.msk [vmem:[#allocation2 + $0x94] sm:$0xf] %vm2625_vm11, %v2484_v17  ;;  %2718 = vst [vmem:[#allocation2 + $0x98] sm:$0x1] %v2717_v14  ;;  %v2534_v18 = vor.u32 %v2532_v45, %v2531_v10  ;;  %v2536_v32 = vrot.slane %v2531_v10, 4  ;;  %v4874_v35 = vpack.c.bf16 %v1890_v2, %v1890_v2  ;;  %v1895_v36 = vmax.f32 %v1859_v1, 0.0 }
 0x23f   : > { %2735 = vst [vmem:[#allocation2 + $0xb4] sm:$0xf] %v2734_v24  ;;  %v1893_v5 = vmax.f32 %v1857_v37, 0.0  ;;  %v1860_v23 = vadd.f32 %v5351_v3, %v1817_v62  ;;  %v2727_v41 = vsel %vm6235_vm13, %v2509_v44, %v2726_v34  ;;  %v6544_v46 = vcombine.low %v2768_v38, %v6534_v11  ;;  %v6554_v62 = vld [vmem:[#allocation2 + $0x4c] sm:$0xf] }
 0x240   : > { %v2535_v16 = vsel %vm6247_vm14, %v2527_v53, %v2534_v18  ;;  %v2738_v61 = vsel %vm5942_vm8, %v2536_v32, %v2737_v21  ;;  %2728 = vst [vmem:[#allocation2 + $0xa8] sm:$0xf] %v2727_v41  ;;  %v2512_v40 = vshrl.u32 %v4874_v35, 16  ;;  %v2040_v51 = vmul.f32 0.0, %v1895_v36  ;;  %v2740_v2 = vld [vmem:[#allocation2 + $0xc0] sm:$0xf] }
 0x241   : > { %2736 = vst.msk [vmem:[#allocation2 + $0xb8] sm:$0xf] %vm2625_vm11, %v2535_v16  ;;  %2739 = vst [vmem:[#allocation2 + $0xbc] sm:$0x1] %v2738_v61  ;;  %v4877_v50 = vpack.c.bf16 %v1893_v5, %v1893_v5  ;;  %v1896_v6 = vmax.f32 %v1860_v23, 0.0  ;;  %2887 = vrot.lane.b32.xlu0 %v6544_v46, %s5379_s28  ;;  %2922 = vrot.lane.b32.xlu1 %v6544_v46, %s5381_s11  ;;  %v1815_v57 = vadd.f32 %v1770_v22, %v6512_v9  ;;  %v5335_v23 = vld [vmem:[%s7441_s3 + $0xc] sm:$0xff]  }
 0x242   : > { %v2514_v30 = vrot.slane %v2512_v40, 7  ;;  %v2515_v12 = vshll.u32 %v4874_v35, 16  ;;  %v4879_v13 = vpack.c.bf16 %v2040_v51, %v2040_v51  ;;  %v2510_v28 = vrot.slane %v2506_v55, 4  ;;  %v2747_v1 = vld [vmem:[#allocation2 + $0xcc] sm:$0xf] }
 0x243   : > { %v2538_v8 = vshrl.u32 %v4877_v50, 16  ;;  %v2041_v47 = vmul.f32 0.0, %v1896_v6  ;;  %v1858_v7 = vadd.f32 %v5351_v3, %v1815_v57  ;;  %v2541_v29 = vshll.u32 %v4877_v50, 16  ;;  %v2766_v3 = vld [vmem:[#allocation2 + $0x48] sm:$0xf] }
 0x244   : > { %v2517_v52 = vor.u32 %v2515_v12, %v2514_v30  ;;  %v2519_v48 = vrot.slane %v2514_v30, 4  ;;  %v2555_v42 = vshrl.u32 %v4879_v13, 16  ;;  %v2558_v10 = vshll.u32 %v4879_v13, 16  ;;  %v5331_v53 = vld [vmem:[%s7441_s3 + $0x14] ss:$0 sps:$4 sm:$0xff]  }
 0x245   : > { %v2540_v56 = vrot.slane %v2538_v8, 7  ;;  %v4880_v31 = vpack.c.bf16 %v2041_v47, %v2041_v47  ;;  %v1894_v45 = vmax.f32 %v1858_v7, 0.0  ;;  %3109 = vrot.lane.b32.xlu0 %v6552_v58, %s5379_s28  ;;  %3142 = vrot.lane.b32.xlu1 %v6552_v58, %s5381_s11  ;;  %v6566_v24 = vcombine.low %v2766_v3, %v6554_v62  ;;  %v2751_v36 = vld [vmem:[#allocation2 + $0xd4] sm:$0x1]  ;;  %v6584_v51 = vld [vmem:[#allocation2 + $0x70] sm:$0xf] }
 0x246   : > { %v2518_v9 = vsel %vm6247_vm14, %v2510_v28, %v2517_v52  ;;  %v2731_v55 = vsel %vm5942_vm8, %v2519_v48, %v2730_v33  ;;  %v2557_v34 = vrot.slane %v2555_v42, 7  ;;  %v6582_v16 = vld [vmem:[#allocation2 + $0x50] ss:$0 sps:$4 sm:$0x11]   ;;  %5217 = vmatprep.subr.msk.bf16.mxu1 %vm3466_vm15, %v5331_v53  ;;  %v3468_v19 = vsel %vm3466_vm15, %v5331_v53, 0 }
 0x247   : > { %2729 = vst.msk [vmem:[#allocation2 + $0xac] sm:$0xf] %vm2625_vm11, %v2518_v9  ;;  %2732 = vst [vmem:[#allocation2 + $0xb0] sm:$0x1] %v2731_v55  ;;  %v2543_v17 = vor.u32 %v2541_v29, %v2540_v56  ;;  %v2563_v14 = vshrl.u32 %v4880_v31, 16  ;;  %v4878_v37 = vpack.c.bf16 %v1894_v45, %v1894_v45  ;;  %v2566_v32 = vshll.u32 %v4880_v31, 16  ;;  %5107 = vmatpush3.bf16.msra.mxu1 %v3468_v19 }
 0x248   : > { %v2560_v21 = vor.u32 %v2558_v10, %v2557_v34  ;;  %v2561_v38 = vrot.slane %v2557_v34, 4  ;;  %v2744_v57 = vld [vmem:[#allocation2 + $0xc8] sm:$0x1]  ;;  %v2544_v30 = vrot.slane %v2540_v56, 4  ;;  %v2772_v8 = vld [vmem:[#allocation2 + $0x6c] sm:$0xf]  ;;  %5108 = vmatprep.subr.bf16.mxu1 %v5335_v23 }
 0x249   : > { %v2741_v44 = vsel %vm6235_vm13, %v2543_v17, %v2740_v2  ;;  %v2565_v18 = vrot.slane %v2563_v14, 7  ;;  %2920 = vrot.lane.b32.xlu0 %v6566_v24, %s5381_s11  ;;  %2885 = vrot.lane.b32.xlu1 %v6566_v24, %s5379_s28  ;;  %v2546_v5 = vshrl.u32 %v4878_v37, 16  ;;  %v2549_v40 = vshll.u32 %v4878_v37, 16  ;;  %v6609_v28 = vld [vmem:[#allocation2 + $0x74] ss:$0 sps:$4 sm:$0x11]  }
 0x24a   : > { %v2748_v35 = vsel %vm6235_vm13, %v2560_v21, %v2747_v1  ;;  %2742 = vst [vmem:[#allocation2 + $0xc0] sm:$0xf] %v2741_v44  ;;  %v6598_v33 = vcombine.low %v2772_v8, %v6584_v51  ;;  %v6611_v52 = vld [vmem:[#allocation2 + $0x64] sm:$0xf]  ;;  %v5345_v48 = vld [vmem:[%s7441_s3 + $0x20] ss:$0 sps:$4 sm:$0xff]  }
 0x24b   : > { %2749 = vst [vmem:[#allocation2 + $0xcc] sm:$0xf] %v2748_v35  ;;  %v2568_v22 = vor.u32 %v2566_v32, %v2565_v18  ;;  %v2570_v41 = vrot.slane %v2565_v18, 4  ;;  %v2548_v61 = vrot.slane %v2546_v5, 7  ;;  %5109 = vmatpush3.bf16.msra.mxu1 %v5335_v23  ;;  %v6618_v26 = vcombine.low %v2770_v59, %v6611_v52  ;;  %5219 = vmatprep.subr.msk.bf16.mxu0 %vm3466_vm15, %v5345_v48  ;;  %v6631_v29 = vld [vmem:[#allocation2 + $0x88] sm:$0xf] }
 0x24c   : > { %v4194_v42 = vsel %vm3466_vm15, %v5345_v48, 0  ;;  %v6629_v56 = vld [vmem:[#allocation2 + $0x68] ss:$0 sps:$4 sm:$0x11]   ;;  %v2776_v31 = vld [vmem:[#allocation2 + $0x84] sm:$0xf] }
 0x24d   : > { %v2569_v50 = vsel %vm6247_vm14, %v2561_v38, %v2568_v22  ;;  %v2752_v6 = vsel %vm5942_vm8, %v2570_v41, %v2751_v36  ;;  %3140 = vrot.lane.b32.xlu0 %v6582_v16, %s5381_s11  ;;  %3107 = vrot.lane.b32.xlu1 %v6582_v16, %s5379_s28  ;;  %v2551_v12 = vor.u32 %v2549_v40, %v2548_v61  ;;  %v2553_v13 = vrot.slane %v2548_v61, 4  ;;  %v6647_v9 = vld [vmem:[%s7441_s3 + $0x8] ss:$0 sps:$4 sm:$0xff]   ;;  %v6649_v55 = vld [vmem:[#allocation2 + $0x8c] ss:$0 sps:$4 sm:$0x11]  }
 0x24e   : > { %2750 = vst.msk [vmem:[#allocation2 + $0xd0] sm:$0xf] %vm2625_vm11, %v2569_v50  ;;  %2753 = vst [vmem:[#allocation2 + $0xd4] sm:$0x1] %v2752_v6  ;;  %5179 = vmatpush3.bf16.msra.mxu0 %v4194_v42  ;;  %v6638_v45 = vcombine.low %v2776_v31, %v6631_v29  ;;  %5218 = vmatprep.subr.msk.bf16.mxu1 %vm3466_vm15, %v6647_v9  ;;  %v6653_v34 = vld [vmem:[#allocation2 + $0x7c] sm:$0xf] }
 0x24f   : > { %v2552_v47 = vsel %vm6247_vm14, %v2544_v30, %v2551_v12  ;;  %v2745_v7 = vsel %vm5942_vm8, %v2553_v13, %v2744_v57  ;;  %v2774_v10 = vld [vmem:[#allocation2 + $0x78] sm:$0xf]  ;;  %v6666_v3 = vld [vmem:[#allocation2 + $0x80] ss:$0 sps:$4 sm:$0x11]  }
 0x250   : > { %2743 = vst.msk [vmem:[#allocation2 + $0xc4] sm:$0xf] %vm2625_vm11, %v2552_v47  ;;  %2746 = vst [vmem:[#allocation2 + $0xc8] sm:$0x1] %v2745_v7  ;;  %v6660_v2 = vcombine.low %v2774_v10, %v6653_v34  ;;  %v6668_v1 = vld [vmem:[#allocation2 + $0xa0] sm:$0xf] }
 0x251   : > { %2891 = vrot.lane.b32.xlu0 %v6598_v33, %s5379_s28  ;;  %2926 = vrot.lane.b32.xlu1 %v6598_v33, %s5381_s11  ;;  %v2780_v17 = vld [vmem:[#allocation2 + $0x9c] sm:$0xf]  ;;  %v6681_v21 = vld [vmem:[#allocation2 + $0xa4] ss:$0 sps:$4 sm:$0x11]  }
 0x252   : > { %v6675_v14 = vcombine.low %v2780_v17, %v6668_v1  ;;  %v6683_v37 = vld [vmem:[#allocation2 + $0x94] sm:$0xf]  ;;  %v2778_v53 = vld [vmem:[#allocation2 + $0x90] sm:$0xf]  ;;  %v5348_v18 = vld [vmem:[%s7441_s3 + $0x18] sm:$0xff]  }
 0x253   : > { %v6690_v44 = vcombine.low %v2778_v53, %v6683_v37  ;;  %5180 = vmatprep.subr.bf16.mxu0 %v5348_v18  ;;  %v6699_v32 = vld [vmem:[#allocation2 + $0x98] ss:$0 sps:$4 sm:$0x11]   ;;  %v2784_v36 = vld [vmem:[#allocation2 + $0xb4] sm:$0xf] }
 0x254   : > { %5181 = vmatpush3.bf16.msra.mxu0 %v5348_v18  ;;  %v6701_v35 = vld [vmem:[#allocation2 + $0xb8] sm:$0xf]  ;;  %v6714_v38 = vld [vmem:[#allocation2 + $0xbc] ss:$0 sps:$4 sm:$0x11]  }
 0x255   : > { %3113 = vrot.lane.b32.xlu0 %v6609_v28, %s5379_s28  ;;  %3146 = vrot.lane.b32.xlu1 %v6609_v28, %s5381_s11  ;;  %v6708_v5 = vcombine.low %v2784_v36, %v6701_v35  ;;  %7470 = vst [vmem:[#allocation4_spill] sm:$0xff] %v6714_v38  ;;  %v6716_v22 = vld [vmem:[#allocation2 + $0xac] sm:$0xf]  ;;  %v2782_v40 = vld [vmem:[#allocation2 + $0xa8] sm:$0xf] }
 0x256   : > { %v6723_v19 = vcombine.low %v2782_v40, %v6716_v22  ;;  %v6731_v57 = vld [vmem:[#allocation2 + $0x4] sm:$0xf]  ;;  %v6733_v30 = vld [vmem:[#allocation2 + $0xb0] ss:$0 sps:$4 sm:$0x11]  }
 0x257   : > { %7471 = vst [vmem:[#allocation3_spill] sm:$0xff] %v6731_v57  ;;  %v6735_v12 = vld [vmem:[#allocation2 + $0xc4] sm:$0xf]  ;;  %v2754_v8 = vld [vmem:[#allocation2] sm:$0xf] }
 0x258   : > { %v4727_v47 = vcombine.low %v2754_v8, %v6731_v57  ;;  %v2786_v7 = vld [vmem:[#allocation2 + $0xc0] sm:$0xf]  ;;  %v6746_v42 = vld [vmem:[#allocation2 + $0xd0] sm:$0xf]  ;;  %v2788_v36 = vld [vmem:[#allocation2 + $0xcc] sm:$0xf] }
 0x259   : > { %2924 = vrot.lane.b32.xlu0 %v6618_v26, %s5381_s11  ;;  %2889 = vrot.lane.b32.xlu1 %v6618_v26, %s5379_s28  ;;  %v4743_v59 = vcombine.low %v2786_v7, %v6735_v12  ;;  %v5329_v18 = vld [vmem:[#allocation2 + $0x8] ss:$0 sps:$4 sm:$0x11]  }
 0x25a   : > { %v5332_v8 = vld [vmem:[#allocation2 + $0xc8] ss:$0 sps:$4 sm:$0x11]  }
 0x25d   : > { %3144 = vrot.lane.b32.xlu0 %v6629_v56, %s5381_s11  ;;  %3111 = vrot.lane.b32.xlu1 %v6629_v56, %s5379_s28 }
 0x261   : > { %2895 = vrot.lane.b32.xlu0 %v6638_v45, %s5379_s28  ;;  %2930 = vrot.lane.b32.xlu1 %v6638_v45, %s5381_s11 }
 0x265   : > { %3117 = vrot.lane.b32.xlu0 %v6649_v55, %s5379_s28  ;;  %3150 = vrot.lane.b32.xlu1 %v6649_v55, %s5381_s11 }
 0x269   : > { %2928 = vrot.lane.b32.xlu0 %v6660_v2, %s5381_s11  ;;  %2893 = vrot.lane.b32.xlu1 %v6660_v2, %s5379_s28 }
 0x26d   : > { %3148 = vrot.lane.b32.xlu0 %v6666_v3, %s5381_s11  ;;  %3115 = vrot.lane.b32.xlu1 %v6666_v3, %s5379_s28 }
 0x271   : > { %2899 = vrot.lane.b32.xlu0 %v6675_v14, %s5379_s28  ;;  %2934 = vrot.lane.b32.xlu1 %v6675_v14, %s5381_s11 }
 0x275   : > { %3121 = vrot.lane.b32.xlu0 %v6681_v21, %s5379_s28  ;;  %3154 = vrot.lane.b32.xlu1 %v6681_v21, %s5381_s11 }
 0x279   : > { %2932 = vrot.lane.b32.xlu0 %v6690_v44, %s5381_s11  ;;  %2897 = vrot.lane.b32.xlu1 %v6690_v44, %s5379_s28 }
 0x27d   : > { %3152 = vrot.lane.b32.xlu0 %v6699_v32, %s5381_s11  ;;  %3119 = vrot.lane.b32.xlu1 %v6699_v32, %s5379_s28 }
 0x280   : > { %v2876_v23 = vpop.permute.xlu0 %2875 }
 0x281   : > { %2903 = vrot.lane.b32.xlu0 %v6708_v5, %s5379_s28  ;;  %2938 = vrot.lane.b32.xlu1 %v6708_v5, %s5381_s11  ;;  %v2946_v48 = vsel %vm542_vm2, %v4727_v47, %v2876_v23  ;;  %v4744_v47 = vcombine.low %v2788_v36, %v6746_v42 }
 0x282   : > { %v2915_v61 = vpop.permute.xlu1 %2914 }
 0x284   : > { %v3098_v41 = vpop.permute.xlu0 %3097 }
 0x285   : > { %3125 = vrot.lane.b32.xlu0 %v6714_v38, %s5379_s28  ;;  %3158 = vrot.lane.b32.xlu1 %v6714_v38, %s5381_s11 }
 0x286   : > { %v3135_v6 = vpop.permute.xlu1 %3134 }
 0x288   : > { %v6725_v50 = vpop.permute.xlu0 %2879 }
 0x289   : > { %2936 = vrot.lane.b32.xlu0 %v6723_v19, %s5381_s11  ;;  %2901 = vrot.lane.b32.xlu1 %v6723_v19, %s5379_s28 }
 0x28c   : > { %v6737_v13 = vpop.permute.xlu0 %3101 }
 0x28d   : > { %3156 = vrot.lane.b32.xlu0 %v6733_v30, %s5381_s11  ;;  %3123 = vrot.lane.b32.xlu1 %v6733_v30, %s5379_s28 }
 0x291   : > { %v2913_v31 = vpop.permute.xlu0 %2912  ;;  %v2878_v10 = vpop.permute.xlu1 %2877  ;;  %2940 = vrot.lane.b32.xlu0 %v4743_v59, %s5381_s11  ;;  %2905 = vrot.lane.b32.xlu1 %v4743_v59, %s5379_s28  ;;  %v3166_v59 = vsel %vm542_vm2, %v5329_v18, %v3098_v41  ;;  %v5352_v18 = vld [vmem:[#allocation2 + $0x10] sm:$0xf] }
 0x292   : > { %v6751_v17 = vsel %vm2992_vm0, %v2946_v48, %v2913_v31  ;;  %v2949_v53 = vsel %vm542_vm2, %v6326_v15, %v2878_v10 }
 0x293   : > { %7472 = vst [vmem:[#allocation5_spill] sm:$0xff] %v6751_v17  ;;  %v3246_v40 = vshll.u32 %v6751_v17, 16  ;;  %v6757_v23 = vsel %vm2992_vm0, %v2949_v53, %v2915_v61  ;;  %v3837_v53 = vld [vmem:[#allocation2 + $0xc] sm:$0xe]  ;;  %v3244_v36 = vshrl.u32 %v6751_v17, 16 }
 0x294   : > { %7473 = vst [vmem:[#allocation6_spill] sm:$0xff] %v6757_v23  ;;  %v3256_v7 = vshll.u32 %v6757_v23, 16  ;;  %v3838_v17 = vld [vmem:[#allocation2 + $0x18] sm:$0xe] }
 0x295   : > { %v3248_v38 = vrot.slane %v3246_v40, 1  ;;  %v3133_v48 = vpop.permute.xlu0 %3132  ;;  %v3100_v31 = vpop.permute.xlu1 %3099  ;;  %3160 = vrot.lane.b32.xlu0 %v5332_v8, %s5381_s11  ;;  %2942 = vrot.lane.b32.xlu1 %v4744_v47, %s5381_s11  ;;  %v6774_v40 = vcombine.low %v3837_v53, %v5352_v18  ;;  %v3254_v47 = vshrl.u32 %v6757_v23, 16  ;;  %v6785_v18 = vcombine.low %v3838_v17, %v6380_v39  ;;  %v5334_v23 = vld [vmem:[#allocation2 + $0xd4] ss:$0 sps:$4 sm:$0x11]  }
 0x296   : > { %v3258_v15 = vrot.slane %v3256_v7, 1  ;;  %v6765_v10 = vsel %vm2992_vm0, %v3166_v59, %v3133_v48  ;;  %v3169_v61 = vsel %vm542_vm2, %v6347_v54, %v3100_v31  ;;  %v3839_v39 = vld [vmem:[#allocation2 + $0x24] sm:$0xe] }
 0x297   : > { %v3250_v57 = vshll.u32 %v6765_v10, 16  ;;  %v6772_v41 = vsel %vm2992_vm0, %v3169_v61, %v3135_v6  ;;  %v3249_v59 = vor.u32 %v3248_v38, %v3244_v36  ;;  %v5353_v36 = vld [vmem:[#allocation2 + $0x28] sm:$0xf] }
 0x298   : > { %v3260_v7 = vshll.u32 %v6772_v41, 16  ;;  %v3259_v54 = vor.u32 %v3258_v15, %v3254_v47  ;;  %v6800_v47 = vcombine.low %v3839_v39, %v5353_v36 }
 0x299   : > { %v3252_v48 = vrot.slane %v3250_v57, 1  ;;  %3905 = vrot.lane.b32.xlu0 %v6774_v40, %s5379_s28  ;;  %3127 = vrot.lane.b32.xlu1 %v5332_v8, %s5379_s28  ;;  %v3673_v57 = vsel %vm3466_vm15, %v6647_v9, 0  ;;  %v5349_v8 = vld [vmem:[%s7441_s3] sm:$0xff]   ;;  %v3840_v9 = vld [vmem:[#allocation2 + $0x30] sm:$0xe] }
 0x29a   : > { %v3262_v31 = vrot.slane %v3260_v7, 1  ;;  %v6781_v6 = vpop.permute.xlu0 %2883  ;;  %v2919_v61 = vpop.permute.xlu1 %2918  ;;  %v6807_v7 = vcombine.low %v3840_v9, %v6476_v60  ;;  %v3841_v60 = vld [vmem:[#allocation2 + $0x3c] sm:$0xe] }
 0x29b   : > { %v3253_v53 = vsel %vm803_vm5, %v3249_v59, %v3252_v48 }
 0x29c   : > { %5110 = vmatprep.mubr.msk.bf16.mxu1 %vm3417_vm1, %v3253_v53  ;;  %v3263_v38 = vsel %vm803_vm5, %v3259_v54, %v3262_v31 }
 0x29d   : > { %5111 = vmatmul.mubr.msk.bf16.vlgmr.msra.gmra.mxu1 %vm3417_vm1, %v3263_v38  ;;  %3940 = vrot.lane.b32.xlu0 %v6785_v18, %s5381_s11 }
 0x29e   : > { %3162 = vrot.lane.b32.xlu1 %v5334_v23, %s5381_s11  ;;  %v6798_v17 = vpop.permute.xlu0 %3105  ;;  %5143 = vmatpush3.bf16.msra.mxu1 %v3673_v57  ;;  %v2952_v23 = vsel %vm542_vm2, %v6402_v4, %v6725_v50  ;;  %v6826_v4 = vcombine.low %v3841_v60, %v6435_v63  ;;  %v3172_v57 = vsel %vm542_vm2, %v6423_v0, %v6737_v13  ;;  %v5354_v63 = vld [vmem:[#allocation2 + $0x2c] ss:$0 sps:$4 sm:$0x11]  }
 0x29f   : > { %v3139_v15 = vpop.permute.xlu1 %3138  ;;  %5144 = vmatprep.subr.bf16.mxu1 %v5349_v8 }
 0x2a1   : > { %3909 = vrot.lane.b32.xlu0 %v6800_v47, %s5379_s28 }
 0x2a2   : > { %3907 = vrot.lane.b32.xlu1 %v6785_v18, %s5379_s28  ;;  %5145 = vmatpush3.bf16.msra.mxu1 %v5349_v8 }
 0x2a5   : > { %v2917_v59 = vpop.permute.xlu0 %2916  ;;  %v2882_v48 = vpop.permute.xlu1 %2881  ;;  %3944 = vrot.lane.b32.xlu0 %v6807_v7, %s5381_s11 }
 0x2a6   : > { %3942 = vrot.lane.b32.xlu1 %v6800_v47, %s5381_s11  ;;  %v6817_v54 = vsel %vm2992_vm0, %v2952_v23, %v2917_v59  ;;  %v2955_v31 = vsel %vm542_vm2, %v6342_v43, %v2882_v48  ;;  %v3842_v23 = vld [vmem:[#allocation2 + $0x48] sm:$0xe] }
 0x2a7   : > { %v3266_v53 = vshll.u32 %v6817_v54, 16  ;;  %v6823_v38 = vsel %vm2992_vm0, %v2955_v31, %v2919_v61  ;;  %v3264_v59 = vshrl.u32 %v6817_v54, 16  ;;  %v6846_v48 = vcombine.low %v3842_v23, %v6554_v62 }
 0x2a8   : > { %v3276_v50 = vshll.u32 %v6823_v38, 16  ;;  %v3274_v31 = vshrl.u32 %v6823_v38, 16 }
 0x2a9   : > { %v3268_v8 = vrot.slane %v3266_v53, 1  ;;  %v3137_v39 = vpop.permute.xlu0 %3136  ;;  %v3104_v36 = vpop.permute.xlu1 %3103  ;;  %3913 = vrot.lane.b32.xlu0 %v6826_v4, %s5379_s28 }
 0x2aa   : > { %3911 = vrot.lane.b32.xlu1 %v6807_v7, %s5379_s28  ;;  %v3278_v43 = vrot.slane %v3276_v50, 1  ;;  %v6837_v61 = vsel %vm2992_vm0, %v3172_v57, %v3137_v39  ;;  %v3175_v9 = vsel %vm542_vm2, %v5354_v63, %v3104_v36  ;;  %v3843_v36 = vld [vmem:[#allocation2 + $0x54] sm:$0xe] }
 0x2ab   : > { %v3270_v0 = vshll.u32 %v6837_v61, 16  ;;  %v6843_v13 = vsel %vm2992_vm0, %v3175_v9, %v3139_v15  ;;  %v3269_v53 = vor.u32 %v3268_v8, %v3264_v59  ;;  %v6856_v62 = vcombine.low %v3843_v36, %v6534_v11  ;;  %v3844_v8 = vld [vmem:[#allocation2 + $0x60] sm:$0xe]  ;;  %v3845_v11 = vld [vmem:[#allocation2 + $0x6c] sm:$0xe] }
 0x2ac   : > { %v3280_v60 = vshll.u32 %v6843_v13, 16  ;;  %v3279_v39 = vor.u32 %v3278_v43, %v3274_v31  ;;  %v6866_v23 = vcombine.low %v3844_v8, %v6611_v52  ;;  %v6875_v31 = vcombine.low %v3845_v11, %v6584_v51  ;;  %v3846_v52 = vld [vmem:[#allocation2 + $0x78] sm:$0xe] }
 0x2ad   : > { %v3272_v50 = vrot.slane %v3270_v0, 1  ;;  %3948 = vrot.lane.b32.xlu0 %v6846_v48, %s5381_s11 }
 0x2ae   : > { %3946 = vrot.lane.b32.xlu1 %v6826_v4, %s5381_s11  ;;  %v3282_v57 = vrot.slane %v3280_v60, 1  ;;  %v2958_v60 = vsel %vm542_vm2, %v6491_v27, %v6781_v6  ;;  %v3178_v6 = vsel %vm542_vm2, %v6509_v20, %v6798_v17  ;;  %v3848_v17 = vld [vmem:[#allocation2 + $0x90] sm:$0xe] }
 0x2af   : > { %v3273_v15 = vsel %vm803_vm5, %v3269_v53, %v3272_v50 }
 0x2b0   : > { %5114 = vmatprep.mubr.msk.bf16.mxu1 %vm3417_vm1, %v3273_v15  ;;  %v3283_v63 = vsel %vm803_vm5, %v3279_v39, %v3282_v57  ;;  %v6885_v57 = vcombine.low %v3846_v52, %v6653_v34  ;;  %v3847_v34 = vld [vmem:[#allocation2 + $0x84] sm:$0xe] }
 0x2b1   : > { %5115 = vmatmul.mubr.msk.bf16.gmra.mxu1 %vm3417_vm1, %v3283_v63  ;;  %3917 = vrot.lane.b32.xlu0 %v6856_v62, %s5379_s28  ;;  %v6905_v11 = vcombine.low %v3847_v34, %v6631_v29 }
 0x2b2   : > { %3915 = vrot.lane.b32.xlu1 %v6846_v48, %s5379_s28 }
 0x2b3   : > { %v2888_v43 = vpop.permute.xlu0 %2887  ;;  %v2923_v9 = vpop.permute.xlu1 %2922 }
 0x2b5   : > { %3952 = vrot.lane.b32.xlu0 %v6866_v23, %s5381_s11 }
 0x2b6   : > { %3950 = vrot.lane.b32.xlu1 %v6856_v62, %s5381_s11 }
 0x2b7   : > { %v6872_v59 = vpop.permute.xlu0 %3109  ;;  %v3143_v0 = vpop.permute.xlu1 %3142 }
 0x2b9   : > { %3921 = vrot.lane.b32.xlu0 %v6875_v31, %s5379_s28 }
 0x2ba   : > { %3919 = vrot.lane.b32.xlu1 %v6866_v23, %s5379_s28 }
 0x2bb   : > { %v2921_v53 = vpop.permute.xlu0 %2920  ;;  %v2886_v50 = vpop.permute.xlu1 %2885 }
 0x2bc   : > { %v6888_v39 = vsel %vm2992_vm0, %v2958_v60, %v2921_v53  ;;  %v2961_v51 = vsel %vm542_vm2, %v6446_v49, %v2886_v50 }
 0x2bd   : > { %v3286_v36 = vshll.u32 %v6888_v39, 16  ;;  %v6894_v15 = vsel %vm2992_vm0, %v2961_v51, %v2923_v9  ;;  %3956 = vrot.lane.b32.xlu0 %v6885_v57, %s5381_s11  ;;  %v3284_v53 = vshrl.u32 %v6888_v39, 16 }
 0x2be   : > { %3954 = vrot.lane.b32.xlu1 %v6875_v31, %s5381_s11  ;;  %v3296_v27 = vshll.u32 %v6894_v15, 16  ;;  %v3294_v20 = vshrl.u32 %v6894_v15, 16 }
 0x2bf   : > { %v3288_v63 = vrot.slane %v3286_v36, 1  ;;  %v3141_v49 = vpop.permute.xlu0 %3140  ;;  %v3108_v8 = vpop.permute.xlu1 %3107 }
 0x2c0   : > { %v3298_v9 = vrot.slane %v3296_v27, 1  ;;  %v6908_v52 = vsel %vm2992_vm0, %v3178_v6, %v3141_v49  ;;  %v3181_v60 = vsel %vm542_vm2, %v6463_v25, %v3108_v8  ;;  %v6926_v6 = vcombine.low %v3848_v17, %v6683_v37 }
 0x2c1   : > { %v3290_v50 = vshll.u32 %v6908_v52, 16  ;;  %v6915_v51 = vsel %vm2992_vm0, %v3181_v60, %v3143_v0  ;;  %3925 = vrot.lane.b32.xlu0 %v6905_v11, %s5379_s28  ;;  %v3289_v36 = vor.u32 %v3288_v63, %v3284_v53  ;;  %v3849_v60 = vld [vmem:[#allocation2 + $0x9c] sm:$0xe] }
 0x2c2   : > { %3923 = vrot.lane.b32.xlu1 %v6885_v57, %s5379_s28  ;;  %v3300_v29 = vshll.u32 %v6915_v51, 16  ;;  %v3299_v49 = vor.u32 %v3298_v9, %v3294_v20  ;;  %v3850_v9 = vld [vmem:[#allocation2 + $0xa8] sm:$0xe]  ;;  %v2964_v20 = vsel %vm542_vm2, %v6566_v24, %v2888_v43  ;;  %v3184_v43 = vsel %vm542_vm2, %v6582_v16, %v6872_v59  ;;  %v3852_v59 = vld [vmem:[#allocation2 + $0xc0] sm:$0xe] }
 0x2c3   : > { %v3292_v25 = vrot.slane %v3290_v50, 1  ;;  %v6923_v27 = vpop.permute.xlu0 %2891  ;;  %v2927_v34 = vpop.permute.xlu1 %2926  ;;  %v6937_v50 = vcombine.low %v3849_v60, %v6668_v1 }
 0x2c4   : > { %v3302_v0 = vrot.slane %v3300_v29, 1 }
 0x2c5   : > { %3960 = vrot.lane.b32.xlu0 %v6926_v6, %s5381_s11  ;;  %v3293_v8 = vsel %vm803_vm5, %v3289_v36, %v3292_v25  ;;  %v6946_v36 = vcombine.low %v3850_v9, %v6716_v22  ;;  %v3851_v22 = vld [vmem:[#allocation2 + $0xb4] sm:$0xe] }
 0x2c6   : > { %3958 = vrot.lane.b32.xlu1 %v6905_v11, %s5381_s11  ;;  %5118 = vmatprep.mubr.msk.bf16.mxu1 %vm3417_vm1, %v3293_v8  ;;  %v3303_v63 = vsel %vm803_vm5, %v3299_v49, %v3302_v0  ;;  %v6966_v60 = vcombine.low %v3851_v22, %v6701_v35 }
 0x2c7   : > { %5119 = vmatmul.mubr.msk.bf16.gmra.mxu1 %vm3417_vm1, %v3303_v63  ;;  %v3114_v53 = vpop.permute.xlu0 %3113  ;;  %v3147_v37 = vpop.permute.xlu1 %3146 }
 0x2c9   : > { %3929 = vrot.lane.b32.xlu0 %v6937_v50, %s5379_s28 }
 0x2ca   : > { %3927 = vrot.lane.b32.xlu1 %v6926_v6, %s5379_s28 }
 0x2cb   : > { %v2925_v29 = vpop.permute.xlu0 %2924  ;;  %v2890_v17 = vpop.permute.xlu1 %2889 }
 0x2cc   : > { %v6949_v25 = vsel %vm2992_vm0, %v2964_v20, %v2925_v29  ;;  %v2967_v1 = vsel %vm542_vm2, %v6544_v46, %v2890_v17 }
 0x2cd   : > { %v3306_v0 = vshll.u32 %v6949_v25, 16  ;;  %v6955_v49 = vsel %vm2992_vm0, %v2967_v1, %v2927_v34  ;;  %3964 = vrot.lane.b32.xlu0 %v6946_v36, %s5381_s11  ;;  %v3304_v29 = vshrl.u32 %v6949_v25, 16 }
 0x2ce   : > { %3962 = vrot.lane.b32.xlu1 %v6937_v50, %s5381_s11  ;;  %v3316_v24 = vshll.u32 %v6955_v49, 16  ;;  %v3314_v16 = vshrl.u32 %v6955_v49, 16 }
 0x2cf   : > { %v3308_v8 = vrot.slane %v3306_v0, 1  ;;  %v3145_v46 = vpop.permute.xlu0 %3144  ;;  %v3112_v63 = vpop.permute.xlu1 %3111 }
 0x2d0   : > { %v3318_v34 = vrot.slane %v3316_v24, 1  ;;  %v6969_v9 = vsel %vm2992_vm0, %v3184_v43, %v3145_v46  ;;  %v3187_v20 = vsel %vm542_vm2, %v6552_v58, %v3112_v63  ;;  %v4818_v43 = vcombine.low %v3852_v59, %v6735_v12  ;;  %v3853_v12 = vld [vmem:[#allocation2 + $0xcc] sm:$0xe] }
 0x2d1   : > { %v3310_v17 = vshll.u32 %v6969_v9, 16  ;;  %v6976_v1 = vsel %vm2992_vm0, %v3187_v20, %v3147_v37  ;;  %3933 = vrot.lane.b32.xlu0 %v6966_v60, %s5379_s28  ;;  %v3309_v0 = vor.u32 %v3308_v8, %v3304_v29 }
 0x2d2   : > { %3931 = vrot.lane.b32.xlu1 %v6946_v36, %s5379_s28  ;;  %v3320_v35 = vshll.u32 %v6976_v1, 16  ;;  %v3319_v37 = vor.u32 %v3318_v34, %v3314_v16  ;;  %v2970_v34 = vsel %vm542_vm2, %v6618_v26, %v6923_v27  ;;  %v3190_v26 = vsel %vm542_vm2, %v6629_v56, %v3114_v53 }
 0x2d3   : > { %v3312_v58 = vrot.slane %v3310_v17, 1  ;;  %v2896_v24 = vpop.permute.xlu0 %2895  ;;  %v2931_v22 = vpop.permute.xlu1 %2930 }
 0x2d4   : > { %v3322_v46 = vrot.slane %v3320_v35, 1  ;;  %v4819_v35 = vcombine.low %v3853_v12, %v6746_v42 }
 0x2d5   : > { %3968 = vrot.lane.b32.xlu0 %v4818_v43, %s5381_s11  ;;  %v3313_v63 = vsel %vm803_vm5, %v3309_v0, %v3312_v58 }
 0x2d6   : > { %3966 = vrot.lane.b32.xlu1 %v6966_v60, %s5381_s11  ;;  %5122 = vmatprep.mubr.msk.bf16.mxu1 %vm3417_vm1, %v3313_v63  ;;  %v3323_v20 = vsel %vm803_vm5, %v3319_v37, %v3322_v46 }
 0x2d7   : > { %5123 = vmatmul.mubr.msk.bf16.gmra.mxu1 %vm3417_vm1, %v3323_v20  ;;  %v3118_v8 = vpop.permute.xlu0 %3117  ;;  %v3151_v29 = vpop.permute.xlu1 %3150 }
 0x2da   : > { %3935 = vrot.lane.b32.xlu1 %v4818_v43, %s5379_s28 }
 0x2db   : > { %v2929_v17 = vpop.permute.xlu0 %2928  ;;  %v2894_v16 = vpop.permute.xlu1 %2893 }
 0x2dc   : > { %v6998_v59 = vsel %vm2992_vm0, %v2970_v34, %v2929_v17  ;;  %v2973_v0 = vsel %vm542_vm2, %v6598_v33, %v2894_v16 }
 0x2dd   : > { %v3326_v58 = vshll.u32 %v6998_v59, 16  ;;  %v7004_v46 = vsel %vm2992_vm0, %v2973_v0, %v2931_v22  ;;  %v3324_v22 = vshrl.u32 %v6998_v59, 16 }
 0x2de   : > { %3970 = vrot.lane.b32.xlu1 %v4819_v35, %s5381_s11  ;;  %v3336_v43 = vshll.u32 %v7004_v46, 16  ;;  %v3334_v17 = vshrl.u32 %v7004_v46, 16 }
 0x2df   : > { %v3328_v27 = vrot.slane %v3326_v58, 1  ;;  %v3149_v42 = vpop.permute.xlu0 %3148  ;;  %v3116_v37 = vpop.permute.xlu1 %3115 }
 0x2e0   : > { %v3338_v63 = vrot.slane %v3336_v43, 1  ;;  %v7011_v20 = vsel %vm2992_vm0, %v3190_v26, %v3149_v42  ;;  %v3193_v33 = vsel %vm542_vm2, %v6609_v28, %v3116_v37  ;;  %v2976_v37 = vsel %vm542_vm2, %v6660_v2, %v2896_v24 }
 0x2e1   : > { %v3330_v12 = vshll.u32 %v7011_v20, 16  ;;  %v7018_v34 = vsel %vm2992_vm0, %v3193_v33, %v3151_v29  ;;  %v3329_v53 = vor.u32 %v3328_v27, %v3324_v22 }
 0x2e2   : > { %v3340_v56 = vshll.u32 %v7018_v34, 16  ;;  %v3339_v43 = vor.u32 %v3338_v63, %v3334_v17 }
 0x2e3   : > { %v3332_v16 = vrot.slane %v3330_v12, 1  ;;  %v2900_v35 = vpop.permute.xlu0 %2899  ;;  %v2935_v0 = vpop.permute.xlu1 %2934 }
 0x2e4   : > { %v3342_v58 = vrot.slane %v3340_v56, 1 }
 0x2e5   : > { %v3333_v26 = vsel %vm803_vm5, %v3329_v53, %v3332_v16  ;;  %v3196_v53 = vsel %vm542_vm2, %v6666_v3, %v3118_v8 }
 0x2e6   : > { %5126 = vmatprep.mubr.msk.bf16.mxu1 %vm3417_vm1, %v3333_v26  ;;  %v3343_v28 = vsel %vm803_vm5, %v3339_v43, %v3342_v58 }
 0x2e7   : > { %5127 = vmatmul.mubr.msk.bf16.gmra.mxu1 %vm3417_vm1, %v3343_v28  ;;  %v3122_v29 = vpop.permute.xlu0 %3121  ;;  %v3155_v42 = vpop.permute.xlu1 %3154 }
 0x2eb   : > { %v2933_v33 = vpop.permute.xlu0 %2932  ;;  %v2898_v27 = vpop.permute.xlu1 %2897 }
 0x2ec   : > { %v7029_v22 = vsel %vm2992_vm0, %v2976_v37, %v2933_v33  ;;  %v2979_v63 = vsel %vm542_vm2, %v6638_v45, %v2898_v27 }
 0x2ed   : > { %v3346_v12 = vshll.u32 %v7029_v22, 16  ;;  %v7035_v17 = vsel %vm2992_vm0, %v2979_v63, %v2935_v0  ;;  %v3344_v26 = vshrl.u32 %v7029_v22, 16 }
 0x2ee   : > { %v3356_v56 = vshll.u32 %v7035_v17, 16  ;;  %v3354_v37 = vshrl.u32 %v7035_v17, 16 }
 0x2ef   : > { %v3348_v16 = vrot.slane %v3346_v12, 1  ;;  %v3153_v2 = vpop.permute.xlu0 %3152  ;;  %v3120_v24 = vpop.permute.xlu1 %3119 }
 0x2f0   : > { %v3358_v58 = vrot.slane %v3356_v56, 1  ;;  %v7041_v43 = vsel %vm2992_vm0, %v3196_v53, %v3153_v2  ;;  %v3199_v45 = vsel %vm542_vm2, %v6649_v55, %v3120_v24  ;;  %v2982_v24 = vsel %vm542_vm2, %v6690_v44, %v2900_v35 }
 0x2f1   : > { %v3350_v0 = vshll.u32 %v7041_v43, 16  ;;  %v7048_v28 = vsel %vm2992_vm0, %v3199_v45, %v3155_v42  ;;  %v3349_v8 = vor.u32 %v3348_v16, %v3344_v26 }
 0x2f2   : > { %v3360_v3 = vshll.u32 %v7048_v28, 16  ;;  %v3359_v56 = vor.u32 %v3358_v58, %v3354_v37 }
 0x2f3   : > { %v3352_v33 = vrot.slane %v3350_v0, 1  ;;  %v2904_v27 = vpop.permute.xlu0 %2903  ;;  %v2939_v63 = vpop.permute.xlu1 %2938 }
 0x2f4   : > { %v3362_v12 = vrot.slane %v3360_v3, 1 }
 0x2f5   : > { %v3353_v53 = vsel %vm803_vm5, %v3349_v8, %v3352_v33  ;;  %v3202_v8 = vsel %vm542_vm2, %v6699_v32, %v3122_v29  ;;  %v2988_v29 = vsel %vm542_vm2, %v6723_v19, %v2904_v27 }
 0x2f6   : > { %5130 = vmatprep.mubr.msk.bf16.mxu1 %vm3417_vm1, %v3353_v53  ;;  %v3363_v55 = vsel %vm803_vm5, %v3359_v56, %v3362_v12 }
 0x2f7   : > { %5131 = vmatmul.mubr.msk.bf16.gmra.mxu1 %vm3417_vm1, %v3363_v55  ;;  %v3126_v42 = vpop.permute.xlu0 %3125  ;;  %v3159_v2 = vpop.permute.xlu1 %3158 }
 0x2f8   : > { %v3208_v19 = vsel %vm542_vm2, %v6733_v30, %v3126_v42 }
 0x2fb   : > { %v2937_v45 = vpop.permute.xlu0 %2936  ;;  %v2902_v16 = vpop.permute.xlu1 %2901 }
 0x2fc   : > { %v7059_v26 = vsel %vm2992_vm0, %v2982_v24, %v2937_v45  ;;  %v2985_v58 = vsel %vm542_vm2, %v6675_v14, %v2902_v16 }
 0x2fd   : > { %v3366_v0 = vshll.u32 %v7059_v26, 16  ;;  %v7065_v37 = vsel %vm2992_vm0, %v2985_v58, %v2939_v63  ;;  %v3364_v53 = vshrl.u32 %v7059_v26, 16 }
 0x2fe   : > { %v3376_v3 = vshll.u32 %v7065_v37, 16  ;;  %v3374_v24 = vshrl.u32 %v7065_v37, 16 }
 0x2ff   : > { %v3368_v33 = vrot.slane %v3366_v0, 1  ;;  %v3157_v44 = vpop.permute.xlu0 %3156  ;;  %v3124_v35 = vpop.permute.xlu1 %3123 }
 0x300   : > { %v3378_v12 = vrot.slane %v3376_v3, 1  ;;  %v7071_v56 = vsel %vm2992_vm0, %v3202_v8, %v3157_v44  ;;  %v3205_v14 = vsel %vm542_vm2, %v6681_v21, %v3124_v35 }
 0x301   : > { %v3370_v63 = vshll.u32 %v7071_v56, 16  ;;  %v7078_v55 = vsel %vm2992_vm0, %v3205_v14, %v3159_v2  ;;  %v3369_v45 = vor.u32 %v3368_v33, %v3364_v53 }
 0x302   : > { %v3380_v32 = vshll.u32 %v7078_v55, 16  ;;  %v3379_v8 = vor.u32 %v3378_v12, %v3374_v24 }
 0x303   : > { %v3372_v16 = vrot.slane %v3370_v63, 1  ;;  %v2941_v58 = vpop.permute.xlu0 %2940  ;;  %v2906_v0 = vpop.permute.xlu1 %2905 }
 0x304   : > { %v3382_v3 = vrot.slane %v3380_v32, 1  ;;  %v7085_v21 = vsel %vm2992_vm0, %v2988_v29, %v2941_v58  ;;  %v2991_v33 = vsel %vm542_vm2, %v6708_v5, %v2906_v0  ;;  %v7474_v58 = vld [vmem:[#allocation3_spill] sm:$0xff] }
 0x305   : > { %v3386_v44 = vshll.u32 %v7085_v21, 16  ;;  %v3373_v2 = vsel %vm803_vm5, %v3369_v45, %v3372_v16  ;;  %v3384_v24 = vshrl.u32 %v7085_v21, 16  ;;  %v3836_v16 = vld [vmem:[#allocation2] sm:$0xe] }
 0x306   : > { %5134 = vmatprep.mubr.msk.bf16.mxu1 %vm3417_vm1, %v3373_v2  ;;  %v3383_v35 = vsel %vm803_vm5, %v3379_v8, %v3382_v3  ;;  %v4802_v0 = vcombine.low %v3836_v16, %v7474_v58  ;;  %v7475_v2 = vld [vmem:[#allocation4_spill] sm:$0xff] }
 0x307   : > { %v3388_v27 = vrot.slane %v3386_v44, 1  ;;  %5135 = vmatmul.mubr.msk.bf16.gmra.mxu1 %vm3417_vm1, %v3383_v35  ;;  %v3161_v14 = vpop.permute.xlu0 %3160  ;;  %v2943_v53 = vpop.permute.xlu1 %2942 }
 0x308   : > { %v7097_v12 = vsel %vm2992_vm0, %v3208_v19, %v3161_v14  ;;  %v7100_v63 = vsel %vm2992_vm0, %v2991_v33, %v2943_v53  ;;  %v4085_v53 = vrot.slane %v6765_v10, 1 }
 0x309   : > { %v3390_v32 = vshll.u32 %v7097_v12, 16  ;;  %v3389_v29 = vor.u32 %v3388_v27, %v3384_v24  ;;  %v3396_v42 = vshll.u32 %v7100_v63, 16  ;;  %v3394_v24 = vshrl.u32 %v7100_v63, 16 }
 0x30b   : > { %v3392_v30 = vrot.slane %v3390_v32, 1  ;;  %v3906_v45 = vpop.permute.xlu0 %3905  ;;  %v3128_v5 = vpop.permute.xlu1 %3127  ;;  %v3398_v8 = vrot.slane %v3396_v42, 1 }
 0x30c   : > { %v3974_v44 = vsel %vm542_vm2, %v4802_v0, %v3906_v45  ;;  %v3211_v35 = vsel %vm542_vm2, %v7475_v2, %v3128_v5 }
 0x30d   : > { %v3393_v3 = vsel %vm803_vm5, %v3389_v29, %v3392_v30  ;;  %v3399_v30 = vor.u32 %v3398_v8, %v3394_v24 }
 0x30e   : > { %5138 = vmatprep.mubr.msk.bf16.mxu1 %vm3417_vm1, %v3393_v3 }
 0x30f   : > { %v3941_v19 = vpop.permute.xlu0 %3940 }
 0x310   : > { %v3163_v27 = vpop.permute.xlu1 %3162  ;;  %v4021_v33 = vsel %vm2992_vm0, %v3974_v44, %v3941_v19  ;;  %v7476_v44 = vld [vmem:[#allocation5_spill] sm:$0xff]  ;;  %v4088_v19 = vrot.slane %v6772_v41, 1 }
 0x311   : > { %v7113_v14 = vsel %vm2992_vm0, %v3211_v35, %v3163_v27  ;;  %v4084_v32 = vrot.slane %v4021_v33, 1  ;;  %v4091_v27 = vrot.slane %v6837_v61, 1 }
 0x312   : > { %v3400_v29 = vshll.u32 %v7113_v14, 16 }
 0x313   : > { %v3910_v45 = vpop.permute.xlu0 %3909  ;;  %v4086_v5 = vsel %vm1485_vm4, %v4084_v32, %v4085_v53 }
 0x314   : > { %v3402_v42 = vrot.slane %v3400_v29, 1  ;;  %v3908_v16 = vpop.permute.xlu1 %3907  ;;  %5182 = vmatprep.mubr.msk.bf16.mxu0 %vm3417_vm1, %v4086_v5  ;;  %v3980_v10 = vsel %vm542_vm2, %v6785_v18, %v3910_v45  ;;  %v7477_v29 = vld [vmem:[#allocation6_spill] sm:$0xff]  ;;  %v4094_v5 = vrot.slane %v6843_v13, 1 }
 0x315   : > { %v3977_v0 = vsel %vm542_vm2, %v6774_v40, %v3908_v16 }
 0x316   : > { %v3403_v58 = vsel %vm803_vm5, %v3399_v30, %v3402_v42 }
 0x317   : > { %5139 = vmatmul.mubr.msk.bf16.gmra.mxu1 %vm3417_vm1, %v3403_v58  ;;  %v3945_v3 = vpop.permute.xlu0 %3944  ;;  %v4097_v58 = vrot.slane %v6908_v52, 1 }
 0x318   : > { %5146 = vmatprep.mubr.msk.bf16.mxu1 %vm3417_vm1, %v7476_v44  ;;  %v3943_v8 = vpop.permute.xlu1 %3942  ;;  %v4025_v2 = vsel %vm2992_vm0, %v3980_v10, %v3945_v3 }
 0x319   : > { %v4023_v35 = vsel %vm2992_vm0, %v3977_v0, %v3943_v8  ;;  %v4090_v33 = vrot.slane %v4025_v2, 1 }
 0x31a   : > { %v4087_v53 = vrot.slane %v4023_v35, 1 }
 0x31b   : > { %v3914_v24 = vpop.permute.xlu0 %3913  ;;  %v4092_v40 = vsel %vm1485_vm4, %v4090_v33, %v4091_v27  ;;  %v4103_v27 = vrot.slane %v6969_v9, 1 }
 0x31c   : > { %v4089_v18 = vsel %vm1485_vm4, %v4087_v53, %v4088_v19  ;;  %v3912_v32 = vpop.permute.xlu1 %3911  ;;  %v3986_v41 = vsel %vm542_vm2, %v6807_v7, %v3914_v24  ;;  %v4100_v19 = vrot.slane %v6915_v51, 1 }
 0x31d   : > { %5183 = vmatmul.mubr.msk.bf16.vlgmr.msra.gmra.mxu0 %vm3417_vm1, %v4089_v18  ;;  %v3983_v61 = vsel %vm542_vm2, %v6800_v47, %v3912_v32 }
 0x31e   : > { %5186 = vmatprep.mubr.msk.bf16.mxu0 %vm3417_vm1, %v4092_v40 }
 0x31f   : > { %5147 = vmatmul.mubr.msk.bf16.vlgmr.msra.gmra.mxu1 %vm3417_vm1, %v7477_v29  ;;  %v3949_v30 = vpop.permute.xlu0 %3948  ;;  %v4106_v29 = vrot.slane %v6976_v1, 1 }
 0x320   : > { %5150 = vmatprep.mubr.msk.bf16.mxu1 %vm3417_vm1, %v6817_v54  ;;  %v3947_v42 = vpop.permute.xlu1 %3946  ;;  %v4029_v45 = vsel %vm2992_vm0, %v3986_v41, %v3949_v30  ;;  %v4109_v41 = vrot.slane %v7011_v20, 1 }
 0x321   : > { %v4027_v16 = vsel %vm2992_vm0, %v3983_v61, %v3947_v42  ;;  %v4096_v10 = vrot.slane %v4029_v45, 1 }
 0x322   : > { %v4093_v0 = vrot.slane %v4027_v16, 1 }
 0x323   : > { %v3918_v3 = vpop.permute.xlu0 %3917  ;;  %v4098_v47 = vsel %vm1485_vm4, %v4096_v10, %v4097_v58  ;;  %v4112_v58 = vrot.slane %v7018_v34, 1  ;;  %v4115_v10 = vrot.slane %v7041_v43, 1 }
 0x324   : > { %v3916_v7 = vpop.permute.xlu1 %3915  ;;  %v4095_v44 = vsel %vm1485_vm4, %v4093_v0, %v4094_v5  ;;  %v3992_v54 = vsel %vm542_vm2, %v6846_v48, %v3918_v3 }
 0x325   : > { %5187 = vmatmul.mubr.msk.bf16.gmra.mxu0 %vm3417_vm1, %v4095_v44  ;;  %v3989_v13 = vsel %vm542_vm2, %v6826_v4, %v3916_v7 }
 0x326   : > { %5190 = vmatprep.mubr.msk.bf16.mxu0 %vm3417_vm1, %v4098_v47 }
 0x327   : > { %5151 = vmatmul.mubr.msk.bf16.gmra.mxu1 %vm3417_vm1, %v6823_v38  ;;  %v3953_v52 = vpop.permute.xlu0 %3952 }
 0x328   : > { %5154 = vmatprep.mubr.msk.bf16.mxu1 %vm3417_vm1, %v6888_v39  ;;  %v3951_v8 = vpop.permute.xlu1 %3950  ;;  %v4033_v2 = vsel %vm2992_vm0, %v3992_v54, %v3953_v52  ;;  %v4121_v52 = vrot.slane %v7071_v56, 1 }
 0x329   : > { %v4031_v35 = vsel %vm2992_vm0, %v3989_v13, %v3951_v8  ;;  %v4102_v38 = vrot.slane %v4033_v2, 1  ;;  %v4118_v13 = vrot.slane %v7048_v28, 1 }
 0x32a   : > { %v4099_v33 = vrot.slane %v4031_v35, 1 }
 0x32b   : > { %v3922_v53 = vpop.permute.xlu0 %3921  ;;  %v4104_v4 = vsel %vm1485_vm4, %v4102_v38, %v4103_v27 }
 0x32c   : > { %v3920_v48 = vpop.permute.xlu1 %3919  ;;  %v4101_v18 = vsel %vm1485_vm4, %v4099_v33, %v4100_v19  ;;  %v3998_v39 = vsel %vm542_vm2, %v6866_v23, %v3922_v53  ;;  %v4124_v33 = vrot.slane %v7078_v55, 1  ;;  %v4127_v53 = vrot.slane %v7097_v12, 1 }
 0x32d   : > { %5191 = vmatmul.mubr.msk.bf16.gmra.mxu0 %vm3417_vm1, %v4101_v18  ;;  %v3995_v51 = vsel %vm542_vm2, %v6856_v62, %v3920_v48 }
 0x32e   : > { %5194 = vmatprep.mubr.msk.bf16.mxu0 %vm3417_vm1, %v4104_v4  ;;  %v4130_v4 = vrot.slane %v7113_v14, 1 }
 0x32f   : > { %5155 = vmatmul.mubr.msk.bf16.gmra.mxu1 %vm3417_vm1, %v6894_v15  ;;  %v3957_v9 = vpop.permute.xlu0 %3956 }
 0x330   : > { %5158 = vmatprep.mubr.msk.bf16.mxu1 %vm3417_vm1, %v6949_v25  ;;  %v3955_v24 = vpop.permute.xlu1 %3954  ;;  %v4037_v32 = vsel %vm2992_vm0, %v3998_v39, %v3957_v9 }
 0x331   : > { %v4035_v40 = vsel %vm2992_vm0, %v3995_v51, %v3955_v24  ;;  %v4108_v15 = vrot.slane %v4037_v32, 1 }
 0x332   : > { %v4105_v61 = vrot.slane %v4035_v40, 1 }
 0x333   : > { %v3926_v30 = vpop.permute.xlu0 %3925  ;;  %v4110_v62 = vsel %vm1485_vm4, %v4108_v15, %v4109_v41 }
 0x334   : > { %v3924_v23 = vpop.permute.xlu1 %3923  ;;  %v4107_v42 = vsel %vm1485_vm4, %v4105_v61, %v4106_v29  ;;  %v4004_v25 = vsel %vm542_vm2, %v6885_v57, %v3926_v30 }
 0x335   : > { %5195 = vmatmul.mubr.msk.bf16.gmra.mxu0 %vm3417_vm1, %v4107_v42  ;;  %v4001_v1 = vsel %vm542_vm2, %v6875_v31, %v3924_v23 }
 0x336   : > { %5198 = vmatprep.mubr.msk.bf16.mxu0 %vm3417_vm1, %v4110_v62 }
 0x337   : > { %5159 = vmatmul.mubr.msk.bf16.gmra.mxu1 %vm3417_vm1, %v6955_v49  ;;  %v3961_v20 = vpop.permute.xlu0 %3960 }
 0x338   : > { %5162 = vmatprep.mubr.msk.bf16.mxu1 %vm3417_vm1, %v6998_v59  ;;  %v3959_v45 = vpop.permute.xlu1 %3958  ;;  %v4041_v16 = vsel %vm2992_vm0, %v4004_v25, %v3961_v20 }
 0x339   : > { %v4039_v5 = vsel %vm2992_vm0, %v4001_v1, %v3959_v45  ;;  %v4114_v49 = vrot.slane %v4041_v16, 1 }
 0x33a   : > { %v4111_v0 = vrot.slane %v4039_v5, 1 }
 0x33b   : > { %v3930_v3 = vpop.permute.xlu0 %3929  ;;  %v4116_v31 = vsel %vm1485_vm4, %v4114_v49, %v4115_v10 }
 0x33c   : > { %v3928_v57 = vpop.permute.xlu1 %3927  ;;  %v4113_v7 = vsel %vm1485_vm4, %v4111_v0, %v4112_v58  ;;  %v4010_v59 = vsel %vm542_vm2, %v6926_v6, %v3930_v3 }
 0x33d   : > { %5199 = vmatmul.mubr.msk.bf16.gmra.mxu0 %vm3417_vm1, %v4113_v7  ;;  %v4007_v34 = vsel %vm542_vm2, %v6905_v11, %v3928_v57 }
 0x33e   : > { %5202 = vmatprep.mubr.msk.bf16.mxu0 %vm3417_vm1, %v4116_v31 }
 0x33f   : > { %5163 = vmatmul.mubr.msk.bf16.gmra.mxu1 %vm3417_vm1, %v7004_v46  ;;  %v3965_v43 = vpop.permute.xlu0 %3964 }
 0x340   : > { %5166 = vmatprep.mubr.msk.bf16.mxu1 %vm3417_vm1, %v7029_v22  ;;  %v3963_v44 = vpop.permute.xlu1 %3962  ;;  %v4045_v47 = vsel %vm2992_vm0, %v4010_v59, %v3965_v43 }
 0x341   : > { %v4043_v54 = vsel %vm2992_vm0, %v4007_v34, %v3963_v44  ;;  %v4120_v46 = vrot.slane %v4045_v47, 1 }
 0x342   : > { %v4117_v8 = vrot.slane %v4043_v54, 1  ;;  %v7299_v54 = vld [vmem:[%s7442_s4] ss:$0 sm:$0xff] }
 0x343   : > { %v3934_v2 = vpop.permute.xlu0 %3933  ;;  %v4122_v11 = vsel %vm1485_vm4, %v4120_v46, %v4121_v52 }
 0x344   : > { %v3932_v6 = vpop.permute.xlu1 %3931  ;;  %v4119_v35 = vsel %vm1485_vm4, %v4117_v8, %v4118_v13  ;;  %v4016_v22 = vsel %vm542_vm2, %v6946_v36, %v3934_v2 }
 0x345   : > { %5203 = vmatmul.mubr.msk.bf16.gmra.mxu0 %vm3417_vm1, %v4119_v35  ;;  %v4013_v28 = vsel %vm542_vm2, %v6937_v50, %v3932_v6 }
 0x346   : > { %5206 = vmatprep.mubr.msk.bf16.mxu0 %vm3417_vm1, %v4122_v11 }
 0x347   : > { %5167 = vmatmul.mubr.msk.bf16.gmra.mxu1 %vm3417_vm1, %v7035_v17  ;;  %v3969_v56 = vpop.permute.xlu0 %3968 }
 0x348   : > { %5170 = vmatprep.mubr.msk.bf16.mxu1 %vm3417_vm1, %v7059_v26  ;;  %v3967_v19 = vpop.permute.xlu1 %3966  ;;  %v4049_v27 = vsel %vm2992_vm0, %v4016_v22, %v3969_v56 }
 0x349   : > { %v4047_v38 = vsel %vm2992_vm0, %v4013_v28, %v3967_v19  ;;  %v4126_v17 = vrot.slane %v4049_v27, 1 }
 0x34a   : > { %v4123_v48 = vrot.slane %v4047_v38, 1 }
 0x34b   : > { %v4128_v50 = vsel %vm1485_vm4, %v4126_v17, %v4127_v53 }
 0x34c   : > { %v3936_v18 = vpop.permute.xlu1 %3935  ;;  %v4125_v36 = vsel %vm1485_vm4, %v4123_v48, %v4124_v33 }
 0x34d   : > { %5207 = vmatmul.mubr.msk.bf16.gmra.mxu0 %vm3417_vm1, %v4125_v36  ;;  %v4019_v26 = vsel %vm542_vm2, %v6966_v60, %v3936_v18 }
 0x34e   : > { %5210 = vmatprep.mubr.msk.bf16.mxu0 %vm3417_vm1, %v4128_v50 }
 0x34f   : > { %5171 = vmatmul.mubr.msk.bf16.gmra.mxu1 %vm3417_vm1, %v7065_v37 }
 0x350   : > { %5174 = vmatprep.mubr.msk.bf16.mxu1 %vm3417_vm1, %v7085_v21  ;;  %v3971_v55 = vpop.permute.xlu1 %3970 }
 0x351   : > { %v4051_v12 = vsel %vm2992_vm0, %v4019_v26, %v3971_v55 }
 0x352   : > { %v4129_v39 = vrot.slane %v4051_v12, 1 }
 0x354   : > { %v4131_v51 = vsel %vm1485_vm4, %v4129_v39, %v4130_v4 }
 0x355   : > { %5211 = vmatmul.mubr.msk.bf16.gmra.mxu0 %vm3417_vm1, %v4131_v51 }
 0x357   : > { %5175 = vmatmul.mubr.msk.bf16.gmra.mxu1 %vm3417_vm1, %v7100_v63 }
 0x35d   : > { %v5112_v37 = vpop.f32.mrf.mxu1 }
 0x35f   : > { %v3504_v9 = vpop.f32.mrf.mxu1 }
 0x361   : > { %v5113_v24 = vpop.f32.mrf.mxu1 }
 0x363   : > { %v3507_v60 = vpop.f32.mrf.mxu1 }
 0x371   : > { %v5116_v32 = vpop.f32.mrf.mxu1 }
 0x373   : > { %v3520_v40 = vpop.f32.mrf.mxu1 }
 0x375   : > { %v7244_v21 = vpop.f32.mrf.mxu1 }
 0x377   : > { %v7246_v29 = vpop.f32.mrf.mxu1 }
 0x387   : > { %v7248_v41 = vpop.f32.mrf.mxu1 }
 0x389   : > { %v7250_v14 = vpop.f32.mrf.mxu1 }
 0x38b   : > { %v7252_v15 = vpop.f32.mrf.mxu1 }
 0x38d   : > { %v7254_v61 = vpop.f32.mrf.mxu1 }
 0x397   : > { %v7256_v30 = vpop.f32.mrf.mxu1 }
 0x399   : > { %v7258_v63 = vpop.f32.mrf.mxu1 }
 0x39b   : > { %v7260_v23 = vpop.f32.mrf.mxu1 }
 0x39d   : > { %v7262_v42 = vpop.f32.mrf.mxu1 }
 0x3a7   : > { %v7264_v62 = vpop.f32.mrf.mxu1 }
 0x3a9   : > { %v7266_v25 = vpop.f32.mrf.mxu1 }
 0x3ab   : > { %v7268_v1 = vpop.f32.mrf.mxu1 }
 0x3ad   : > { %v7270_v20 = vpop.f32.mrf.mxu1 }
 0x3b7   : > { %v7272_v45 = vpop.f32.mrf.mxu1 }
 0x3b9   : > { %v7274_v16 = vpop.f32.mrf.mxu1 }
 0x3bb   : > { %v7276_v5 = vpop.f32.mrf.mxu1 }
 0x3bd   : > { %v7278_v58 = vpop.f32.mrf.mxu1 }
 0x3c7   : > { %v7280_v10 = vpop.f32.mrf.mxu1 }
 0x3c9   : > { %v7282_v49 = vpop.f32.mrf.mxu1 }
 0x3cb   : > { %v7284_v0 = vpop.f32.mrf.mxu1 }
 0x3cd   : > { %v7286_v3 = vpop.f32.mrf.mxu1 }
 0x3d7   : > { %v7288_v57 = vpop.f32.mrf.mxu1 }
 0x3d9   : > { %v7290_v7 = vpop.f32.mrf.mxu1 }
 0x3db   : > { %v7292_v31 = vpop.f32.mrf.mxu1 }
 0x3dd   : > { %v7294_v59 = vpop.f32.mrf.mxu1  ;;  %v5184_v34 = vpop.f32.mrf.mxu0 }
 0x3df   : > { %v5148_v43 = vpop.f32.mrf.mxu1  ;;  %v4230_v44 = vpop.f32.mrf.mxu0 }
 0x3e0   : > { %v3718_v47 = vadd.f32 %v5148_v43, %v5112_v37 }
 0x3e1   : > { %v3709_v13 = vpop.f32.mrf.mxu1  ;;  %v5185_v52 = vpop.f32.mrf.mxu0 }
 0x3e2   : > { %v4359_v46 = vadd.f32 %v5184_v34, %v3718_v47  ;;  %v3710_v8 = vadd.f32 %v3709_v13, %v3504_v9 }
 0x3e3   : > { %v5149_v2 = vpop.f32.mrf.mxu1  ;;  %v4233_v6 = vpop.f32.mrf.mxu0 }
 0x3e4   : > { %v4398_v35 = vadd.f32 %v7299_v54, %v4359_v46  ;;  %v4357_v11 = vadd.f32 %v4230_v44, %v3710_v8  ;;  %v3721_v22 = vadd.f32 %v5149_v2, %v5113_v24 }
 0x3e5   : > { %v3712_v28 = vpop.f32.mrf.mxu1  ;;  %v5188_v56 = vpop.f32.mrf.mxu0 }
 0x3e6   : > { %v4430_v19 = vmax.f32 %v4398_v35, 0.0  ;;  %v4396_v27 = vadd.f32 %v7299_v54, %v4357_v11  ;;  %v4360_v38 = vadd.f32 %v5185_v52, %v3721_v22  ;;  %v3713_v33 = vadd.f32 %v3712_v28, %v3507_v60 }
 0x3e7   : > { %v5152_v53 = vpop.f32.mrf.mxu1  ;;  %v4246_v17 = vpop.f32.mrf.mxu0 }
 0x3e8   : > { %4462 = vst.msk [vmem:[%s7306_s10 + $0x10] sm:$0xff] %vm542_vm2, %v4430_v19  ;;  %v4428_v48 = vmax.f32 %v4396_v27, 0.0  ;;  %v4399_v18 = vadd.f32 %v7299_v54, %v4360_v38  ;;  %v4358_v36 = vadd.f32 %v4233_v6, %v3713_v33  ;;  %v3734_v50 = vadd.f32 %v5152_v53, %v5116_v32 }
 0x3e9   : > { %v3725_v26 = vpop.f32.mrf.mxu1  ;;  %v5189_v55 = vpop.f32.mrf.mxu0 }
 0x3ea   : > { %4460 = vst.msk [vmem:[%s7306_s10] sm:$0xff] %vm542_vm2, %v4428_v48  ;;  %v4431_v12 = vmax.f32 %v4399_v18, 0.0  ;;  %v4397_v4 = vadd.f32 %v7299_v54, %v4358_v36  ;;  %v4363_v39 = vadd.f32 %v5188_v56, %v3734_v50  ;;  %v3726_v51 = vadd.f32 %v3725_v26, %v3520_v40 }
 0x3eb   : > { %v5153_v37 = vpop.f32.mrf.mxu1  ;;  %v4249_v9 = vpop.f32.mrf.mxu0 }
 0x3ec   : > { %4463 = vst.msk [vmem:[%s7306_s10 + $0x18] sm:$0xff] %vm542_vm2, %v4431_v12  ;;  %v4429_v24 = vmax.f32 %v4397_v4, 0.0  ;;  %v4402_v60 = vadd.f32 %v7299_v54, %v4363_v39  ;;  %v4361_v34 = vadd.f32 %v4246_v17, %v3726_v51  ;;  %v3737_v32 = vadd.f32 %v5153_v37, %v7244_v21 }
 0x3ed   : > { %v3728_v43 = vpop.f32.mrf.mxu1  ;;  %v5192_v44 = vpop.f32.mrf.mxu0 }
 0x3ee   : > { %4461 = vst.msk [vmem:[%s7306_s10 + $0x8] sm:$0xff] %vm542_vm2, %v4429_v24  ;;  %v4434_v47 = vmax.f32 %v4402_v60, 0.0  ;;  %v4400_v13 = vadd.f32 %v7299_v54, %v4361_v34  ;;  %v4364_v40 = vadd.f32 %v5189_v55, %v3737_v32  ;;  %v3729_v52 = vadd.f32 %v3728_v43, %v7246_v29 }
 0x3ef   : > { %v5156_v46 = vpop.f32.mrf.mxu1  ;;  %v4262_v8 = vpop.f32.mrf.mxu0 }
 0x3f0   : > { %4466 = vst.msk [vmem:[%s7306_s10 + $0x30] sm:$0xff] %vm542_vm2, %v4434_v47  ;;  %v4432_v2 = vmax.f32 %v4400_v13, 0.0  ;;  %v4403_v6 = vadd.f32 %v7299_v54, %v4364_v40  ;;  %v4362_v21 = vadd.f32 %v4249_v9, %v3729_v52  ;;  %v3750_v35 = vadd.f32 %v5156_v46, %v7248_v41 }
 0x3f1   : > { %v3741_v11 = vpop.f32.mrf.mxu1  ;;  %v5193_v22 = vpop.f32.mrf.mxu0 }
 0x3f2   : > { %4464 = vst.msk [vmem:[%s7306_s10 + $0x20] sm:$0xff] %vm542_vm2, %v4432_v2  ;;  %v4435_v28 = vmax.f32 %v4403_v6, 0.0  ;;  %v4401_v56 = vadd.f32 %v7299_v54, %v4362_v21  ;;  %v4367_v29 = vadd.f32 %v5192_v44, %v3750_v35  ;;  %v3742_v19 = vadd.f32 %v3741_v11, %v7250_v14 }
 0x3f3   : > { %v5157_v27 = vpop.f32.mrf.mxu1  ;;  %v4265_v38 = vpop.f32.mrf.mxu0 }
 0x3f4   : > { %4467 = vst.msk [vmem:[%s7306_s10 + $0x38] sm:$0xff] %vm542_vm2, %v4435_v28  ;;  %v4433_v33 = vmax.f32 %v4401_v56, 0.0  ;;  %v4406_v53 = vadd.f32 %v7299_v54, %v4367_v29  ;;  %v4365_v41 = vadd.f32 %v4262_v8, %v3742_v19  ;;  %v3753_v17 = vadd.f32 %v5157_v27, %v7252_v15 }
 0x3f5   : > { %v3744_v48 = vpop.f32.mrf.mxu1  ;;  %v5196_v18 = vpop.f32.mrf.mxu0 }
 0x3f6   : > { %4465 = vst.msk [vmem:[%s7306_s10 + $0x28] sm:$0xff] %vm542_vm2, %v4433_v33  ;;  %v4438_v36 = vmax.f32 %v4406_v53, 0.0  ;;  %v4404_v50 = vadd.f32 %v7299_v54, %v4365_v41  ;;  %v4368_v14 = vadd.f32 %v5193_v22, %v3753_v17  ;;  %v3745_v26 = vadd.f32 %v3744_v48, %v7254_v61 }
 0x3f7   : > { %v5160_v55 = vpop.f32.mrf.mxu1  ;;  %v4278_v12 = vpop.f32.mrf.mxu0 }
 0x3f8   : > { %4470 = vst.msk [vmem:[%s7306_s10 + $0x50] sm:$0xff] %vm542_vm2, %v4438_v36  ;;  %v4436_v4 = vmax.f32 %v4404_v50, 0.0  ;;  %v4407_v39 = vadd.f32 %v7299_v54, %v4368_v14  ;;  %v4366_v15 = vadd.f32 %v4265_v38, %v3745_v26  ;;  %v3766_v51 = vadd.f32 %v5160_v55, %v7256_v30 }
 0x3f9   : > { %v3757_v37 = vpop.f32.mrf.mxu1  ;;  %v5197_v9 = vpop.f32.mrf.mxu0 }
 0x3fa   : > { %4468 = vst.msk [vmem:[%s7306_s10 + $0x40] sm:$0xff] %vm542_vm2, %v4436_v4  ;;  %v4439_v24 = vmax.f32 %v4407_v39, 0.0  ;;  %v4405_v60 = vadd.f32 %v7299_v54, %v4366_v15  ;;  %v4371_v61 = vadd.f32 %v5196_v18, %v3766_v51  ;;  %v3758_v34 = vadd.f32 %v3757_v37, %v7258_v63 }
 0x3fb   : > { %v5161_v32 = vpop.f32.mrf.mxu1  ;;  %v4281_v43 = vpop.f32.mrf.mxu0 }
 0x3fc   : > { %4471 = vst.msk [vmem:[%s7306_s10 + $0x58] sm:$0xff] %vm542_vm2, %v4439_v24  ;;  %v4437_v44 = vmax.f32 %v4405_v60, 0.0  ;;  %v4410_v47 = vadd.f32 %v7299_v54, %v4371_v61  ;;  %v4369_v30 = vadd.f32 %v4278_v12, %v3758_v34  ;;  %v3769_v13 = vadd.f32 %v5161_v32, %v7260_v23 }
 0x3fd   : > { %v3760_v40 = vpop.f32.mrf.mxu1  ;;  %v5200_v52 = vpop.f32.mrf.mxu0 }
 0x3fe   : > { %4469 = vst.msk [vmem:[%s7306_s10 + $0x48] sm:$0xff] %vm542_vm2, %v4437_v44  ;;  %v4442_v46 = vmax.f32 %v4410_v47, 0.0  ;;  %v4408_v8 = vadd.f32 %v7299_v54, %v4369_v30  ;;  %v4372_v63 = vadd.f32 %v5197_v9, %v3769_v13  ;;  %v3761_v2 = vadd.f32 %v3760_v40, %v7262_v42 }
 0x3ff   : > { %v5164_v6 = vpop.f32.mrf.mxu1  ;;  %v4294_v21 = vpop.f32.mrf.mxu0 }
 0x400   : > { %4474 = vst.msk [vmem:[%s7306_s10 + $0x70] sm:$0xff] %vm542_vm2, %v4442_v46  ;;  %v4440_v35 = vmax.f32 %v4408_v8, 0.0  ;;  %v4411_v11 = vadd.f32 %v7299_v54, %v4372_v63  ;;  %v4370_v23 = vadd.f32 %v4281_v43, %v3761_v2  ;;  %v3782_v22 = vadd.f32 %v5164_v6, %v7264_v62 }
 0x401   : > { %v3773_v28 = vpop.f32.mrf.mxu1  ;;  %v5201_v56 = vpop.f32.mrf.mxu0 }
 0x402   : > { %4472 = vst.msk [vmem:[%s7306_s10 + $0x60] sm:$0xff] %vm542_vm2, %v4440_v35  ;;  %v4443_v29 = vmax.f32 %v4411_v11, 0.0  ;;  %v4409_v19 = vadd.f32 %v7299_v54, %v4370_v23  ;;  %v4375_v42 = vadd.f32 %v5200_v52, %v3782_v22  ;;  %v3774_v27 = vadd.f32 %v3773_v28, %v7266_v25 }
 0x403   : > { %v5165_v38 = vpop.f32.mrf.mxu1  ;;  %v4297_v33 = vpop.f32.mrf.mxu0 }
 0x404   : > { %4475 = vst.msk [vmem:[%s7306_s10 + $0x78] sm:$0xff] %vm542_vm2, %v4443_v29  ;;  %v4441_v53 = vmax.f32 %v4409_v19, 0.0  ;;  %v4414_v41 = vadd.f32 %v7299_v54, %v4375_v42  ;;  %v4373_v62 = vadd.f32 %v4294_v21, %v3774_v27  ;;  %v3785_v17 = vadd.f32 %v5165_v38, %v7268_v1 }
 0x405   : > { %v3776_v48 = vpop.f32.mrf.mxu1  ;;  %v5204_v18 = vpop.f32.mrf.mxu0 }
 0x406   : > { %4473 = vst.msk [vmem:[%s7306_s10 + $0x68] sm:$0xff] %vm542_vm2, %v4441_v53  ;;  %v4446_v36 = vmax.f32 %v4414_v41, 0.0  ;;  %v4412_v50 = vadd.f32 %v7299_v54, %v4373_v62  ;;  %v4376_v25 = vadd.f32 %v5201_v56, %v3785_v17  ;;  %v3777_v14 = vadd.f32 %v3776_v48, %v7270_v20 }
 0x407   : > { %v5168_v26 = vpop.f32.mrf.mxu1  ;;  %v4310_v55 = vpop.f32.mrf.mxu0 }
 0x408   : > { %4478 = vst.msk [vmem:[%s7306_s10 + $0x90] sm:$0xff] %vm542_vm2, %v4446_v36  ;;  %v4444_v12 = vmax.f32 %v4412_v50, 0.0  ;;  %v4415_v4 = vadd.f32 %v7299_v54, %v4376_v25  ;;  %v4374_v1 = vadd.f32 %v4297_v33, %v3777_v14  ;;  %v3798_v39 = vadd.f32 %v5168_v26, %v7272_v45 }
 0x409   : > { %v3789_v15 = vpop.f32.mrf.mxu1  ;;  %v5205_v51 = vpop.f32.mrf.mxu0 }
 0x40a   : > { %4476 = vst.msk [vmem:[%s7306_s10 + $0x80] sm:$0xff] %vm542_vm2, %v4444_v12  ;;  %v4447_v37 = vmax.f32 %v4415_v4, 0.0  ;;  %v4413_v9 = vadd.f32 %v7299_v54, %v4374_v1  ;;  %v4379_v20 = vadd.f32 %v5204_v18, %v3798_v39  ;;  %v3790_v24 = vadd.f32 %v3789_v15, %v7274_v16 }
 0x40b   : > { %v5169_v60 = vpop.f32.mrf.mxu1  ;;  %v4313_v61 = vpop.f32.mrf.mxu0 }
 0x40c   : > { %4479 = vst.msk [vmem:[%s7306_s10 + $0x98] sm:$0xff] %vm542_vm2, %v4447_v37  ;;  %v4445_v34 = vmax.f32 %v4413_v9, 0.0  ;;  %v4418_v32 = vadd.f32 %v7299_v54, %v4379_v20  ;;  %v4377_v45 = vadd.f32 %v4310_v55, %v3790_v24  ;;  %v3801_v43 = vadd.f32 %v5169_v60, %v7276_v5 }
 0x40d   : > { %v3792_v44 = vpop.f32.mrf.mxu1  ;;  %v5208_v47 = vpop.f32.mrf.mxu0 }
 0x40e   : > { %4477 = vst.msk [vmem:[%s7306_s10 + $0x88] sm:$0xff] %vm542_vm2, %v4445_v34  ;;  %v4450_v30 = vmax.f32 %v4418_v32, 0.0  ;;  %v4416_v13 = vadd.f32 %v7299_v54, %v4377_v45  ;;  %v4380_v16 = vadd.f32 %v5205_v51, %v3801_v43  ;;  %v3793_v40 = vadd.f32 %v3792_v44, %v7278_v58 }
 0x40f   : > { %v5172_v52 = vpop.f32.mrf.mxu1  ;;  %v4326_v46 = vpop.f32.mrf.mxu0 }
 0x410   : > { %4482 = vst.msk [vmem:[%s7306_s10 + $0xb0] sm:$0xff] %vm542_vm2, %v4450_v30  ;;  %v4448_v8 = vmax.f32 %v4416_v13, 0.0  ;;  %v4419_v63 = vadd.f32 %v7299_v54, %v4380_v16  ;;  %v4378_v5 = vadd.f32 %v4313_v61, %v3793_v40  ;;  %v3814_v2 = vadd.f32 %v5172_v52, %v7280_v10 }
 0x411   : > { %v3805_v6 = vpop.f32.mrf.mxu1  ;;  %v5209_v21 = vpop.f32.mrf.mxu0 }
 0x412   : > { %4480 = vst.msk [vmem:[%s7306_s10 + $0xa0] sm:$0xff] %vm542_vm2, %v4448_v8  ;;  %v4451_v35 = vmax.f32 %v4419_v63, 0.0  ;;  %v4417_v11 = vadd.f32 %v7299_v54, %v4378_v5  ;;  %v4383_v58 = vadd.f32 %v5208_v47, %v3814_v2  ;;  %v3806_v23 = vadd.f32 %v3805_v6, %v7282_v49 }
 0x413   : > { %v5173_v22 = vpop.f32.mrf.mxu1  ;;  %v4329_v28 = vpop.f32.mrf.mxu0 }
 0x414   : > { %4483 = vst.msk [vmem:[%s7306_s10 + $0xb8] sm:$0xff] %vm542_vm2, %v4451_v35  ;;  %v4449_v56 = vmax.f32 %v4417_v11, 0.0  ;;  %v4422_v29 = vadd.f32 %v7299_v54, %v4383_v58  ;;  %v4381_v10 = vadd.f32 %v4326_v46, %v3806_v23  ;;  %v3817_v19 = vadd.f32 %v5173_v22, %v7284_v0 }
 0x415   : > { %v3808_v42 = vpop.f32.mrf.mxu1  ;;  %v5212_v27 = vpop.f32.mrf.mxu0 }
 0x416   : > { %4481 = vst.msk [vmem:[%s7306_s10 + $0xa8] sm:$0xff] %vm542_vm2, %v4449_v56  ;;  %v4454_v38 = vmax.f32 %v4422_v29, 0.0  ;;  %v4420_v33 = vadd.f32 %v7299_v54, %v4381_v10  ;;  %v4384_v49 = vadd.f32 %v5209_v21, %v3817_v19  ;;  %v3809_v53 = vadd.f32 %v3808_v42, %v7286_v3 }
 0x417   : > { %v5176_v41 = vpop.f32.mrf.mxu1  ;;  %v4342_v62 = vpop.f32.mrf.mxu0 }
 0x418   : > { %4486 = vst.msk [vmem:[%s7306_s10 + $0xd0] sm:$0xff] %vm542_vm2, %v4454_v38  ;;  %v4452_v17 = vmax.f32 %v4420_v33, 0.0  ;;  %v4423_v48 = vadd.f32 %v7299_v54, %v4384_v49  ;;  %v4382_v0 = vadd.f32 %v4329_v28, %v3809_v53  ;;  %v3830_v18 = vadd.f32 %v5176_v41, %v7288_v57 }
 0x419   : > { %v3821_v36 = vpop.f32.mrf.mxu1  ;;  %v5213_v26 = vpop.f32.mrf.mxu0 }
 0x41a   : > { %4484 = vst.msk [vmem:[%s7306_s10 + $0xc0] sm:$0xff] %vm542_vm2, %v4452_v17  ;;  %v4455_v50 = vmax.f32 %v4423_v48, 0.0  ;;  %v4421_v25 = vadd.f32 %v7299_v54, %v4382_v0  ;;  %v4387_v14 = vadd.f32 %v5212_v27, %v3830_v18  ;;  %v3822_v3 = vadd.f32 %v3821_v36, %v7290_v7 }
 0x41b   : > { %v5177_v55 = vpop.f32.mrf.mxu1  ;;  %v4345_v9 = vpop.f32.mrf.mxu0 }
 0x41c   : > { %4487 = vst.msk [vmem:[%s7306_s10 + $0xd8] sm:$0xff] %vm542_vm2, %v4455_v50  ;;  %v4453_v12 = vmax.f32 %v4421_v25, 0.0  ;;  %v4426_v4 = vadd.f32 %v7299_v54, %v4387_v14  ;;  %v4385_v1 = vadd.f32 %v4342_v62, %v3822_v3  ;;  %v3833_v57 = vadd.f32 %v5177_v55, %v7292_v31 }
 0x41d   : > { %v3824_v39 = vpop.f32.mrf.mxu1 }
 0x41e   : > { %4485 = vst.msk [vmem:[%s7306_s10 + $0xc8] sm:$0xff] %vm542_vm2, %v4453_v12  ;;  %v4458_v15 = vmax.f32 %v4426_v4, 0.0  ;;  %v4424_v51 = vadd.f32 %v7299_v54, %v4385_v1  ;;  %v4388_v7 = vadd.f32 %v5213_v26, %v3833_v57  ;;  %v3825_v37 = vadd.f32 %v3824_v39, %v7294_v59 }
 0x420   : > { %4490 = vst.msk [vmem:[%s7306_s10 + $0xf0] sm:$0xff] %vm542_vm2, %v4458_v15  ;;  %v4456_v20 = vmax.f32 %v4424_v51, 0.0  ;;  %v4427_v24 = vadd.f32 %v7299_v54, %v4388_v7  ;;  %v4386_v60 = vadd.f32 %v4345_v9, %v3825_v37 }
 0x422   : > { %4488 = vst.msk [vmem:[%s7306_s10 + $0xe0] sm:$0xff] %vm542_vm2, %v4456_v20  ;;  %v4459_v31 = vmax.f32 %v4427_v24, 0.0  ;;  %v4425_v61 = vadd.f32 %v7299_v54, %v4386_v60 }
 0x424   : > { %4491 = vst.msk [vmem:[%s7306_s10 + $0xf8] sm:$0xff] %vm542_vm2, %v4459_v31  ;;  %v4457_v34 = vmax.f32 %v4425_v61, 0.0 }
 0x426   : > { %4489 = vst.msk [vmem:[%s7306_s10 + $0xe8] sm:$0xff] %vm542_vm2, %v4457_v34 }
 0x427 PF: > { %s15_s20 = sadd.s32 1, %s5377_s20   ;;  %s7478_s18 = smov %s5373_s19 }
 0x428   : > { %p12_p5 = scmp.ge.s32.totalorder %s15_s20, 4   ;;  %s7479_s19 = smov %s7481_s21 }
 0x42a   :  { %14 = sbr.rel (!%p12_p5) target bundleno = 2 (0x2), region = 75 }

</bundles_post_ra>
